<compile_context>
chip_gen: v5e
topology: v5e:2x2
jax: 0.10.0
libtpu: 0.0.40
codegen_flags: <defaults>
</compile_context>

<pallas_src>
import functools

import jax
import jax.numpy as jnp
from jax import lax
from jax.experimental import pallas as pl
from jax.experimental.pallas import tpu as pltpu

BN_EPS = 1e-5
LANE = 128        # channel padding target (TPU lane width)
WALIGN = 16       # bf16 min tile is (16, 128) on the last two dims
LPAD = 16         # left spatial pad; 16 keeps bf16 interior stores tile-aligned


def _round_up(v, m):
    return ((v + m - 1) // m) * m


def _padded_width(w):
    # [LPAD zero cols | w data cols | >=1 zero col], rounded to a bf16 tile.
    return _round_up(LPAD + w + 1, WALIGN)


@functools.lru_cache(maxsize=None)
def _vmem_limit_bytes():
    """Generation-dependent VMEM budget (don't impose v7x's 64 MiB on 128 MiB chips)."""
    cap = 128 * 1024 * 1024
    try:
        cap = int(pltpu.get_tpu_info().vmem_capacity_bytes)
    except Exception:
        pass  # no TPU visible at trace time / older jax: keep the default
    return int(min(cap - 16 * 1024 * 1024, 112 * 1024 * 1024))


def _pick_tile_rows(h, w):
    """Largest divisor of H with TH*W <= ~4096 (amortize grid-step overhead)."""
    target = max(1, min(h, 4096 // max(w, 1)))
    while h % target:
        target -= 1
    return target


# -----------------------------------------------------------------------------
# Pass 1: 3x3 conv (stride 1, pad 1, no bias) + ReLU + per-channel sum / sumsq
# -----------------------------------------------------------------------------
def _conv_relu_stats_kernel(x_ref, w_ref, y_ref, sum_ref, sq_ref):
    # x_ref:   (1, H+2, Wp, Cin_pad)   bf16 padded image, resident across row tiles
    # w_ref:   (3, 3*Cin_pad, Cout_pad) bf16 taps, kx folded into the K dim
    # y_ref:   (1, TH, W, Cout_pad)    bf16 conv+ReLU output row tile
    # sum_ref: (1, 1, Cout_pad)        f32 per-channel sum (resident across r)
    # sq_ref:  (1, 1, Cout_pad)        f32 per-channel sum of squares
    _, th, w, cout = y_ref.shape
    k3 = w_ref.shape[1]                      # 3 * Cin_pad
    r = pl.program_id(1)
    row0 = pl.multiple_of(r * th, th)

    acc = None
    for ky in range(3):
        # One aligned full-width load per ky (already bf16 -> no per-tap cast);
        # the three kx shifts are value slices concatenated along the
        # contraction dim, giving one K=3*Cin_pad matmul per ky.
        win = x_ref[:, pl.ds(row0 + ky, th), :, :]          # (1, th, Wp, Cin_pad)
        lhs = jnp.concatenate(
            [lax.slice_in_dim(win, LPAD - 1 + kx, LPAD - 1 + kx + w, axis=2)
             for kx in range(3)],
            axis=-1).reshape(th * w, k3)
        contrib = jnp.dot(lhs, w_ref[ky], preferred_element_type=jnp.float32)
        acc = contrib if acc is None else acc + contrib     # f32 value chain

    y = jnp.maximum(acc, 0.0)                               # conv -> ReLU -> BN order
    y_ref[...] = y.astype(y_ref.dtype).reshape(1, th, w, cout)

    # One-traversal BN statistics (per batch element; blocks resident across r).
    @pl.when(r == 0)
    def _():
        sum_ref[...] = jnp.zeros_like(sum_ref)
        sq_ref[...] = jnp.zeros_like(sq_ref)

    sum_ref[...] += jnp.sum(y, axis=0).reshape(1, 1, cout)
    sq_ref[...] += jnp.sum(y * y, axis=0).reshape(1, 1, cout)


def conv3x3_relu_stats(x_pad, w_packed, out_h, out_w, tile_rows):
    n, hp, wp, cin = x_pad.shape
    cout = w_packed.shape[2]
    n_row_tiles = out_h // tile_rows
    return pl.pallas_call(
        _conv_relu_stats_kernel,
        out_shape=(
            jax.ShapeDtypeStruct((n, out_h, out_w, cout), jnp.bfloat16),
            jax.ShapeDtypeStruct((n, 1, cout), jnp.float32),
            jax.ShapeDtypeStruct((n, 1, cout), jnp.float32),
        ),
        grid=(n, n_row_tiles),
        in_specs=[
            # Full padded image per batch element; block index constant along
            # the row-tile axis -> fetched once per n, resident in VMEM.
            pl.BlockSpec((1, hp, wp, cin), lambda i, r: (i, 0, 0, 0)),
            pl.BlockSpec(w_packed.shape, lambda i, r: (0, 0, 0)),
        ],
        out_specs=(
            pl.BlockSpec((1, tile_rows, out_w, cout), lambda i, r: (i, r, 0, 0)),
            pl.BlockSpec((1, 1, cout), lambda i, r: (i, 0, 0)),
            pl.BlockSpec((1, 1, cout), lambda i, r: (i, 0, 0)),
        ),
        compiler_params=pltpu.CompilerParams(
            dimension_semantics=("parallel", "arbitrary"),
            vmem_limit_bytes=_vmem_limit_bytes(),
        ),
    )(x_pad, w_packed)


# -----------------------------------------------------------------------------
# Pass 2a: apply BN affine and write into the spatially padded, lane-dense bf16
# buffer that the next conv consumes (no wrapper jnp.pad round trip).
# -----------------------------------------------------------------------------
def _bn_apply_pad_kernel(y_ref, scale_ref, shift_ref, o_ref):
    # y_ref:     (1, TH, W, C) bf16;  scale/shift: (1, C) f32
    # o_ref:     (1, H+2, Wp, C) bf16 padded image (resident across row tiles)
    _, th, w, c = y_ref.shape
    hp, wp = o_ref.shape[1], o_ref.shape[2]
    r = pl.program_id(1)

    @pl.when(r == 0)
    def _():
        # Zero only the halo (top/bottom rows + pad columns); the interior is
        # fully overwritten across the row tiles below.
        zrow = jnp.zeros((1, 1, wp, c), o_ref.dtype)
        o_ref[:, pl.ds(0, 1), :, :] = zrow
        o_ref[:, pl.ds(hp - 1, 1), :, :] = zrow
        o_ref[:, :, pl.ds(0, LPAD), :] = jnp.zeros((1, hp, LPAD, c), o_ref.dtype)
        rpad = wp - LPAD - w
        o_ref[:, :, pl.ds(LPAD + w, rpad), :] = jnp.zeros((1, hp, rpad, c), o_ref.dtype)

    row0 = pl.multiple_of(r * th, th)
    out = (y_ref[...].astype(jnp.float32).reshape(th * w, c)
           * scale_ref[...] + shift_ref[...])
    o_ref[:, pl.ds(row0 + 1, th), pl.ds(LPAD, w), :] = (
        out.astype(o_ref.dtype).reshape(1, th, w, c))


def bn_apply_into_padded(y, scale, shift, tile_rows):
    n, h, w, c = y.shape
    hp, wp = h + 2, _padded_width(w)
    n_row_tiles = h // tile_rows
    return pl.pallas_call(
        _bn_apply_pad_kernel,
        out_shape=jax.ShapeDtypeStruct((n, hp, wp, c), jnp.bfloat16),
        grid=(n, n_row_tiles),
        in_specs=[
            pl.BlockSpec((1, tile_rows, w, c), lambda i, r: (i, r, 0, 0)),
            pl.BlockSpec((1, c), lambda i, r: (0, 0)),
            pl.BlockSpec((1, c), lambda i, r: (0, 0)),
        ],
        out_specs=pl.BlockSpec((1, hp, wp, c), lambda i, r: (i, 0, 0, 0)),
        compiler_params=pltpu.CompilerParams(
            dimension_semantics=("parallel", "arbitrary"),
            vmem_limit_bytes=_vmem_limit_bytes(),
        ),
    )(y, scale, shift)


# -----------------------------------------------------------------------------
# Pass 2b: final BN apply — no halo, writes the unpadded (N, H, W, C_pad) slab.
# -----------------------------------------------------------------------------
def _bn_apply_final_kernel(y_ref, scale_ref, shift_ref, o_ref):
    _, th, w, c = y_ref.shape
    out = (y_ref[...].astype(jnp.float32).reshape(th * w, c)
           * scale_ref[...] + shift_ref[...])
    o_ref[...] = out.reshape(1, th, w, c).astype(o_ref.dtype)


def bn_apply_final(y, scale, shift, tile_rows):
    n, h, w, c = y.shape
    n_row_tiles = h // tile_rows
    return pl.pallas_call(
        _bn_apply_final_kernel,
        out_shape=jax.ShapeDtypeStruct((n, h, w, c), jnp.float32),
        grid=(n, n_row_tiles),
        in_specs=[
            pl.BlockSpec((1, tile_rows, w, c), lambda i, r: (i, r, 0, 0)),
            pl.BlockSpec((1, c), lambda i, r: (0, 0)),
            pl.BlockSpec((1, c), lambda i, r: (0, 0)),
        ],
        out_specs=pl.BlockSpec((1, tile_rows, w, c), lambda i, r: (i, r, 0, 0)),
        compiler_params=pltpu.CompilerParams(
            dimension_semantics=("parallel", "parallel"),
            vmem_limit_bytes=_vmem_limit_bytes(),
        ),
    )(y, scale, shift)


def _bn_scale_shift(ssum, ssq, gamma, beta, count):
    """Fold per-batch-element stats into BN scale/shift (tiny, f32)."""
    total = jnp.sum(ssum, axis=(0, 1))                      # (C,)
    total2 = jnp.sum(ssq, axis=(0, 1))                      # (C,)
    mean = total / count
    var = jnp.maximum(total2 / count - mean * mean, 0.0)    # biased variance
    scale = gamma * lax.rsqrt(var + BN_EPS)                 # padded ch: gamma=0 -> 0
    shift = beta - mean * scale
    return scale[None, :], shift[None, :]


@functools.partial(jax.jit, static_argnames=("planes", "tile_rows"))
def basic_block_forward(x_nchw, params, *, planes, tile_rows=None):
    n, _, h, w = x_nchw.shape
    if tile_rows is None:
        tile_rows = _pick_tile_rows(h, w)
    assert h % tile_rows == 0, (h, tile_rows)
    cin_pad = params["w1"].shape[1] // 3
    count = float(n * h * w)
    wp = _padded_width(w)

    # NCHW -> NHWC only at the module boundary (everything inside the block is
    # channels-last / lane-dense); channel-pad to 128 lanes, add the spatial
    # halo, and store bf16 (the conv LHS dtype).
    x = jnp.transpose(x_nchw, (0, 2, 3, 1))
    x_pad = jnp.pad(
        x, ((0, 0), (1, 1), (LPAD, wp - LPAD - w), (0, cin_pad - x.shape[3]))
    ).astype(jnp.bfloat16)

    # Stage 1: conv1 -> relu -> bn1 (normalize writes straight into conv2's
    # padded bf16 input buffer).
    y1, s1, q1 = conv3x3_relu_stats(x_pad, params["w1"], h, w, tile_rows)
    sc1, sh1 = _bn_scale_shift(s1, q1, params["g1"], params["b1"], count)
    x2_pad = bn_apply_into_padded(y1, sc1, sh1, tile_rows)

    # Stage 2: conv2 -> relu -> bn2 (final: no halo, f32 output).
    y2, s2, q2 = conv3x3_relu_stats(x2_pad, params["w2"], h, w, tile_rows)
    sc2, sh2 = _bn_scale_shift(s2, q2, params["g2"], params["b2"], count)
    out_nhwc = bn_apply_final(y2, sc2, sh2, tile_rows)

    # Strip channel padding, back to NCHW at the module boundary.
    return jnp.transpose(out_nhwc[..., :planes], (0, 3, 1, 2))


def _pack_conv_taps(w_oihw, cin_pad, cout_pad):
    """OIHW -> (3, 3*Cin_pad, Cout_pad) bf16 with kx folded into the K dim."""
    cout, cin, kh, kw = w_oihw.shape
    t = jnp.transpose(w_oihw, (2, 3, 1, 0))                         # (ky,kx,ci,co)
    t = jnp.pad(t, ((0, 0), (0, 0), (0, cin_pad - cin), (0, cout_pad - cout)))
    return t.reshape(kh, kw * cin_pad, cout_pad).astype(jnp.bfloat16)


def make_params(key, inplanes, planes):
    k1, k2 = jax.random.split(key)
    # PyTorch Conv2d weight layout: (out_ch, in_ch, kH, kW), bias=False.
    w1_oihw = 0.1 * jax.random.normal(k1, (planes, inplanes, 3, 3), jnp.float32)
    w2_oihw = 0.1 * jax.random.normal(k2, (planes, planes, 3, 3), jnp.float32)
    cin_pad = _round_up(inplanes, LANE)
    cmid_pad = _round_up(planes, LANE)
    gamma = jnp.pad(jnp.ones((planes,), jnp.float32), (0, cmid_pad - planes))
    beta = jnp.zeros((cmid_pad,), jnp.float32)
    params = {
        "w1": _pack_conv_taps(w1_oihw, cin_pad, cmid_pad),
        "w2": _pack_conv_taps(w2_oihw, cmid_pad, cmid_pad),
        "g1": gamma, "b1": beta,      # bn(): weight=1, bias=0 (padded channels: 0)
        "g2": gamma, "b2": beta,
    }
    return params, w1_oihw, w2_oihw


def reference_forward(x_nchw, w1_oihw, w2_oihw):
    """Pure-JAX reference of the PyTorch forward (training-mode BN).

    Conv operands are rounded to bf16 (then back to f32) to mirror the kernel's
    bf16 MXU operands; accumulation and BN math stay f32."""
    q = lambda a: a.astype(jnp.bfloat16).astype(jnp.float32)

    def conv(x, wgt):
        return lax.conv_general_dilated(
            q(x), q(wgt), window_strides=(1, 1), padding=((1, 1), (1, 1)),
            dimension_numbers=("NCHW", "OIHW", "NCHW"))

    def bn_train(x):
        mean = jnp.mean(x, axis=(0, 2, 3), keepdims=True)
        var = jnp.mean(jnp.square(x - mean), axis=(0, 2, 3), keepdims=True)
        return (x - mean) * lax.rsqrt(var + BN_EPS)

    out = bn_train(jnp.maximum(conv(x_nchw, w1_oihw), 0.0))
    out = bn_train(jnp.maximum(conv(out, w2_oihw), 0.0))
    return out


if __name__ == "__main__":
    key = jax.random.PRNGKey(0)
    kparam, kinput = jax.random.split(key)

    inplanes, planes = 4, 8
    N, H, W = 2, 16, 16

    params, w1_oihw, w2_oihw = make_params(kparam, inplanes, planes)
    x = jax.random.normal(kinput, (N, inplanes, H, W), jnp.float32)

    out = jax.block_until_ready(basic_block_forward(x, params, planes=planes))
    assert out.shape == (N, planes, H, W), out.shape

    ref = jax.block_until_ready(reference_forward(x, w1_oihw, w2_oihw))
    # Tolerance sized for bf16 MXU operands + bf16 activation storage between
    # stages (keep activations f32 to recover ~1e-3 agreement with the f32 ref).
    err = float(jnp.max(jnp.abs(out - ref)))
    assert jnp.allclose(out, ref, atol=6e-2, rtol=6e-2), err

    print("KERNEL_OK")
</pallas_src>

<mosaic_0001>
module attributes {stable_mosaic.version = 11 : i64} {
  func.func @_conv_relu_stats_kernel(%arg0: i32, %arg1: i32, %arg2: memref<1x18x48x128xbf16, #tpu.memory_space<vmem>>, %arg3: memref<3x384x128xbf16, #tpu.memory_space<vmem>>, %arg4: memref<1x16x16x128xbf16, #tpu.memory_space<vmem>>, %arg5: memref<1x1x128xf32, #tpu.memory_space<vmem>>, %arg6: memref<1x1x128xf32, #tpu.memory_space<vmem>>) attributes {dimension_semantics = [#tpu.dimension_semantics<parallel>, #tpu.dimension_semantics<arbitrary>], iteration_bounds = array<i64: 2, 1>, scalar_prefetch = 0 : i64, scratch_operands = 0 : i64, tpu.core_type = #tpu.core_type<tc>, window_params = [{transform_indices = @transform_0, window_bounds = array<i64: 1, 18, 48, 128>}, {pipeline_mode = #tpu.pipeline_mode<synchronous>, transform_indices = @transform_1, window_bounds = array<i64: 3, 384, 128>}, {transform_indices = @transform_2, window_bounds = array<i64: 1, 16, 16, 128>}, {transform_indices = @transform_3, window_bounds = array<i64: 1, 1, 128>}, {transform_indices = @transform_4, window_bounds = array<i64: 1, 1, 128>}]} {
    %c16_i32 = arith.constant 16 : i32
    %0 = arith.muli %arg1, %c16_i32 : i32
    %1 = tpu.assume_multiple %0, 16 : i32
    %c0_i32 = arith.constant 0 : i32
    %2 = arith.addi %1, %c0_i32 : i32
    %c0 = arith.constant 0 : index
    %3 = arith.index_cast %2 : i32 to index
    %c0_0 = arith.constant 0 : index
    %c0_1 = arith.constant 0 : index
    %4 = vector.load %arg2[%c0, %3, %c0_0, %c0_1] : memref<1x18x48x128xbf16, #tpu.memory_space<vmem>>, vector<1x16x48x128xbf16>
    %5 = vector.extract_strided_slice %4 {offsets = [0, 0, 15, 0], sizes = [1, 16, 16, 128], strides = [1, 1, 1, 1]} : vector<1x16x48x128xbf16> to vector<1x16x16x128xbf16>
    %6 = vector.extract_strided_slice %4 {offsets = [0, 0, 16, 0], sizes = [1, 16, 16, 128], strides = [1, 1, 1, 1]} : vector<1x16x48x128xbf16> to vector<1x16x16x128xbf16>
    %7 = vector.extract_strided_slice %4 {offsets = [0, 0, 17, 0], sizes = [1, 16, 16, 128], strides = [1, 1, 1, 1]} : vector<1x16x48x128xbf16> to vector<1x16x16x128xbf16>
    %8 = tpu.concatenate %5, %6, %7 in 3 : vector<1x16x16x128xbf16>, vector<1x16x16x128xbf16>, vector<1x16x16x128xbf16> -> vector<1x16x16x384xbf16>
    %9 = vector.shape_cast %8 : vector<1x16x16x384xbf16> to vector<256x384xbf16>
    %c0_2 = arith.constant 0 : index
    %c0_3 = arith.constant 0 : index
    %c0_4 = arith.constant 0 : index
    %10 = vector.load %arg3[%c0_2, %c0_3, %c0_4] : memref<3x384x128xbf16, #tpu.memory_space<vmem>>, vector<1x384x128xbf16>
    %11 = vector.shape_cast %10 : vector<1x384x128xbf16> to vector<384x128xbf16>
    %cst = arith.constant dense<0.000000e+00> : vector<256x128xf32>
    %12 = tpu.matmul %9, %11, %cst {dimension_numbers = #tpu.dot_dimension_numbers<[1], [0], [0], [1], [0, 0, 1, 1], [], []>} : vector<256x384xbf16>, vector<384x128xbf16>, vector<256x128xf32> -> vector<256x128xf32>
    %c1_i32 = arith.constant 1 : i32
    %13 = arith.addi %1, %c1_i32 : i32
    %c0_5 = arith.constant 0 : index
    %14 = arith.index_cast %13 : i32 to index
    %c0_6 = arith.constant 0 : index
    %c0_7 = arith.constant 0 : index
    %15 = vector.load %arg2[%c0_5, %14, %c0_6, %c0_7] : memref<1x18x48x128xbf16, #tpu.memory_space<vmem>>, vector<1x16x48x128xbf16>
    %16 = vector.extract_strided_slice %15 {offsets = [0, 0, 15, 0], sizes = [1, 16, 16, 128], strides = [1, 1, 1, 1]} : vector<1x16x48x128xbf16> to vector<1x16x16x128xbf16>
    %17 = vector.extract_strided_slice %15 {offsets = [0, 0, 16, 0], sizes = [1, 16, 16, 128], strides = [1, 1, 1, 1]} : vector<1x16x48x128xbf16> to vector<1x16x16x128xbf16>
    %18 = vector.extract_strided_slice %15 {offsets = [0, 0, 17, 0], sizes = [1, 16, 16, 128], strides = [1, 1, 1, 1]} : vector<1x16x48x128xbf16> to vector<1x16x16x128xbf16>
    %19 = tpu.concatenate %16, %17, %18 in 3 : vector<1x16x16x128xbf16>, vector<1x16x16x128xbf16>, vector<1x16x16x128xbf16> -> vector<1x16x16x384xbf16>
    %20 = vector.shape_cast %19 : vector<1x16x16x384xbf16> to vector<256x384xbf16>
    %c1 = arith.constant 1 : index
    %c0_8 = arith.constant 0 : index
    %c0_9 = arith.constant 0 : index
    %21 = vector.load %arg3[%c1, %c0_8, %c0_9] : memref<3x384x128xbf16, #tpu.memory_space<vmem>>, vector<1x384x128xbf16>
    %22 = vector.shape_cast %21 : vector<1x384x128xbf16> to vector<384x128xbf16>
    %cst_10 = arith.constant dense<0.000000e+00> : vector<256x128xf32>
    %23 = tpu.matmul %20, %22, %cst_10 {dimension_numbers = #tpu.dot_dimension_numbers<[1], [0], [0], [1], [0, 0, 1, 1], [], []>} : vector<256x384xbf16>, vector<384x128xbf16>, vector<256x128xf32> -> vector<256x128xf32>
    %24 = arith.addf %12, %23 : vector<256x128xf32>
    %c2_i32 = arith.constant 2 : i32
    %25 = arith.addi %1, %c2_i32 : i32
    %c0_11 = arith.constant 0 : index
    %26 = arith.index_cast %25 : i32 to index
    %c0_12 = arith.constant 0 : index
    %c0_13 = arith.constant 0 : index
    %27 = vector.load %arg2[%c0_11, %26, %c0_12, %c0_13] : memref<1x18x48x128xbf16, #tpu.memory_space<vmem>>, vector<1x16x48x128xbf16>
    %28 = vector.extract_strided_slice %27 {offsets = [0, 0, 15, 0], sizes = [1, 16, 16, 128], strides = [1, 1, 1, 1]} : vector<1x16x48x128xbf16> to vector<1x16x16x128xbf16>
    %29 = vector.extract_strided_slice %27 {offsets = [0, 0, 16, 0], sizes = [1, 16, 16, 128], strides = [1, 1, 1, 1]} : vector<1x16x48x128xbf16> to vector<1x16x16x128xbf16>
    %30 = vector.extract_strided_slice %27 {offsets = [0, 0, 17, 0], sizes = [1, 16, 16, 128], strides = [1, 1, 1, 1]} : vector<1x16x48x128xbf16> to vector<1x16x16x128xbf16>
    %31 = tpu.concatenate %28, %29, %30 in 3 : vector<1x16x16x128xbf16>, vector<1x16x16x128xbf16>, vector<1x16x16x128xbf16> -> vector<1x16x16x384xbf16>
    %32 = vector.shape_cast %31 : vector<1x16x16x384xbf16> to vector<256x384xbf16>
    %c2 = arith.constant 2 : index
    %c0_14 = arith.constant 0 : index
    %c0_15 = arith.constant 0 : index
    %33 = vector.load %arg3[%c2, %c0_14, %c0_15] : memref<3x384x128xbf16, #tpu.memory_space<vmem>>, vector<1x384x128xbf16>
    %34 = vector.shape_cast %33 : vector<1x384x128xbf16> to vector<384x128xbf16>
    %cst_16 = arith.constant dense<0.000000e+00> : vector<256x128xf32>
    %35 = tpu.matmul %32, %34, %cst_16 {dimension_numbers = #tpu.dot_dimension_numbers<[1], [0], [0], [1], [0, 0, 1, 1], [], []>} : vector<256x384xbf16>, vector<384x128xbf16>, vector<256x128xf32> -> vector<256x128xf32>
    %36 = arith.addf %24, %35 : vector<256x128xf32>
    %cst_17 = arith.constant 0.000000e+00 : f32
    %37 = vector.broadcast %cst_17 : f32 to vector<256x128xf32>
    %38 = arith.maximumf %36, %37 : vector<256x128xf32>
    %39 = arith.truncf %38 : vector<256x128xf32> to vector<256x128xbf16>
    %40 = vector.shape_cast %39 : vector<256x128xbf16> to vector<1x16x16x128xbf16>
    %c0_18 = arith.constant 0 : index
    %c0_19 = arith.constant 0 : index
    %c0_20 = arith.constant 0 : index
    %c0_21 = arith.constant 0 : index
    %41 = vector.load %arg4[%c0_18, %c0_19, %c0_20, %c0_21] : memref<1x16x16x128xbf16, #tpu.memory_space<vmem>>, vector<1x16x16x128xbf16>
    tpu.vector_store %arg4[%c0_18, %c0_19, %c0_20, %c0_21], %40 {strides = array<i32>} : memref<1x16x16x128xbf16, #tpu.memory_space<vmem>>, vector<1x16x16x128xbf16>,
    %c0_i32_22 = arith.constant 0 : i32
    %42 = arith.cmpi eq, %arg1, %c0_i32_22 : i32
    %43 = arith.extui %42 : i1 to i32
    %c0_i32_23 = arith.constant 0 : i32
    %44 = arith.cmpi ne, %43, %c0_i32_23 : i32
    scf.if %44 {
      %cst_38 = arith.constant 0.000000e+00 : f32
      %56 = vector.broadcast %cst_38 : f32 to vector<1x1x128xf32>
      %c0_39 = arith.constant 0 : index
      %c0_40 = arith.constant 0 : index
      %c0_41 = arith.constant 0 : index
      %57 = vector.load %arg5[%c0_39, %c0_40, %c0_41] : memref<1x1x128xf32, #tpu.memory_space<vmem>>, vector<1x1x128xf32>
      tpu.vector_store %arg5[%c0_39, %c0_40, %c0_41], %56 {strides = array<i32>} : memref<1x1x128xf32, #tpu.memory_space<vmem>>, vector<1x1x128xf32>,
      %cst_42 = arith.constant 0.000000e+00 : f32
      %58 = vector.broadcast %cst_42 : f32 to vector<1x1x128xf32>
      %c0_43 = arith.constant 0 : index
      %c0_44 = arith.constant 0 : index
      %c0_45 = arith.constant 0 : index
      %59 = vector.load %arg6[%c0_43, %c0_44, %c0_45] : memref<1x1x128xf32, #tpu.memory_space<vmem>>, vector<1x1x128xf32>
      tpu.vector_store %arg6[%c0_43, %c0_44, %c0_45], %58 {strides = array<i32>} : memref<1x1x128xf32, #tpu.memory_space<vmem>>, vector<1x1x128xf32>,
    } else {
    }
    %c0_24 = arith.constant 0 : index
    %c0_25 = arith.constant 0 : index
    %c0_26 = arith.constant 0 : index
    %45 = vector.load %arg5[%c0_24, %c0_25, %c0_26] : memref<1x1x128xf32, #tpu.memory_space<vmem>>, vector<1x1x128xf32>
    %cst_27 = arith.constant dense<0.000000e+00> : vector<128xf32>
    %46 = vector.multi_reduction <add>, %38, %cst_27 [0] : vector<256x128xf32> to vector<128xf32>
    %47 = vector.shape_cast %46 : vector<128xf32> to vector<1x1x128xf32>
    %48 = arith.addf %45, %47 : vector<1x1x128xf32>
    %c0_28 = arith.constant 0 : index
    %c0_29 = arith.constant 0 : index
    %c0_30 = arith.constant 0 : index
    %49 = vector.load %arg5[%c0_28, %c0_29, %c0_30] : memref<1x1x128xf32, #tpu.memory_space<vmem>>, vector<1x1x128xf32>
    tpu.vector_store %arg5[%c0_28, %c0_29, %c0_30], %48 {strides = array<i32>} : memref<1x1x128xf32, #tpu.memory_space<vmem>>, vector<1x1x128xf32>,
    %c0_31 = arith.constant 0 : index
    %c0_32 = arith.constant 0 : index
    %c0_33 = arith.constant 0 : index
    %50 = vector.load %arg6[%c0_31, %c0_32, %c0_33] : memref<1x1x128xf32, #tpu.memory_space<vmem>>, vector<1x1x128xf32>
    %51 = arith.mulf %38, %38 : vector<256x128xf32>
    %cst_34 = arith.constant dense<0.000000e+00> : vector<128xf32>
    %52 = vector.multi_reduction <add>, %51, %cst_34 [0] : vector<256x128xf32> to vector<128xf32>
    %53 = vector.shape_cast %52 : vector<128xf32> to vector<1x1x128xf32>
    %54 = arith.addf %50, %53 : vector<1x1x128xf32>
    %c0_35 = arith.constant 0 : index
    %c0_36 = arith.constant 0 : index
    %c0_37 = arith.constant 0 : index
    %55 = vector.load %arg6[%c0_35, %c0_36, %c0_37] : memref<1x1x128xf32, #tpu.memory_space<vmem>>, vector<1x1x128xf32>
    tpu.vector_store %arg6[%c0_35, %c0_36, %c0_37], %54 {strides = array<i32>} : memref<1x1x128xf32, #tpu.memory_space<vmem>>, vector<1x1x128xf32>,
    return
  }
  func.func @transform_0(%arg0: i32, %arg1: i32) -> (i32, i32, i32, i32) {
    %c0_i32 = arith.constant 0 : i32
    %c0_i32_0 = arith.constant 0 : i32
    %c0_i32_1 = arith.constant 0 : i32
    %c0_i32_2 = arith.constant 0 : i32
    return %arg0, %c0_i32, %c0_i32_0, %c0_i32_1 : i32, i32, i32, i32
  }
  func.func @transform_1(%arg0: i32, %arg1: i32) -> (i32, i32, i32) {
    %c0_i32 = arith.constant 0 : i32
    %c0_i32_0 = arith.constant 0 : i32
    %c0_i32_1 = arith.constant 0 : i32
    %c0_i32_2 = arith.constant 0 : i32
    return %c0_i32, %c0_i32_0, %c0_i32_1 : i32, i32, i32
  }
  func.func @transform_2(%arg0: i32, %arg1: i32) -> (i32, i32, i32, i32) {
    %c0_i32 = arith.constant 0 : i32
    %c0_i32_0 = arith.constant 0 : i32
    %c0_i32_1 = arith.constant 0 : i32
    return %arg0, %arg1, %c0_i32, %c0_i32_0 : i32, i32, i32, i32
  }
  func.func @transform_3(%arg0: i32, %arg1: i32) -> (i32, i32, i32) {
    %c0_i32 = arith.constant 0 : i32
    %c0_i32_0 = arith.constant 0 : i32
    %c0_i32_1 = arith.constant 0 : i32
    return %arg0, %c0_i32, %c0_i32_0 : i32, i32, i32
  }
  func.func @transform_4(%arg0: i32, %arg1: i32) -> (i32, i32, i32) {
    %c0_i32 = arith.constant 0 : i32
    %c0_i32_0 = arith.constant 0 : i32
    %c0_i32_1 = arith.constant 0 : i32
    return %arg0, %c0_i32, %c0_i32_0 : i32, i32, i32
  }
}

module attributes {stable_mosaic.version = 11 : i64} {
  func.func @_bn_apply_final_kernel(%arg0: i32, %arg1: i32, %arg2: memref<1x16x16x128xbf16, #tpu.memory_space<vmem>>, %arg3: memref<1x128xf32, #tpu.memory_space<vmem>>, %arg4: memref<1x128xf32, #tpu.memory_space<vmem>>, %arg5: memref<1x16x16x128xf32, #tpu.memory_space<vmem>>) attributes {dimension_semantics = [#tpu.dimension_semantics<parallel>, #tpu.dimension_semantics<parallel>], iteration_bounds = array<i64: 2, 1>, scalar_prefetch = 0 : i64, scratch_operands = 0 : i64, tpu.core_type = #tpu.core_type<tc>, window_params = [{transform_indices = @transform_0, window_bounds = array<i64: 1, 16, 16, 128>}, {pipeline_mode = #tpu.pipeline_mode<synchronous>, transform_indices = @transform_1, window_bounds = array<i64: 1, 128>}, {pipeline_mode = #tpu.pipeline_mode<synchronous>, transform_indices = @transform_2, window_bounds = array<i64: 1, 128>}, {transform_indices = @transform_3, window_bounds = array<i64: 1, 16, 16, 128>}]} {
    %c0 = arith.constant 0 : index
    %c0_0 = arith.constant 0 : index
    %c0_1 = arith.constant 0 : index
    %c0_2 = arith.constant 0 : index
    %0 = vector.load %arg2[%c0, %c0_0, %c0_1, %c0_2] : memref<1x16x16x128xbf16, #tpu.memory_space<vmem>>, vector<1x16x16x128xbf16>
    %1 = arith.extf %0 : vector<1x16x16x128xbf16> to vector<1x16x16x128xf32>
    %2 = vector.shape_cast %1 : vector<1x16x16x128xf32> to vector<256x128xf32>
    %c0_3 = arith.constant 0 : index
    %c0_4 = arith.constant 0 : index
    %3 = vector.load %arg3[%c0_3, %c0_4] : memref<1x128xf32, #tpu.memory_space<vmem>>, vector<1x128xf32>
    %4 = vector.broadcast %3 : vector<1x128xf32> to vector<256x128xf32>
    %5 = arith.mulf %2, %4 : vector<256x128xf32>
    %c0_5 = arith.constant 0 : index
    %c0_6 = arith.constant 0 : index
    %6 = vector.load %arg4[%c0_5, %c0_6] : memref<1x128xf32, #tpu.memory_space<vmem>>, vector<1x128xf32>
    %7 = vector.broadcast %6 : vector<1x128xf32> to vector<256x128xf32>
    %8 = arith.addf %5, %7 : vector<256x128xf32>
    %9 = vector.shape_cast %8 : vector<256x128xf32> to vector<1x16x16x128xf32>
    %c0_7 = arith.constant 0 : index
    %c0_8 = arith.constant 0 : index
    %c0_9 = arith.constant 0 : index
    %c0_10 = arith.constant 0 : index
    %10 = vector.load %arg5[%c0_7, %c0_8, %c0_9, %c0_10] : memref<1x16x16x128xf32, #tpu.memory_space<vmem>>, vector<1x16x16x128xf32>
    tpu.vector_store %arg5[%c0_7, %c0_8, %c0_9, %c0_10], %9 {strides = array<i32>} : memref<1x16x16x128xf32, #tpu.memory_space<vmem>>, vector<1x16x16x128xf32>,
    return
  }
  func.func @transform_0(%arg0: i32, %arg1: i32) -> (i32, i32, i32, i32) {
    %c0_i32 = arith.constant 0 : i32
    %c0_i32_0 = arith.constant 0 : i32
    %c0_i32_1 = arith.constant 0 : i32
    return %arg0, %arg1, %c0_i32, %c0_i32_0 : i32, i32, i32, i32
  }
  func.func @transform_1(%arg0: i32, %arg1: i32) -> (i32, i32) {
    %c0_i32 = arith.constant 0 : i32
    %c0_i32_0 = arith.constant 0 : i32
    %c0_i32_1 = arith.constant 0 : i32
    return %c0_i32, %c0_i32_0 : i32, i32
  }
  func.func @transform_2(%arg0: i32, %arg1: i32) -> (i32, i32) {
    %c0_i32 = arith.constant 0 : i32
    %c0_i32_0 = arith.constant 0 : i32
    %c0_i32_1 = arith.constant 0 : i32
    return %c0_i32, %c0_i32_0 : i32, i32
  }
  func.func @transform_3(%arg0: i32, %arg1: i32) -> (i32, i32, i32, i32) {
    %c0_i32 = arith.constant 0 : i32
    %c0_i32_0 = arith.constant 0 : i32
    %c0_i32_1 = arith.constant 0 : i32
    return %arg0, %arg1, %c0_i32, %c0_i32_0 : i32, i32, i32, i32
  }
}

module attributes {stable_mosaic.version = 11 : i64} {
  func.func @_bn_apply_pad_kernel(%arg0: i32, %arg1: i32, %arg2: memref<1x16x16x128xbf16, #tpu.memory_space<vmem>>, %arg3: memref<1x128xf32, #tpu.memory_space<vmem>>, %arg4: memref<1x128xf32, #tpu.memory_space<vmem>>, %arg5: memref<1x18x48x128xbf16, #tpu.memory_space<vmem>>) attributes {dimension_semantics = [#tpu.dimension_semantics<parallel>, #tpu.dimension_semantics<arbitrary>], iteration_bounds = array<i64: 2, 1>, scalar_prefetch = 0 : i64, scratch_operands = 0 : i64, tpu.core_type = #tpu.core_type<tc>, window_params = [{transform_indices = @transform_0, window_bounds = array<i64: 1, 16, 16, 128>}, {pipeline_mode = #tpu.pipeline_mode<synchronous>, transform_indices = @transform_1, window_bounds = array<i64: 1, 128>}, {pipeline_mode = #tpu.pipeline_mode<synchronous>, transform_indices = @transform_2, window_bounds = array<i64: 1, 128>}, {transform_indices = @transform_3, window_bounds = array<i64: 1, 18, 48, 128>}]} {
    %c0_i32 = arith.constant 0 : i32
    %0 = arith.cmpi eq, %arg1, %c0_i32 : i32
    %1 = arith.extui %0 : i1 to i32
    %c0_i32_0 = arith.constant 0 : i32
    %2 = arith.cmpi ne, %1, %c0_i32_0 : i32
    scf.if %2 {
      %cst = arith.constant 0.000000e+00 : bf16
      %19 = vector.broadcast %cst : bf16 to vector<1x1x48x128xbf16>
      %c0_10 = arith.constant 0 : index
      %c0_11 = arith.constant 0 : index
      %c0_12 = arith.constant 0 : index
      %c0_13 = arith.constant 0 : index
      %20 = vector.load %arg5[%c0_10, %c0_11, %c0_12, %c0_13] : memref<1x18x48x128xbf16, #tpu.memory_space<vmem>>, vector<1x1x48x128xbf16>
      tpu.vector_store %arg5[%c0_10, %c0_11, %c0_12, %c0_13], %19 {strides = array<i32>} : memref<1x18x48x128xbf16, #tpu.memory_space<vmem>>, vector<1x1x48x128xbf16>,
      %c0_14 = arith.constant 0 : index
      %c17 = arith.constant 17 : index
      %c0_15 = arith.constant 0 : index
      %c0_16 = arith.constant 0 : index
      %21 = vector.load %arg5[%c0_14, %c17, %c0_15, %c0_16] : memref<1x18x48x128xbf16, #tpu.memory_space<vmem>>, vector<1x1x48x128xbf16>
      tpu.vector_store %arg5[%c0_14, %c17, %c0_15, %c0_16], %19 {strides = array<i32>} : memref<1x18x48x128xbf16, #tpu.memory_space<vmem>>, vector<1x1x48x128xbf16>,
      %cst_17 = arith.constant 0.000000e+00 : bf16
      %22 = vector.broadcast %cst_17 : bf16 to vector<1x18x16x128xbf16>
      %c0_18 = arith.constant 0 : index
      %c0_19 = arith.constant 0 : index
      %c0_20 = arith.constant 0 : index
      %c0_21 = arith.constant 0 : index
      %23 = vector.load %arg5[%c0_18, %c0_19, %c0_20, %c0_21] : memref<1x18x48x128xbf16, #tpu.memory_space<vmem>>, vector<1x18x16x128xbf16>
      tpu.vector_store %arg5[%c0_18, %c0_19, %c0_20, %c0_21], %22 {strides = array<i32>} : memref<1x18x48x128xbf16, #tpu.memory_space<vmem>>, vector<1x18x16x128xbf16>,
      %cst_22 = arith.constant 0.000000e+00 : bf16
      %24 = vector.broadcast %cst_22 : bf16 to vector<1x18x16x128xbf16>
      %c0_23 = arith.constant 0 : index
      %c0_24 = arith.constant 0 : index
      %c32 = arith.constant 32 : index
      %c0_25 = arith.constant 0 : index
      %25 = vector.load %arg5[%c0_23, %c0_24, %c32, %c0_25] : memref<1x18x48x128xbf16, #tpu.memory_space<vmem>>, vector<1x18x16x128xbf16>
      tpu.vector_store %arg5[%c0_23, %c0_24, %c32, %c0_25], %24 {strides = array<i32>} : memref<1x18x48x128xbf16, #tpu.memory_space<vmem>>, vector<1x18x16x128xbf16>,
    } else {
    }
    %c16_i32 = arith.constant 16 : i32
    %3 = arith.muli %arg1, %c16_i32 : i32
    %4 = tpu.assume_multiple %3, 16 : i32
    %c0 = arith.constant 0 : index
    %c0_1 = arith.constant 0 : index
    %c0_2 = arith.constant 0 : index
    %c0_3 = arith.constant 0 : index
    %5 = vector.load %arg2[%c0, %c0_1, %c0_2, %c0_3] : memref<1x16x16x128xbf16, #tpu.memory_space<vmem>>, vector<1x16x16x128xbf16>
    %6 = arith.extf %5 : vector<1x16x16x128xbf16> to vector<1x16x16x128xf32>
    %7 = vector.shape_cast %6 : vector<1x16x16x128xf32> to vector<256x128xf32>
    %c0_4 = arith.constant 0 : index
    %c0_5 = arith.constant 0 : index
    %8 = vector.load %arg3[%c0_4, %c0_5] : memref<1x128xf32, #tpu.memory_space<vmem>>, vector<1x128xf32>
    %9 = vector.broadcast %8 : vector<1x128xf32> to vector<256x128xf32>
    %10 = arith.mulf %7, %9 : vector<256x128xf32>
    %c0_6 = arith.constant 0 : index
    %c0_7 = arith.constant 0 : index
    %11 = vector.load %arg4[%c0_6, %c0_7] : memref<1x128xf32, #tpu.memory_space<vmem>>, vector<1x128xf32>
    %12 = vector.broadcast %11 : vector<1x128xf32> to vector<256x128xf32>
    %13 = arith.addf %10, %12 : vector<256x128xf32>
    %14 = arith.truncf %13 : vector<256x128xf32> to vector<256x128xbf16>
    %15 = vector.shape_cast %14 : vector<256x128xbf16> to vector<1x16x16x128xbf16>
    %c1_i32 = arith.constant 1 : i32
    %16 = arith.addi %4, %c1_i32 : i32
    %c0_8 = arith.constant 0 : index
    %17 = arith.index_cast %16 : i32 to index
    %c16 = arith.constant 16 : index
    %c0_9 = arith.constant 0 : index
    %18 = vector.load %arg5[%c0_8, %17, %c16, %c0_9] : memref<1x18x48x128xbf16, #tpu.memory_space<vmem>>, vector<1x16x16x128xbf16>
    tpu.vector_store %arg5[%c0_8, %17, %c16, %c0_9], %15 {strides = array<i32>} : memref<1x18x48x128xbf16, #tpu.memory_space<vmem>>, vector<1x16x16x128xbf16>,
    return
  }
  func.func @transform_0(%arg0: i32, %arg1: i32) -> (i32, i32, i32, i32) {
    %c0_i32 = arith.constant 0 : i32
    %c0_i32_0 = arith.constant 0 : i32
    %c0_i32_1 = arith.constant 0 : i32
    return %arg0, %arg1, %c0_i32, %c0_i32_0 : i32, i32, i32, i32
  }
  func.func @transform_1(%arg0: i32, %arg1: i32) -> (i32, i32) {
    %c0_i32 = arith.constant 0 : i32
    %c0_i32_0 = arith.constant 0 : i32
    %c0_i32_1 = arith.constant 0 : i32
    return %c0_i32, %c0_i32_0 : i32, i32
  }
  func.func @transform_2(%arg0: i32, %arg1: i32) -> (i32, i32) {
    %c0_i32 = arith.constant 0 : i32
    %c0_i32_0 = arith.constant 0 : i32
    %c0_i32_1 = arith.constant 0 : i32
    return %c0_i32, %c0_i32_0 : i32, i32
  }
  func.func @transform_3(%arg0: i32, %arg1: i32) -> (i32, i32, i32, i32) {
    %c0_i32 = arith.constant 0 : i32
    %c0_i32_0 = arith.constant 0 : i32
    %c0_i32_1 = arith.constant 0 : i32
    %c0_i32_2 = arith.constant 0 : i32
    return %arg0, %c0_i32, %c0_i32_0, %c0_i32_1 : i32, i32, i32, i32
  }
}

</mosaic_0001>

<bundles_post_ra>
// kernel: basic_block_forward.7
= control target key start
LH: loop header
LB: loop body
LE: loop exit
PB: predicated region body
PF: predicated region fallthrough
CT: control target
= control target key end

     0   :  { %s641_s12 = smov 0   ;;  %s643_s13 = smov 0   ;;  %s800_s0 = inlined_call_operand.vmem [shape: bf16[2,16,16,128], index: 0, kind: input, shape index: {}]   ;;  %s801_s1 = inlined_call_operand.vmem [shape: f32[1,128], index: 1, kind: input, shape index: {}]   ;;  %s802_s2 = inlined_call_operand.vmem [shape: f32[1,128], index: 2, kind: input, shape index: {}]   ;;  %s803_s3 = inlined_call_operand.vmem [shape: f32[2,16,16,128], index: 3, kind: output, shape index: {}]  }
   0x1   :  { %s645_s14 = smov 0  }
   0x2 LB: > { %s25_s15 = sadd.s32 1, %s615_s13  ;;  %p483_p0 = scmp.ge.s32.totalorder %s619_s14, 1  ;;  %s619_s14 = sphi %s645_s14, %s13_s14   ;;  %s615_s13 = sphi %s643_s13, %s805_s13   ;;  %s611_s12 = sphi %s641_s12, %s804_s12  }
   0x3   : > { %p27_p1 = scmp.ge.s32.totalorder %s25_s15, 2  ;;  %p159_p2 = scmp.lt.s32.totalorder %s619_s14, 3 }
   0x5   : > { %s807_s15 = smov (%p27_p1, %s25_s15), 0  ;;  %p160_p3 = pnand %p483_p0, %p159_p2 }
   0x6   : > { %p194_p4 = scmp.lt.s32.totalorder (!%p160_p3), %s611_s12, 1 }
   0x7   : > { %163 = sbr.rel (%p160_p3) target bundleno = 54 (0x36), region = 32 }
   0xc   : > { %s809_s12 = smov (!%p194_p4, %s611_s12), 1  ;;  %v667_v0 = vld [vmem:[%s801_s1] ss:$0 sm:$0xff] }
   0xd   : > { %s490_s16 = sshll.u32 %s809_s12, 7  ;;  %s491_s22 = sshll.u32 %s809_s12, 8  ;;  %v675_v5 = vld [vmem:[%s802_s2] ss:$0 sm:$0xff] }
   0xe   : > { %s662_s19 = scalar_lea.vmem %s800_s0, %s490_s16  ;;  %s685_s27 = scalar_lea.vmem %s803_s3, %s491_s22 }
   0xf   : > { %v493_v1 = vld [vmem:[%s662_s19] sm:$0xff]   ;;  %v556_v2 = vld [vmem:[%s662_s19 + $0x8] sm:$0xff]   ;;  %v557_v3 = vld [vmem:[%s662_s19 + $0x10] sm:$0xff]  }
  0x10   : > { %v494_v4 = vunpack.c.l.bf16 %v493_v1  ;;  %v495_v6 = vunpack.c.h.bf16 %v493_v1  ;;  %v498_v7 = vunpack.c.l.bf16 %v556_v2  ;;  %v499_v8 = vunpack.c.h.bf16 %v556_v2  ;;  %v558_v9 = vld [vmem:[%s662_s19 + $0x18] sm:$0xff]   ;;  %v559_v20 = vld [vmem:[%s662_s19 + $0x20] sm:$0xff]   ;;  %v560_v21 = vld [vmem:[%s662_s19 + $0x28] sm:$0xff]  }
  0x11   : > { %v502_v10 = vunpack.c.l.bf16 %v557_v3  ;;  %v503_v11 = vunpack.c.h.bf16 %v557_v3  ;;  %v506_v12 = vunpack.c.l.bf16 %v558_v9  ;;  %v507_v13 = vunpack.c.h.bf16 %v558_v9  ;;  %v561_v26 = vld [vmem:[%s662_s19 + $0x30] sm:$0xff]   ;;  %v562_v27 = vld [vmem:[%s662_s19 + $0x38] sm:$0xff]   ;;  %v563_v46 = vld [vmem:[%s662_s19 + $0x40] sm:$0xff]  }
  0x12   : > { %v283_v14 = vmul.f32 %v667_v0, %v494_v4  ;;  %v284_v15 = vmul.f32 %v667_v0, %v495_v6  ;;  %v285_v16 = vmul.f32 %v667_v0, %v498_v7  ;;  %v286_v17 = vmul.f32 %v667_v0, %v499_v8  ;;  %v564_v47 = vld [vmem:[%s662_s19 + $0x48] sm:$0xff]   ;;  %v565_v53 = vld [vmem:[%s662_s19 + $0x50] sm:$0xff]   ;;  %v566_v61 = vld [vmem:[%s662_s19 + $0x58] sm:$0xff]  }
  0x13   : > { %v287_v18 = vmul.f32 %v667_v0, %v502_v10  ;;  %v288_v19 = vmul.f32 %v667_v0, %v503_v11  ;;  %v289_v25 = vmul.f32 %v667_v0, %v506_v12  ;;  %v290_v30 = vmul.f32 %v667_v0, %v507_v13  ;;  %v567_v6 = vld [vmem:[%s662_s19 + $0x60] sm:$0xff]   ;;  %v568_v13 = vld [vmem:[%s662_s19 + $0x68] sm:$0xff]  }
  0x14   : > { %v319_v22 = vadd.f32 %v675_v5, %v283_v14  ;;  %v320_v23 = vadd.f32 %v675_v5, %v284_v15  ;;  %v321_v24 = vadd.f32 %v675_v5, %v285_v16  ;;  %v322_v28 = vadd.f32 %v675_v5, %v286_v17 }
  0x15   : > { %v323_v29 = vadd.f32 %v675_v5, %v287_v18  ;;  %v510_v31 = vunpack.c.l.bf16 %v559_v20  ;;  %v511_v32 = vunpack.c.h.bf16 %v559_v20  ;;  %v514_v33 = vunpack.c.l.bf16 %v560_v21  ;;  %v569_v20 = vld [vmem:[%s662_s19 + $0x70] sm:$0xff]  }
  0x16   : > { %351 = vst [vmem:[%s685_s27] sm:$0xff] %v319_v22  ;;  %v515_v34 = vunpack.c.h.bf16 %v560_v21  ;;  %v324_v35 = vadd.f32 %v675_v5, %v288_v19  ;;  %v518_v36 = vunpack.c.l.bf16 %v561_v26  ;;  %v519_v37 = vunpack.c.h.bf16 %v561_v26 }
  0x17   : > { %352 = vst [vmem:[%s685_s27 + $0x8] sm:$0xff] %v320_v23  ;;  %v522_v38 = vunpack.c.l.bf16 %v562_v27  ;;  %v325_v39 = vadd.f32 %v675_v5, %v289_v25  ;;  %v291_v40 = vmul.f32 %v667_v0, %v510_v31  ;;  %v292_v41 = vmul.f32 %v667_v0, %v511_v32 }
  0x18   : > { %353 = vst [vmem:[%s685_s27 + $0x10] sm:$0xff] %v321_v24  ;;  %v293_v42 = vmul.f32 %v667_v0, %v514_v33  ;;  %v326_v43 = vadd.f32 %v675_v5, %v290_v30  ;;  %v294_v44 = vmul.f32 %v667_v0, %v515_v34  ;;  %v523_v45 = vunpack.c.h.bf16 %v562_v27  ;;  %v570_v27 = vld [vmem:[%s662_s19 + $0x78] sm:$0xff]  }
  0x19   : > { %354 = vst [vmem:[%s685_s27 + $0x18] sm:$0xff] %v322_v28  ;;  %v327_v48 = vadd.f32 %v675_v5, %v291_v40  ;;  %v295_v49 = vmul.f32 %v667_v0, %v518_v36  ;;  %v328_v50 = vadd.f32 %v675_v5, %v292_v41  ;;  %v296_v51 = vmul.f32 %v667_v0, %v519_v37 }
  0x1a   : > { %355 = vst [vmem:[%s685_s27 + $0x20] sm:$0xff] %v323_v29  ;;  %v297_v52 = vmul.f32 %v667_v0, %v522_v38  ;;  %v329_v54 = vadd.f32 %v675_v5, %v293_v42  ;;  %v526_v55 = vunpack.c.l.bf16 %v563_v46  ;;  %v527_v56 = vunpack.c.h.bf16 %v563_v46 }
  0x1b   : > { %356 = vst [vmem:[%s685_s27 + $0x28] sm:$0xff] %v324_v35  ;;  %v530_v57 = vunpack.c.l.bf16 %v564_v47  ;;  %v330_v58 = vadd.f32 %v675_v5, %v294_v44  ;;  %v298_v59 = vmul.f32 %v667_v0, %v523_v45  ;;  %v531_v60 = vunpack.c.h.bf16 %v564_v47 }
  0x1c   : > { %357 = vst [vmem:[%s685_s27 + $0x30] sm:$0xff] %v325_v39  ;;  %v331_v62 = vadd.f32 %v675_v5, %v295_v49  ;;  %v299_v63 = vmul.f32 %v667_v0, %v526_v55  ;;  %v534_v1 = vunpack.c.l.bf16 %v565_v53  ;;  %v332_v2 = vadd.f32 %v675_v5, %v296_v51 }
  0x1d   : > { %358 = vst [vmem:[%s685_s27 + $0x38] sm:$0xff] %v326_v43  ;;  %v300_v3 = vmul.f32 %v667_v0, %v527_v56  ;;  %v535_v4 = vunpack.c.h.bf16 %v565_v53  ;;  %v333_v7 = vadd.f32 %v675_v5, %v297_v52  ;;  %v301_v8 = vmul.f32 %v667_v0, %v530_v57 }
  0x1e   : > { %359 = vst [vmem:[%s685_s27 + $0x40] sm:$0xff] %v327_v48  ;;  %v538_v9 = vunpack.c.l.bf16 %v566_v61  ;;  %v334_v10 = vadd.f32 %v675_v5, %v298_v59  ;;  %v302_v11 = vmul.f32 %v667_v0, %v531_v60  ;;  %v539_v12 = vunpack.c.h.bf16 %v566_v61 }
  0x1f   : > { %360 = vst [vmem:[%s685_s27 + $0x48] sm:$0xff] %v328_v50  ;;  %v335_v14 = vadd.f32 %v675_v5, %v299_v63  ;;  %v303_v15 = vmul.f32 %v667_v0, %v534_v1  ;;  %v542_v16 = vunpack.c.l.bf16 %v567_v6  ;;  %v336_v17 = vadd.f32 %v675_v5, %v300_v3 }
  0x20   : > { %361 = vst [vmem:[%s685_s27 + $0x50] sm:$0xff] %v329_v54  ;;  %v304_v18 = vmul.f32 %v667_v0, %v535_v4  ;;  %v543_v19 = vunpack.c.h.bf16 %v567_v6  ;;  %v337_v21 = vadd.f32 %v675_v5, %v301_v8  ;;  %v305_v22 = vmul.f32 %v667_v0, %v538_v9 }
  0x21   : > { %362 = vst [vmem:[%s685_s27 + $0x58] sm:$0xff] %v330_v58  ;;  %v546_v23 = vunpack.c.l.bf16 %v568_v13  ;;  %v338_v24 = vadd.f32 %v675_v5, %v302_v11  ;;  %v306_v25 = vmul.f32 %v667_v0, %v539_v12  ;;  %v547_v26 = vunpack.c.h.bf16 %v568_v13 }
  0x22   : > { %363 = vst [vmem:[%s685_s27 + $0x60] sm:$0xff] %v331_v62  ;;  %v339_v28 = vadd.f32 %v675_v5, %v303_v15  ;;  %v307_v29 = vmul.f32 %v667_v0, %v542_v16  ;;  %v550_v30 = vunpack.c.l.bf16 %v569_v20  ;;  %v340_v31 = vadd.f32 %v675_v5, %v304_v18 }
  0x23   : > { %364 = vst [vmem:[%s685_s27 + $0x68] sm:$0xff] %v332_v2  ;;  %v308_v32 = vmul.f32 %v667_v0, %v543_v19  ;;  %v551_v33 = vunpack.c.h.bf16 %v569_v20  ;;  %v341_v34 = vadd.f32 %v675_v5, %v305_v22  ;;  %v309_v35 = vmul.f32 %v667_v0, %v546_v23 }
  0x24   : > { %365 = vst [vmem:[%s685_s27 + $0x70] sm:$0xff] %v333_v7  ;;  %v554_v36 = vunpack.c.l.bf16 %v570_v27  ;;  %v342_v37 = vadd.f32 %v675_v5, %v306_v25  ;;  %v310_v38 = vmul.f32 %v667_v0, %v547_v26  ;;  %v555_v39 = vunpack.c.h.bf16 %v570_v27 }
  0x25   : > { %366 = vst [vmem:[%s685_s27 + $0x78] sm:$0xff] %v334_v10  ;;  %v343_v40 = vadd.f32 %v675_v5, %v307_v29  ;;  %v311_v41 = vmul.f32 %v667_v0, %v550_v30  ;;  %v344_v42 = vadd.f32 %v675_v5, %v308_v32  ;;  %v312_v43 = vmul.f32 %v667_v0, %v551_v33 }
  0x26   : > { %367 = vst [vmem:[%s685_s27 + $0x80] sm:$0xff] %v335_v14  ;;  %v345_v44 = vadd.f32 %v675_v5, %v309_v35  ;;  %v313_v45 = vmul.f32 %v667_v0, %v554_v36  ;;  %v346_v46 = vadd.f32 %v675_v5, %v310_v38  ;;  %v314_v47 = vmul.f32 %v667_v0, %v555_v39 }
  0x27   : > { %368 = vst [vmem:[%s685_s27 + $0x88] sm:$0xff] %v336_v17  ;;  %v347_v48 = vadd.f32 %v675_v5, %v311_v41  ;;  %v348_v49 = vadd.f32 %v675_v5, %v312_v43 }
  0x28   : > { %369 = vst [vmem:[%s685_s27 + $0x90] sm:$0xff] %v337_v21  ;;  %v349_v50 = vadd.f32 %v675_v5, %v313_v45  ;;  %v350_v51 = vadd.f32 %v675_v5, %v314_v47 }
  0x29   : > { %370 = vst [vmem:[%s685_s27 + $0x98] sm:$0xff] %v338_v24 }
  0x2a   : > { %371 = vst [vmem:[%s685_s27 + $0xa0] sm:$0xff] %v339_v28 }
  0x2b   : > { %372 = vst [vmem:[%s685_s27 + $0xa8] sm:$0xff] %v340_v31 }
  0x2c   : > { %373 = vst [vmem:[%s685_s27 + $0xb0] sm:$0xff] %v341_v34 }
  0x2d   : > { %374 = vst [vmem:[%s685_s27 + $0xb8] sm:$0xff] %v342_v37 }
  0x2e   : > { %375 = vst [vmem:[%s685_s27 + $0xc0] sm:$0xff] %v343_v40 }
  0x2f   : > { %376 = vst [vmem:[%s685_s27 + $0xc8] sm:$0xff] %v344_v42 }
  0x30   : > { %377 = vst [vmem:[%s685_s27 + $0xd0] sm:$0xff] %v345_v44 }
  0x31   : > { %378 = vst [vmem:[%s685_s27 + $0xd8] sm:$0xff] %v346_v46 }
  0x32   : > { %379 = vst [vmem:[%s685_s27 + $0xe0] sm:$0xff] %v347_v48 }
  0x33   : > { %380 = vst [vmem:[%s685_s27 + $0xe8] sm:$0xff] %v348_v49 }
  0x34   : > { %381 = vst [vmem:[%s685_s27 + $0xf0] sm:$0xff] %v349_v50 }
  0x35   : > { %382 = vst [vmem:[%s685_s27 + $0xf8] sm:$0xff] %v350_v51 }
  0x36 PF: > { %s13_s14 = sadd.s32 1, %s619_s14   ;;  %s804_s12 = smov %s615_s13 }
  0x37   : > { %p10_p5 = scmp.ge.s32.totalorder %s13_s14, 4   ;;  %s805_s13 = smov %s807_s15 }
  0x39   :  { %12 = sbr.rel (!%p10_p5) target bundleno = 2 (0x2), region = 62 }

// kernel: basic_block_forward.5
= control target key start
LH: loop header
LB: loop body
LE: loop exit
PB: predicated region body
PF: predicated region fallthrough
CT: control target
= control target key end

     0   :  { %s870_s12 = smov 0   ;;  %s872_s13 = smov 0   ;;  %s1230_s0 = inlined_call_operand.vmem [shape: bf16[2,16,16,128], index: 0, kind: input, shape index: {}]   ;;  %s1231_s1 = inlined_call_operand.vmem [shape: f32[1,128], index: 1, kind: input, shape index: {}]   ;;  %s1232_s2 = inlined_call_operand.vmem [shape: f32[1,128], index: 2, kind: input, shape index: {}]   ;;  %s1233_s3 = inlined_call_operand.vmem [shape: bf16[2,18,48,128], index: 3, kind: output, shape index: {}]  }
   0x1   :  { %s874_s14 = smov 0  }
   0x2 LB: > { %s25_s15 = sadd.s32 1, %s843_s13  ;;  %p577_p0 = scmp.ge.s32.totalorder %s847_s14, 1  ;;  %s847_s14 = sphi %s874_s14, %s13_s14   ;;  %s843_s13 = sphi %s872_s13, %s1235_s13   ;;  %s839_s12 = sphi %s870_s12, %s1234_s12  }
   0x3   : > { %p27_p1 = scmp.ge.s32.totalorder %s25_s15, 2  ;;  %p157_p2 = scmp.lt.s32.totalorder %s847_s14, 3 }
   0x5   : > { %s1237_s15 = smov (%p27_p1, %s25_s15), 0  ;;  %p158_p3 = pnand %p577_p0, %p157_p2 }
   0x6   : > { %p187_p4 = scmp.lt.s32.totalorder (!%p158_p3), %s839_s12, 1 }
   0x7   : > { %161 = sbr.rel (%p158_p3) target bundleno = 116 (0x74), region = 32 }
   0xc   : > { %s1239_s12 = smov (!%p187_p4, %s839_s12), 1  ;;  %v849_v0 = vmov 0   ;;  %v1028_v3 = vld [vmem:[%s1231_s1] ss:$0 sm:$0xff] }
   0xd   : > { %s797_s16 = smul.u32 432, %s1239_s12  ;;  %s621_s20 = sshll.u32 %s1239_s12, 7  ;;  %v1047_v12 = vld [vmem:[%s1232_s2] ss:$0 sm:$0xff] }
   0xe   : > { %s1010_s23 = scalar_lea.vmem %s1230_s0, %s621_s20 }
   0xf   : > { %s894_s19 = scalar_lea.vmem %s1233_s3, %s797_s16  ;;  %v623_v1 = vld [vmem:[%s1010_s23] sm:$0xff]   ;;  %v766_v4 = vld [vmem:[%s1010_s23 + $0x8] sm:$0xff]   ;;  %v767_v5 = vld [vmem:[%s1010_s23 + $0x10] sm:$0xff]  }
  0x10   : > { %207 = vst [vmem:[%s894_s19] sm:$0xf] %v849_v0  ;;  %v624_v2 = vunpack.c.l.bf16 %v623_v1  ;;  %v625_v6 = vunpack.c.h.bf16 %v623_v1  ;;  %v768_v7 = vld [vmem:[%s1010_s23 + $0x18] sm:$0xff]   ;;  %v769_v8 = vld [vmem:[%s1010_s23 + $0x20] sm:$0xff]   ;;  %v628_v9 = vunpack.c.l.bf16 %v766_v4  ;;  %v770_v10 = vld [vmem:[%s1010_s23 + $0x28] sm:$0xff]   ;;  %v629_v13 = vunpack.c.h.bf16 %v766_v4 }
  0x11   : > { %208 = vst [vmem:[%s894_s19 + $0x4] sm:$0xf] %v849_v0  ;;  %v632_v14 = vunpack.c.l.bf16 %v767_v5  ;;  %v633_v15 = vunpack.c.h.bf16 %v767_v5  ;;  %v771_v16 = vld [vmem:[%s1010_s23 + $0x30] sm:$0xff]   ;;  %v636_v17 = vunpack.c.l.bf16 %v768_v7  ;;  %v637_v18 = vunpack.c.h.bf16 %v768_v7  ;;  %v772_v27 = vld [vmem:[%s1010_s23 + $0x38] sm:$0xff]   ;;  %v773_v36 = vld [vmem:[%s1010_s23 + $0x40] sm:$0xff]  }
  0x12   : > { %209 = vst [vmem:[%s894_s19 + $0x8] sm:$0xf] %v849_v0  ;;  %v361_v11 = vmul.f32 %v1028_v3, %v624_v2  ;;  %v640_v19 = vunpack.c.l.bf16 %v769_v8  ;;  %v641_v20 = vunpack.c.h.bf16 %v769_v8  ;;  %v362_v21 = vmul.f32 %v1028_v3, %v625_v6  ;;  %v774_v56 = vld [vmem:[%s1010_s23 + $0x48] sm:$0xff]   ;;  %v775_v61 = vld [vmem:[%s1010_s23 + $0x50] sm:$0xff]   ;;  %v776_v4 = vld [vmem:[%s1010_s23 + $0x58] sm:$0xff]  }
  0x13   : > { %210 = vst [vmem:[%s894_s19 + $0xc] sm:$0xf] %v849_v0  ;;  %v644_v22 = vunpack.c.l.bf16 %v770_v10  ;;  %v645_v23 = vunpack.c.h.bf16 %v770_v10  ;;  %v363_v24 = vmul.f32 %v1028_v3, %v628_v9  ;;  %v648_v25 = vunpack.c.l.bf16 %v771_v16  ;;  %v777_v9 = vld [vmem:[%s1010_s23 + $0x60] sm:$0xff]  }
  0x14   : > { %211 = vst [vmem:[%s894_s19 + $0x10] sm:$0xf] %v849_v0  ;;  %v649_v26 = vunpack.c.h.bf16 %v771_v16  ;;  %v1062_v28 = vadd.f32 %v1047_v12, %v361_v11  ;;  %v364_v29 = vmul.f32 %v1028_v3, %v629_v13  ;;  %v365_v30 = vmul.f32 %v1028_v3, %v632_v14 }
  0x15   : > { %212 = vst [vmem:[%s894_s19 + $0x14] sm:$0xf] %v849_v0  ;;  %v366_v31 = vmul.f32 %v1028_v3, %v633_v15  ;;  %v367_v32 = vmul.f32 %v1028_v3, %v636_v17  ;;  %v368_v33 = vmul.f32 %v1028_v3, %v637_v18  ;;  %v369_v34 = vmul.f32 %v1028_v3, %v640_v19  ;;  %v778_v15 = vld [vmem:[%s1010_s23 + $0x68] sm:$0xff]  }
  0x16   : > { %581 = vst [vmem:[%s894_s19 + $0x198] sm:$0xf] %v849_v0  ;;  %v370_v35 = vmul.f32 %v1028_v3, %v641_v20  ;;  %v1077_v37 = vadd.f32 %v1047_v12, %v362_v21  ;;  %v371_v38 = vmul.f32 %v1028_v3, %v644_v22  ;;  %v372_v39 = vmul.f32 %v1028_v3, %v645_v23  ;;  %v779_v20 = vld [vmem:[%s1010_s23 + $0x70] sm:$0xff]  }
  0x17   : > { %582 = vst [vmem:[%s894_s19 + $0x19c] sm:$0xf] %v849_v0  ;;  %v652_v40 = vunpack.c.l.bf16 %v772_v27  ;;  %v1084_v41 = vadd.f32 %v1047_v12, %v363_v24  ;;  %v373_v42 = vmul.f32 %v1028_v3, %v648_v25  ;;  %v374_v43 = vmul.f32 %v1028_v3, %v649_v26  ;;  %v780_v25 = vld [vmem:[%s1010_s23 + $0x78] sm:$0xff]  }
  0x18   : > { %583 = vst [vmem:[%s894_s19 + $0x1a0] sm:$0xf] %v849_v0  ;;  %v653_v44 = vunpack.c.h.bf16 %v772_v27  ;;  %v1091_v45 = vadd.f32 %v1047_v12, %v364_v29  ;;  %v1094_v46 = vadd.f32 %v1047_v12, %v365_v30  ;;  %v1097_v47 = vadd.f32 %v1047_v12, %v366_v31 }
  0x19   : > { %584 = vst [vmem:[%s894_s19 + $0x1a4] sm:$0xf] %v849_v0  ;;  %v656_v48 = vunpack.c.l.bf16 %v773_v36  ;;  %v1102_v49 = vadd.f32 %v1047_v12, %v367_v32  ;;  %v1105_v50 = vadd.f32 %v1047_v12, %v368_v33  ;;  %v1108_v51 = vadd.f32 %v1047_v12, %v369_v34 }
  0x1a   : > { %585 = vst [vmem:[%s894_s19 + $0x1a8] sm:$0xf] %v849_v0  ;;  %v1111_v52 = vadd.f32 %v1047_v12, %v370_v35  ;;  %v1116_v53 = vadd.f32 %v1047_v12, %v371_v38  ;;  %v1119_v54 = vadd.f32 %v1047_v12, %v372_v39  ;;  %v375_v55 = vmul.f32 %v1028_v3, %v652_v40 }
  0x1b   : > { %586 = vst [vmem:[%s894_s19 + $0x1ac] sm:$0xf] %v849_v0  ;;  %v689_v57 = vpack.c.bf16 %v1077_v37, %v1062_v28  ;;  %v1128_v58 = vadd.f32 %v1047_v12, %v373_v42  ;;  %v1131_v59 = vadd.f32 %v1047_v12, %v374_v43  ;;  %v376_v60 = vmul.f32 %v1028_v3, %v653_v44 }
  0x1c   : > { %220 = vst [vmem:[%s894_s19] sm:$0xf] %v849_v0  ;;  %v694_v62 = vpack.c.bf16 %v1091_v45, %v1084_v41  ;;  %v699_v63 = vpack.c.bf16 %v1097_v47, %v1094_v46  ;;  %v657_v1 = vunpack.c.h.bf16 %v773_v36  ;;  %v377_v2 = vmul.f32 %v1028_v3, %v656_v48 }
  0x1d   : > { %222 = vst [vmem:[%s894_s19 + $0x18] sm:$0xf] %v849_v0  ;;  %v704_v5 = vpack.c.bf16 %v1105_v50, %v1102_v49  ;;  %v709_v6 = vpack.c.bf16 %v1111_v52, %v1108_v51  ;;  %v660_v7 = vunpack.c.l.bf16 %v774_v56  ;;  %v661_v8 = vunpack.c.h.bf16 %v774_v56 }
  0x1e   : > { %223 = vst [vmem:[%s894_s19 + $0x1c] sm:$0xf] %v849_v0  ;;  %v714_v10 = vpack.c.bf16 %v1119_v54, %v1116_v53  ;;  %v1155_v11 = vadd.f32 %v1047_v12, %v375_v55  ;;  %v664_v13 = vunpack.c.l.bf16 %v775_v61  ;;  %v665_v14 = vunpack.c.h.bf16 %v775_v61 }
  0x1f   : > { %224 = vst [vmem:[%s894_s19 + $0x30] sm:$0xf] %v849_v0  ;;  %v719_v16 = vpack.c.bf16 %v1131_v59, %v1128_v58  ;;  %v412_v17 = vadd.f32 %v1047_v12, %v376_v60  ;;  %v668_v18 = vunpack.c.l.bf16 %v776_v4  ;;  %v669_v19 = vunpack.c.h.bf16 %v776_v4 }
  0x20   : > { %225 = vst [vmem:[%s894_s19 + $0x34] sm:$0xf] %v849_v0  ;;  %v378_v21 = vmul.f32 %v1028_v3, %v657_v1  ;;  %v413_v22 = vadd.f32 %v1047_v12, %v377_v2  ;;  %v672_v23 = vunpack.c.l.bf16 %v777_v9  ;;  %v673_v24 = vunpack.c.h.bf16 %v777_v9 }
  0x21   : > { %226 = vst [vmem:[%s894_s19 + $0x48] sm:$0xf] %v849_v0  ;;  %v379_v26 = vmul.f32 %v1028_v3, %v660_v7  ;;  %v380_v27 = vmul.f32 %v1028_v3, %v661_v8  ;;  %v676_v28 = vunpack.c.l.bf16 %v778_v15  ;;  %v677_v29 = vunpack.c.h.bf16 %v778_v15 }
  0x22   : > { %227 = vst [vmem:[%s894_s19 + $0x4c] sm:$0xf] %v849_v0  ;;  %v381_v30 = vmul.f32 %v1028_v3, %v664_v13  ;;  %v382_v31 = vmul.f32 %v1028_v3, %v665_v14  ;;  %v680_v32 = vunpack.c.l.bf16 %v779_v20  ;;  %v681_v33 = vunpack.c.h.bf16 %v779_v20 }
  0x23   : > { %228 = vst [vmem:[%s894_s19 + $0x60] sm:$0xf] %v849_v0  ;;  %v383_v34 = vmul.f32 %v1028_v3, %v668_v18  ;;  %v384_v35 = vmul.f32 %v1028_v3, %v669_v19  ;;  %v684_v36 = vunpack.c.l.bf16 %v780_v25  ;;  %v685_v37 = vunpack.c.h.bf16 %v780_v25 }
  0x24   : > { %229 = vst [vmem:[%s894_s19 + $0x64] sm:$0xf] %v849_v0  ;;  %v724_v38 = vpack.c.bf16 %v412_v17, %v1155_v11  ;;  %v414_v39 = vadd.f32 %v1047_v12, %v378_v21  ;;  %v385_v40 = vmul.f32 %v1028_v3, %v672_v23  ;;  %v386_v41 = vmul.f32 %v1028_v3, %v673_v24 }
  0x25   : > { %230 = vst [vmem:[%s894_s19 + $0x78] sm:$0xf] %v849_v0  ;;  %v416_v42 = vadd.f32 %v1047_v12, %v380_v27  ;;  %v387_v43 = vmul.f32 %v1028_v3, %v676_v28  ;;  %v388_v44 = vmul.f32 %v1028_v3, %v677_v29  ;;  %v417_v45 = vadd.f32 %v1047_v12, %v381_v30 }
  0x26   : > { %231 = vst [vmem:[%s894_s19 + $0x7c] sm:$0xf] %v849_v0  ;;  %v418_v46 = vadd.f32 %v1047_v12, %v382_v31  ;;  %v389_v47 = vmul.f32 %v1028_v3, %v680_v32  ;;  %v390_v48 = vmul.f32 %v1028_v3, %v681_v33  ;;  %v419_v49 = vadd.f32 %v1047_v12, %v383_v34 }
  0x27   : > { %232 = vst [vmem:[%s894_s19 + $0x90] sm:$0xf] %v849_v0  ;;  %v420_v50 = vadd.f32 %v1047_v12, %v384_v35  ;;  %v391_v51 = vmul.f32 %v1028_v3, %v684_v36  ;;  %v392_v52 = vmul.f32 %v1028_v3, %v685_v37  ;;  %v729_v53 = vpack.c.bf16 %v414_v39, %v413_v22 }
  0x28   : > { %233 = vst [vmem:[%s894_s19 + $0x94] sm:$0xf] %v849_v0  ;;  %v421_v54 = vadd.f32 %v1047_v12, %v385_v40  ;;  %v422_v55 = vadd.f32 %v1047_v12, %v386_v41  ;;  %v424_v58 = vadd.f32 %v1047_v12, %v388_v44  ;;  %v739_v59 = vpack.c.bf16 %v418_v46, %v417_v45 }
  0x29   : > { %234 = vst [vmem:[%s894_s19 + $0xa8] sm:$0xf] %v849_v0  ;;  %v425_v3 = vadd.f32 %v1047_v12, %v389_v47  ;;  %v426_v60 = vadd.f32 %v1047_v12, %v390_v48  ;;  %v744_v61 = vpack.c.bf16 %v420_v50, %v419_v49 }
  0x2a   : > { %235 = vst [vmem:[%s894_s19 + $0xac] sm:$0xf] %v849_v0  ;;  %v749_v1 = vpack.c.bf16 %v422_v55, %v421_v54 }
  0x2b   : > { %236 = vst [vmem:[%s894_s19 + $0xc0] sm:$0xf] %v849_v0  ;;  %v759_v4 = vpack.c.bf16 %v426_v60, %v425_v3 }
  0x2c   : > { %237 = vst [vmem:[%s894_s19 + $0xc4] sm:$0xf] %v849_v0 }
  0x2d   : > { %238 = vst [vmem:[%s894_s19 + $0xd8] sm:$0xf] %v849_v0 }
  0x2e   : > { %239 = vst [vmem:[%s894_s19 + $0xdc] sm:$0xf] %v849_v0 }
  0x2f   : > { %240 = vst [vmem:[%s894_s19 + $0xf0] sm:$0xf] %v849_v0 }
  0x30   : > { %241 = vst [vmem:[%s894_s19 + $0xf4] sm:$0xf] %v849_v0 }
  0x31   : > { %242 = vst [vmem:[%s894_s19 + $0x108] sm:$0xf] %v849_v0 }
  0x32   : > { %243 = vst [vmem:[%s894_s19 + $0x10c] sm:$0xf] %v849_v0 }
  0x33   : > { %244 = vst [vmem:[%s894_s19 + $0x120] sm:$0xf] %v849_v0 }
  0x34   : > { %245 = vst [vmem:[%s894_s19 + $0x124] sm:$0xf] %v849_v0 }
  0x35   : > { %246 = vst [vmem:[%s894_s19 + $0x138] sm:$0xf] %v849_v0 }
  0x36   : > { %247 = vst [vmem:[%s894_s19 + $0x13c] sm:$0xf] %v849_v0 }
  0x37   : > { %248 = vst [vmem:[%s894_s19 + $0x150] sm:$0xf] %v849_v0 }
  0x38   : > { %249 = vst [vmem:[%s894_s19 + $0x154] sm:$0xf] %v849_v0 }
  0x39   : > { %250 = vst [vmem:[%s894_s19 + $0x168] sm:$0xf] %v849_v0 }
  0x3a   : > { %251 = vst [vmem:[%s894_s19 + $0x16c] sm:$0xf] %v849_v0 }
  0x3b   : > { %252 = vst [vmem:[%s894_s19 + $0x180] sm:$0xf] %v849_v0 }
  0x3c   : > { %253 = vst [vmem:[%s894_s19 + $0x184] sm:$0xf] %v849_v0 }
  0x3d   : > { %258 = vst [vmem:[%s894_s19 + $0x28] sm:$0xf] %v849_v0 }
  0x3e   : > { %259 = vst [vmem:[%s894_s19 + $0x2c] sm:$0xf] %v849_v0 }
  0x3f   : > { %260 = vst [vmem:[%s894_s19 + $0x40] sm:$0xf] %v849_v0 }
  0x40   : > { %261 = vst [vmem:[%s894_s19 + $0x44] sm:$0xf] %v849_v0 }
  0x41   : > { %262 = vst [vmem:[%s894_s19 + $0x58] sm:$0xf] %v849_v0 }
  0x42   : > { %263 = vst [vmem:[%s894_s19 + $0x5c] sm:$0xf] %v849_v0 }
  0x43   : > { %264 = vst [vmem:[%s894_s19 + $0x70] sm:$0xf] %v849_v0 }
  0x44   : > { %265 = vst [vmem:[%s894_s19 + $0x74] sm:$0xf] %v849_v0 }
  0x45   : > { %266 = vst [vmem:[%s894_s19 + $0x88] sm:$0xf] %v849_v0 }
  0x46   : > { %267 = vst [vmem:[%s894_s19 + $0x8c] sm:$0xf] %v849_v0 }
  0x47   : > { %268 = vst [vmem:[%s894_s19 + $0xa0] sm:$0xf] %v849_v0 }
  0x48   : > { %269 = vst [vmem:[%s894_s19 + $0xa4] sm:$0xf] %v849_v0 }
  0x49   : > { %270 = vst [vmem:[%s894_s19 + $0xb8] sm:$0xf] %v849_v0 }
  0x4a   : > { %271 = vst [vmem:[%s894_s19 + $0xbc] sm:$0xf] %v849_v0 }
  0x4b   : > { %272 = vst [vmem:[%s894_s19 + $0xd0] sm:$0xf] %v849_v0 }
  0x4c   : > { %273 = vst [vmem:[%s894_s19 + $0xd4] sm:$0xf] %v849_v0 }
  0x4d   : > { %274 = vst [vmem:[%s894_s19 + $0xe8] sm:$0xf] %v849_v0 }
  0x4e   : > { %275 = vst [vmem:[%s894_s19 + $0xec] sm:$0xf] %v849_v0 }
  0x4f   : > { %276 = vst [vmem:[%s894_s19 + $0x100] sm:$0xf] %v849_v0 }
  0x50   : > { %277 = vst [vmem:[%s894_s19 + $0x104] sm:$0xf] %v849_v0 }
  0x51   : > { %278 = vst [vmem:[%s894_s19 + $0x118] sm:$0xf] %v849_v0 }
  0x52   : > { %279 = vst [vmem:[%s894_s19 + $0x11c] sm:$0xf] %v849_v0 }
  0x53   : > { %280 = vst [vmem:[%s894_s19 + $0x130] sm:$0xf] %v849_v0 }
  0x54   : > { %281 = vst [vmem:[%s894_s19 + $0x134] sm:$0xf] %v849_v0 }
  0x55   : > { %282 = vst [vmem:[%s894_s19 + $0x148] sm:$0xf] %v849_v0 }
  0x56   : > { %283 = vst [vmem:[%s894_s19 + $0x14c] sm:$0xf] %v849_v0 }
  0x57   : > { %284 = vst [vmem:[%s894_s19 + $0x160] sm:$0xf] %v849_v0 }
  0x58   : > { %285 = vst [vmem:[%s894_s19 + $0x164] sm:$0xf] %v849_v0 }
  0x59   : > { %286 = vst [vmem:[%s894_s19 + $0x178] sm:$0xf] %v849_v0 }
  0x5a   : > { %287 = vst [vmem:[%s894_s19 + $0x17c] sm:$0xf] %v849_v0 }
  0x5b   : > { %288 = vst [vmem:[%s894_s19 + $0x190] sm:$0xf] %v849_v0 }
  0x5c   : > { %289 = vst [vmem:[%s894_s19 + $0x194] sm:$0xf] %v849_v0 }
  0x5d   : > { %221 = vst [vmem:[%s894_s19 + $0x4] sm:$0xf] %v849_v0 }
  0x5e   : > { %254 = vst [vmem:[%s894_s19 + $0x198] sm:$0xf] %v849_v0 }
  0x5f   : > { %255 = vst [vmem:[%s894_s19 + $0x19c] sm:$0xf] %v849_v0 }
  0x60   : > { %256 = vst [vmem:[%s894_s19 + $0x10] sm:$0xf] %v849_v0 }
  0x61   : > { %257 = vst [vmem:[%s894_s19 + $0x14] sm:$0xf] %v849_v0 }
  0x62   : > { %290 = vst [vmem:[%s894_s19 + $0x1a8] sm:$0xf] %v849_v0 }
  0x63   : > { %291 = vst [vmem:[%s894_s19 + $0x1ac] sm:$0xf] %v849_v0  ;;  %v415_v0 = vadd.f32 %v1047_v12, %v379_v26 }
  0x64   : > { %781 = vst [vmem:[%s894_s19 + $0x20] sm:$0xff] %v689_v57   ;;  %v423_v57 = vadd.f32 %v1047_v12, %v387_v43 }
  0x65   : > { %782 = vst [vmem:[%s894_s19 + $0x38] sm:$0xff] %v694_v62   ;;  %v734_v56 = vpack.c.bf16 %v416_v42, %v415_v0  ;;  %v427_v62 = vadd.f32 %v1047_v12, %v391_v51 }
  0x66   : > { %783 = vst [vmem:[%s894_s19 + $0x50] sm:$0xff] %v699_v63   ;;  %v428_v63 = vadd.f32 %v1047_v12, %v392_v52  ;;  %v754_v2 = vpack.c.bf16 %v424_v58, %v423_v57 }
  0x67   : > { %784 = vst [vmem:[%s894_s19 + $0x68] sm:$0xff] %v704_v5  }
  0x68   : > { %785 = vst [vmem:[%s894_s19 + $0x80] sm:$0xff] %v709_v6   ;;  %v764_v5 = vpack.c.bf16 %v428_v63, %v427_v62 }
  0x69   : > { %786 = vst [vmem:[%s894_s19 + $0x98] sm:$0xff] %v714_v10  }
  0x6a   : > { %787 = vst [vmem:[%s894_s19 + $0xb0] sm:$0xff] %v719_v16  }
  0x6b   : > { %788 = vst [vmem:[%s894_s19 + $0xc8] sm:$0xff] %v724_v38  }
  0x6c   : > { %789 = vst [vmem:[%s894_s19 + $0xe0] sm:$0xff] %v729_v53  }
  0x6d   : > { %790 = vst [vmem:[%s894_s19 + $0xf8] sm:$0xff] %v734_v56  }
  0x6e   : > { %791 = vst [vmem:[%s894_s19 + $0x110] sm:$0xff] %v739_v59  }
  0x6f   : > { %792 = vst [vmem:[%s894_s19 + $0x128] sm:$0xff] %v744_v61  }
  0x70   : > { %793 = vst [vmem:[%s894_s19 + $0x140] sm:$0xff] %v749_v1  }
  0x71   : > { %794 = vst [vmem:[%s894_s19 + $0x158] sm:$0xff] %v754_v2  }
  0x72   : > { %795 = vst [vmem:[%s894_s19 + $0x170] sm:$0xff] %v759_v4  }
  0x73   : > { %796 = vst [vmem:[%s894_s19 + $0x188] sm:$0xff] %v764_v5  }
  0x74 PF: > { %s13_s14 = sadd.s32 1, %s847_s14   ;;  %s1234_s12 = smov %s843_s13 }
  0x75   : > { %p10_p5 = scmp.ge.s32.totalorder %s13_s14, 4   ;;  %s1235_s13 = smov %s1237_s15 }
  0x77   :  { %12 = sbr.rel (!%p10_p5) target bundleno = 2 (0x2), region = 68 }

// kernel: basic_block_forward.4
= control target key start
LH: loop header
LB: loop body
LE: loop exit
PB: predicated region body
PF: predicated region fallthrough
CT: control target
= control target key end

     0   :  { %s6827_s15 = smov 0   ;;  %s6829_s16 = smov 0   ;;  %s8350_s0 = inlined_call_operand.vmem [shape: bf16[2,18,48,128], index: 0, kind: input, shape index: {}]   ;;  %s8351_s1 = inlined_call_operand.vmem [shape: bf16[3,384,128], index: 1, kind: input, shape index: {}]   ;;  %s8352_s2 = inlined_call_operand.vmem [shape: bf16[2,16,16,128], index: 2, kind: output, shape index: {0}]   ;;  %s8353_s3 = inlined_call_operand.vmem [shape: f32[2,1,128], index: 3, kind: output, shape index: {1}]   ;;  %s8354_s4 = inlined_call_operand.vmem [shape: f32[2,1,128], index: 4, kind: output, shape index: {2}]  }
   0x1   :  { %s6831_s17 = smov 0  }
   0x2 LB: > { %s27_s18 = sadd.s32 1, %s6795_s16  ;;  %p5534_p0 = scmp.ge.s32.totalorder %s6799_s17, 1  ;;  %s6799_s17 = sphi %s6831_s17, %s15_s17   ;;  %s6795_s16 = sphi %s6829_s16, %s8407_s16   ;;  %s6791_s15 = sphi %s6827_s15, %s8406_s15  }
   0x3   : > { %p29_p1 = scmp.ge.s32.totalorder %s27_s18, 2  ;;  %p181_p2 = scmp.lt.s32.totalorder %s6799_s17, 3 }
   0x5   : > { %s8409_s18 = smov (%p29_p1, %s27_s18), 0  ;;  %p182_p3 = pnand %p5534_p0, %p181_p2 }
   0x7   : > { %185 = sbr.rel (%p182_p3) target bundleno = 772 (0x304), region = 28 }
   0xc   : > { %v6084_v0 = vld [vmem:[%s8351_s1 + $0xf8] sm:$0xff]  ;;  %p218_p4 = scmp.lt.s32.totalorder %s6791_s15, 1  ;;  %v6083_v1 = vld [vmem:[%s8351_s1 + $0xf0] sm:$0xff]  ;;  %v6082_v2 = vld [vmem:[%s8351_s1 + $0xe8] sm:$0xff]  ;;  %vm677_vm0 = vsmask.f32 4352 }
   0xd   : > { %2827 = vmatpush.bf16.msra.mxu0 %v6084_v0  ;;  %6652 = vmatpush.bf16.msra.mxu1 %v6084_v0  ;;  %v6081_v8 = vld [vmem:[%s8351_s1 + $0xe0] sm:$0xff]  ;;  %v6080_v16 = vld [vmem:[%s8351_s1 + $0xd8] sm:$0xff]  ;;  %v6079_v29 = vld [vmem:[%s8351_s1 + $0xd0] sm:$0xff]  ;;  %vm628_vm1 = vcmask 1042432  }
   0xe   : > { %s8411_s15 = smov (!%p218_p4, %s6791_s15), 1  ;;  %6653 = vmatpush.bf16.msra.mxu2 %v6084_v0  ;;  %6654 = vmatpush.bf16.msra.mxu3 %v6084_v0  ;;  %v6078_v47 = vld [vmem:[%s8351_s1 + $0xc8] sm:$0xff]  ;;  %v6077_v62 = vld [vmem:[%s8351_s1 + $0xc0] sm:$0xff] }
   0xf   : > { %s6724_s23 = smul.u32 432, %s8411_s15  ;;  %s6052_s19 = sshll.u32 %s8411_s15, 7 }
  0x10   : > { %s8083_s22 = scalar_lea.vmem %s8352_s2, %s6052_s19  ;;  %s8320_s24 = scalar_lea.vmem %s8353_s3, %s8411_s15 }
  0x11   : > { %2828 = vmatpush.bf16.msra.mxu0 %v6083_v1  ;;  %6655 = vmatpush.bf16.msra.mxu1 %v6083_v1  ;;  %s6860_s28 = scalar_lea.vmem %s8350_s0, %s6724_s23  ;;  %s8326_s27 = scalar_lea.vmem %s8354_s4, %s8411_s15 }
  0x12   : > { %6656 = vmatpush.bf16.msra.mxu2 %v6083_v1  ;;  %6657 = vmatpush.bf16.msra.mxu3 %v6083_v1  ;;  %v6863_v3 = vld [vmem:[%s6860_s28 + $0x20] sm:$0xff]   ;;  %v6883_v46 = vld [vmem:[%s6860_s28 + $0x38] sm:$0xff]  }
  0x13   : > { %v6417_v4 = vld [vmem:[%s6860_s28 + $0x80] sm:$0xff]   ;;  %v6192_v6 = vunpack.c.h.b16 %v6863_v3  ;;  %v6418_v52 = vld [vmem:[%s6860_s28 + $0x98] sm:$0xff]   ;;  %v6196_v58 = vunpack.c.h.b16 %v6883_v46 }
  0x14   : > { %v6421_v5 = vld [vmem:[%s6860_s28 + $0xe0] sm:$0xff]   ;;  %v6208_v7 = vunpack.c.h.b16 %v6417_v4  ;;  %v6422_v57 = vld [vmem:[%s6860_s28 + $0xf8] sm:$0xff]   ;;  %v6212_v61 = vunpack.c.h.b16 %v6418_v52 }
  0x15   : > { %2829 = vmatpush.bf16.msra.mxu0 %v6082_v2  ;;  %6658 = vmatpush.bf16.msra.mxu1 %v6082_v2  ;;  %v6224_v9 = vunpack.c.h.b16 %v6421_v5  ;;  %v6692_v10 = vld [vmem:[%s6860_s28 + $0x1c] sm:$0xff]   ;;  %v1627_v13 = vpack.c.b16 %v6192_v6, %v6192_v6 }
  0x16   : > { %6659 = vmatpush.bf16.msra.mxu2 %v6082_v2  ;;  %6660 = vmatpush.bf16.msra.mxu3 %v6082_v2  ;;  %v6696_v11 = vld [vmem:[%s6860_s28 + $0x7c] sm:$0xff]   ;;  %v1635_v14 = vpack.c.b16 %v6208_v7, %v6208_v7  ;;  %v1899_v18 = vshrl.u32 %v6692_v10, 16  ;;  %v1902_v19 = vshll.u32 %v6692_v10, 16  ;;  %v6228_v2 = vunpack.c.h.b16 %v6422_v57  ;;  %v6693_v10 = vld [vmem:[%s6860_s28 + $0x34] sm:$0xff]  }
  0x17   : > { %v6700_v12 = vld [vmem:[%s6860_s28 + $0xdc] sm:$0xff]   ;;  %v1643_v17 = vpack.c.b16 %v6224_v9, %v6224_v9  ;;  %v2071_v21 = vshrl.u32 %v6696_v11, 16  ;;  %v2074_v22 = vshll.u32 %v6696_v11, 16  ;;  %v1907_v25 = vshrl.u32 %v1627_v13, 16 }
  0x18   : > { %v6425_v15 = vld [vmem:[%s6860_s28 + $0x140] sm:$0xff]   ;;  %v2243_v23 = vshrl.u32 %v6700_v12, 16  ;;  %v1910_v26 = vshll.u32 %v1627_v13, 16  ;;  %v2079_v27 = vshrl.u32 %v1635_v14, 16  ;;  %v2082_v28 = vshll.u32 %v1635_v14, 16  ;;  %v6426_v4 = vld [vmem:[%s6860_s28 + $0x158] sm:$0xff]  }
  0x19   : > { %2830 = vmatpush.bf16.msra.mxu0 %v6081_v8  ;;  %6661 = vmatpush.bf16.msra.mxu1 %v6081_v8  ;;  %v6704_v20 = vld [vmem:[%s6860_s28 + $0x13c] sm:$0xff]   ;;  %v6240_v24 = vunpack.c.h.b16 %v6425_v15  ;;  %v2246_v30 = vshll.u32 %v6700_v12, 16  ;;  %v2251_v31 = vshrl.u32 %v1643_v17, 16  ;;  %v2254_v32 = vshll.u32 %v1643_v17, 16  ;;  %v6697_v12 = vld [vmem:[%s6860_s28 + $0x94] sm:$0xff]  }
  0x1a   : > { %6662 = vmatpush.bf16.msra.mxu2 %v6081_v8  ;;  %6663 = vmatpush.bf16.msra.mxu3 %v6081_v8  ;;  %v1901_v34 = vrot.slane %v1899_v18, 3  ;;  %v1904_v35 = vrot.slane %v1902_v19, 4  ;;  %v2415_v36 = vshrl.u32 %v6704_v20, 16  ;;  %v2418_v37 = vshll.u32 %v6704_v20, 16  ;;  %v6100_v8 = vld [vmem:[%s8351_s1 + $0x178] sm:$0xff] }
  0x1b   : > { %v1651_v33 = vpack.c.b16 %v6240_v24, %v6240_v24  ;;  %v2073_v38 = vrot.slane %v2071_v21, 3  ;;  %v2076_v39 = vrot.slane %v2074_v22, 4  ;;  %v1909_v42 = vrot.slane %v1907_v25, 3  ;;  %v6060_v9 = vld [vmem:[%s8351_s1 + $0x38] sm:$0xff]  ;;  %v6099_v25 = vld [vmem:[%s8351_s1 + $0x170] sm:$0xff] }
  0x1c   : > { %v1912_v43 = vrot.slane %v1910_v26, 4  ;;  %v2081_v44 = vrot.slane %v2079_v27, 3  ;;  %v2245_v45 = vrot.slane %v2243_v23, 3  ;;  %v2084_v48 = vrot.slane %v2082_v28, 4  ;;  %v6701_v17 = vld [vmem:[%s6860_s28 + $0xf4] sm:$0xff]  }
  0x1d   : > { %2831 = vmatpush.bf16.msra.mxu0 %v6080_v16  ;;  %6664 = vmatpush.bf16.msra.mxu1 %v6080_v16  ;;  %v2423_v40 = vshrl.u32 %v1651_v33, 16  ;;  %v2426_v41 = vshll.u32 %v1651_v33, 16  ;;  %v2248_v49 = vrot.slane %v2246_v30, 4  ;;  %v2253_v50 = vrot.slane %v2251_v31, 3  ;;  %v6092_v21 = vld [vmem:[%s8351_s1 + $0x138] sm:$0xff]  ;;  %v6059_v26 = vld [vmem:[%s8351_s1 + $0x30] sm:$0xff] }
  0x1e   : > { %6665 = vmatpush.bf16.msra.mxu2 %v6080_v16  ;;  %6666 = vmatpush.bf16.msra.mxu3 %v6080_v16  ;;  %v2256_v51 = vrot.slane %v2254_v32, 4  ;;  %v2417_v53 = vrot.slane %v2415_v36, 3  ;;  %v2420_v54 = vrot.slane %v2418_v37, 4  ;;  %v1905_v59 = vor.u32 %v1904_v35, %v1901_v34  ;;  %v6068_v22 = vld [vmem:[%s8351_s1 + $0x78] sm:$0xff] }
  0x1f   : > { %v2425_v55 = vrot.slane %v2423_v40, 3  ;;  %v2428_v56 = vrot.slane %v2426_v41, 4  ;;  %v2077_v60 = vor.u32 %v2076_v39, %v2073_v38  ;;  %v1913_v63 = vor.u32 %v1912_v43, %v1909_v42  ;;  %v6705_v23 = vld [vmem:[%s6860_s28 + $0x154] sm:$0xff]  }
  0x20   : > { %v2085_v0 = vor.u32 %v2084_v48, %v2081_v44  ;;  %v2249_v1 = vor.u32 %v2248_v49, %v2245_v45  ;;  %v2257_v5 = vor.u32 %v2256_v51, %v2253_v50  ;;  %v2421_v6 = vor.u32 %v2420_v54, %v2417_v53  ;;  %v6091_v43 = vld [vmem:[%s8351_s1 + $0x130] sm:$0xff]  ;;  %v6098_v50 = vld [vmem:[%s8351_s1 + $0x168] sm:$0xff] }
  0x21   : > { %2832 = vmatpush.bf16.msra.mxu0 %v6079_v29  ;;  %6667 = vmatpush.bf16.msra.mxu1 %v6079_v29  ;;  %v2429_v7 = vor.u32 %v2428_v56, %v2425_v55  ;;  %v1629_v11 = vpack.c.b16 %v6196_v58, %v6196_v58  ;;  %v1637_v13 = vpack.c.b16 %v6212_v61, %v6212_v61  ;;  %v6244_v14 = vunpack.c.h.b16 %v6426_v4  ;;  %v6067_v44 = vld [vmem:[%s8351_s1 + $0x70] sm:$0xff]  ;;  %v6058_v51 = vld [vmem:[%s8351_s1 + $0x28] sm:$0xff] }
  0x22   : > { %6668 = vmatpush.bf16.msra.mxu2 %v6079_v29  ;;  %6669 = vmatpush.bf16.msra.mxu3 %v6079_v29  ;;  %v1914_v15 = vsel %vm677_vm0, %v1905_v59, %v1913_v63  ;;  %v2086_v16 = vsel %vm677_vm0, %v2077_v60, %v2085_v0  ;;  %v1645_v18 = vpack.c.b16 %v6228_v2, %v6228_v2  ;;  %v1942_v27 = vshrl.u32 %v6693_v10, 16  ;;  %v6934_v56 = vld [vmem:[%s6860_s28 + $0x50] sm:$0xff]   ;;  %v6090_v61 = vld [vmem:[%s8351_s1 + $0x128] sm:$0xff] }
  0x23   : > { %v2258_v19 = vsel %vm677_vm0, %v2249_v1, %v2257_v5  ;;  %v2430_v20 = vsel %vm677_vm0, %v2421_v6, %v2429_v7  ;;  %v1653_v24 = vpack.c.b16 %v6244_v14, %v6244_v14  ;;  %v1945_v28 = vshll.u32 %v6693_v10, 16  ;;  %v6066_v4 = vld [vmem:[%s8351_s1 + $0x68] sm:$0xff]  ;;  %v6423_v5 = vld [vmem:[%s6860_s28 + $0x110] sm:$0xff]   ;;  %v6097_v6 = vld [vmem:[%s8351_s1 + $0x160] sm:$0xff] }
  0x24   : > { %v1950_v29 = vshrl.u32 %v1629_v11, 16  ;;  %v1953_v30 = vshll.u32 %v1629_v11, 16  ;;  %v2114_v31 = vshrl.u32 %v6697_v12, 16  ;;  %v2117_v32 = vshll.u32 %v6697_v12, 16  ;;  %v6057_v7 = vld [vmem:[%s8351_s1 + $0x20] sm:$0xff] }
  0x25   : > { %2833 = vmatpush.bf16.msra.mxu0 %v6078_v47  ;;  %6670 = vmatpush.bf16.msra.mxu1 %v6078_v47  ;;  %v2122_v33 = vshrl.u32 %v1637_v13, 16  ;;  %v2125_v34 = vshll.u32 %v1637_v13, 16  ;;  %v2286_v35 = vshrl.u32 %v6701_v17, 16  ;;  %v2289_v36 = vshll.u32 %v6701_v17, 16 }
  0x26   : > { %6671 = vmatpush.bf16.msra.mxu2 %v6078_v47  ;;  %6672 = vmatpush.bf16.msra.mxu3 %v6078_v47  ;;  %v2294_v37 = vshrl.u32 %v1645_v18, 16  ;;  %v2297_v38 = vshll.u32 %v1645_v18, 16  ;;  %v2458_v39 = vshrl.u32 %v6705_v23, 16  ;;  %v2461_v40 = vshll.u32 %v6705_v23, 16  ;;  %v6065_v23 = vld [vmem:[%s8351_s1 + $0x60] sm:$0xff] }
  0x27   : > { %v2466_v41 = vshrl.u32 %v1653_v24, 16  ;;  %v2469_v42 = vshll.u32 %v1653_v24, 16  ;;  %v1944_v45 = vrot.slane %v1942_v27, 3  ;;  %v1947_v47 = vrot.slane %v1945_v28, 4  ;;  %v6056_v27 = vld [vmem:[%s8351_s1 + $0x18] sm:$0xff] }
  0x28   : > { %v1952_v48 = vrot.slane %v1950_v29, 3  ;;  %v1955_v49 = vrot.slane %v1953_v30, 4  ;;  %v2116_v52 = vrot.slane %v2114_v31, 3  ;;  %v2119_v53 = vrot.slane %v2117_v32, 4  ;;  %v6702_v29 = vld [vmem:[%s6860_s28 + $0x10c] sm:$0xff]  }
  0x29   : > { %2834 = vmatpush.bf16.msra.mxu0 %v6077_v62  ;;  %6673 = vmatpush.bf16.msra.mxu1 %v6077_v62  ;;  %v2124_v54 = vrot.slane %v2122_v33, 3  ;;  %v2127_v55 = vrot.slane %v2125_v34, 4  ;;  %v2288_v57 = vrot.slane %v2286_v35, 3  ;;  %v2291_v58 = vrot.slane %v2289_v36, 4  ;;  %v6706_v36 = vld [vmem:[%s6860_s28 + $0x16c] sm:$0xff]  }
  0x2a   : > { %6674 = vmatpush.bf16.msra.mxu2 %v6077_v62  ;;  %6675 = vmatpush.bf16.msra.mxu3 %v6077_v62  ;;  %v2296_v59 = vrot.slane %v2294_v37, 3  ;;  %v2299_v60 = vrot.slane %v2297_v38, 4  ;;  %v6940_v62 = vld [vmem:[%s6860_s28 + $0xb0] sm:$0xff]   ;;  %v2460_v63 = vrot.slane %v2458_v39, 3  ;;  %v2463_v0 = vrot.slane %v2461_v40, 4  ;;  %v6088_v38 = vld [vmem:[%s8351_s1 + $0x118] sm:$0xff] }
  0x2b   : > { %v2468_v1 = vrot.slane %v2466_v41, 3  ;;  %v2471_v2 = vrot.slane %v2469_v42, 4  ;;  %v1948_v10 = vor.u32 %v1947_v47, %v1944_v45  ;;  %v6954_v11 = vor.u32 %v1955_v49, %v1952_v48  ;;  %v6064_v39 = vld [vmem:[%s8351_s1 + $0x58] sm:$0xff]  ;;  %v6055_v45 = vld [vmem:[%s8351_s1 + $0x10] sm:$0xff] }
  0x2c   : > { %2835 = vmatmul.bf16.vlgmr.msra.gmra.mxu0 %v1914_v15  ;;  %2855 = vmatmul.bf16.vlgmr.msra.gmra.mxu1 %v2086_v16  ;;  %v6216_v12 = vunpack.c.h.b16 %v6940_v62  ;;  %v2120_v13 = vor.u32 %v2119_v53, %v2116_v52  ;;  %v2128_v14 = vor.u32 %v2127_v55, %v2124_v54  ;;  %v2292_v15 = vor.u32 %v2291_v58, %v2288_v57  ;;  %v6694_v16 = vld [vmem:[%s6860_s28 + $0x4c] sm:$0xff]  }
  0x2d   : > { %2875 = vmatmul.bf16.vlgmr.msra.gmra.mxu2 %v2258_v19  ;;  %2895 = vmatmul.bf16.vlgmr.msra.gmra.mxu3 %v2430_v20  ;;  %v6232_v17 = vunpack.c.h.b16 %v6423_v5  ;;  %v2300_v18 = vor.u32 %v2299_v60, %v2296_v59  ;;  %v2464_v19 = vor.u32 %v2463_v0, %v2460_v63  ;;  %v2472_v20 = vor.u32 %v2471_v2, %v2468_v1  ;;  %v6993_v55 = vld [vmem:[%s6860_s28 + $0x68] sm:$0xff]   ;;  %v6063_v63 = vld [vmem:[%s8351_s1 + $0x50] sm:$0xff] }
  0x2e   : > { %3005 = vmatpush.bf16.msrb.mxu2 %v6100_v8  ;;  %3238 = vmatpush.bf16.msrb.mxu3 %v6060_v9  ;;  %v6200_v8 = vunpack.c.h.b16 %v6934_v56  ;;  %v6427_v9 = vld [vmem:[%s6860_s28 + $0x170] sm:$0xff]   ;;  %v1639_v28 = vpack.c.b16 %v6216_v12, %v6216_v12  ;;  %v1957_v30 = vsel %vm677_vm0, %v1948_v10, %v6954_v11  ;;  %v2129_v31 = vsel %vm677_vm0, %v2120_v13, %v2128_v14  ;;  %v6094_v5 = vld [vmem:[%s8351_s1 + $0x148] sm:$0xff] }
  0x2f   : > { %2916 = vmatpush.bf16.msrb.mxu1 %v6092_v21  ;;  %3327 = vmatpush.bf16.msrb.mxu0 %v6068_v22  ;;  %v6248_v21 = vunpack.c.h.b16 %v6427_v9  ;;  %v6089_v22 = vld [vmem:[%s8351_s1 + $0x120] sm:$0xff]  ;;  %v1985_v32 = vshrl.u32 %v6694_v16, 16  ;;  %v1647_v33 = vpack.c.b16 %v6232_v17, %v6232_v17  ;;  %v2301_v34 = vsel %vm677_vm0, %v2292_v15, %v2300_v18  ;;  %v7008_v12 = vld [vmem:[%s6860_s28 + $0xc8] sm:$0xff]  }
  0x30   : > { %v1631_v24 = vpack.c.b16 %v6200_v8, %v6200_v8  ;;  %v2473_v35 = vsel %vm677_vm0, %v2464_v19, %v2472_v20  ;;  %v1988_v40 = vshll.u32 %v6694_v16, 16  ;;  %v2165_v48 = vshrl.u32 %v1639_v28, 16  ;;  %v7011_v16 = vld [vmem:[%s6860_s28 + $0x64] sm:$0xff]  }
  0x31   : > { %v1655_v37 = vpack.c.b16 %v6248_v21, %v6248_v21  ;;  %v2168_v49 = vshll.u32 %v1639_v28, 16  ;;  %v2332_v52 = vshll.u32 %v6702_v29, 16  ;;  %v2337_v53 = vshrl.u32 %v1647_v33, 16  ;;  %v6424_v18 = vld [vmem:[%s6860_s28 + $0x128] sm:$0xff]   ;;  %v6053_v28 = vld [vmem:[%s8351_s1] sm:$0xff] }
  0x32   : > { %3006 = vmatpush.bf16.msrb.mxu2 %v6099_v25  ;;  %3239 = vmatpush.bf16.msrb.mxu3 %v6059_v26  ;;  %v6698_v25 = vld [vmem:[%s6860_s28 + $0xac] sm:$0xff]   ;;  %v6096_v26 = vld [vmem:[%s8351_s1 + $0x158] sm:$0xff]  ;;  %v1993_v41 = vshrl.u32 %v1631_v24, 16  ;;  %v1996_v42 = vshll.u32 %v1631_v24, 16  ;;  %v2340_v54 = vshll.u32 %v1647_v33, 16  ;;  %v2501_v57 = vshrl.u32 %v6706_v36, 16 }
  0x33   : > { %2917 = vmatpush.bf16.msrb.mxu1 %v6091_v43  ;;  %3328 = vmatpush.bf16.msrb.mxu0 %v6067_v44  ;;  %v2157_v43 = vshrl.u32 %v6698_v25, 16  ;;  %v6095_v44 = vld [vmem:[%s8351_s1 + $0x150] sm:$0xff]  ;;  %v2160_v47 = vshll.u32 %v6698_v25, 16  ;;  %v2504_v58 = vshll.u32 %v6706_v36, 16  ;;  %v2509_v59 = vshrl.u32 %v1655_v37, 16  ;;  %v6062_v24 = vld [vmem:[%s8351_s1 + $0x48] sm:$0xff] }
  0x34   : > { %v2512_v60 = vshll.u32 %v1655_v37, 16  ;;  %v1990_v0 = vrot.slane %v1988_v40, 4  ;;  %v1995_v1 = vrot.slane %v1993_v41, 3  ;;  %v1998_v2 = vrot.slane %v1996_v42, 4  ;;  %v6085_v41 = vld [vmem:[%s8351_s1 + $0x100] sm:$0xff] }
  0x35   : > { %v2167_v8 = vrot.slane %v2165_v48, 3  ;;  %v2170_v9 = vrot.slane %v2168_v49, 4  ;;  %v2334_v13 = vrot.slane %v2332_v52, 4  ;;  %v2339_v14 = vrot.slane %v2337_v53, 3  ;;  %v6061_v42 = vld [vmem:[%s8351_s1 + $0x40] sm:$0xff] }
  0x36   : > { %3007 = vmatpush.bf16.msrb.mxu2 %v6098_v50  ;;  %3240 = vmatpush.bf16.msrb.mxu3 %v6058_v51  ;;  %v2329_v50 = vshrl.u32 %v6702_v29, 16  ;;  %v6990_v51 = vrot.slane %v1985_v32, 3  ;;  %v2342_v15 = vrot.slane %v2340_v54, 4  ;;  %v6204_v17 = vunpack.c.h.b16 %v6993_v55  ;;  %v6707_v52 = vld [vmem:[%s6860_s28 + $0x184] sm:$0xff]  }
  0x37   : > { %2918 = vmatpush.bf16.msrb.mxu1 %v6090_v61  ;;  %3329 = vmatpush.bf16.msrb.mxu0 %v6066_v4  ;;  %v6087_v61 = vld [vmem:[%s8351_s1 + $0x110] sm:$0xff]  ;;  %v2159_v4 = vrot.slane %v2157_v43, 3  ;;  %v2503_v19 = vrot.slane %v2501_v57, 3  ;;  %v2506_v20 = vrot.slane %v2504_v58, 4  ;;  %v2511_v21 = vrot.slane %v2509_v59, 3  ;;  %v6699_v43 = vld [vmem:[%s6860_s28 + $0xc4] sm:$0xff]  }
  0x38   : > { %v2331_v10 = vrot.slane %v2329_v50, 3  ;;  %v6220_v25 = vunpack.c.h.b16 %v7008_v12  ;;  %v1991_v29 = vor.u32 %v1990_v0, %v6990_v51  ;;  %v6236_v32 = vunpack.c.h.b16 %v6424_v18  ;;  %v5541_v0 = vld [vmem:[%s6860_s28 + $0x28] sm:$0xf]  ;;  %v6124_v18 = vld [vmem:[%s8351_s1 + $0x238] sm:$0xff] }
  0x39   : > { %v2171_v33 = vor.u32 %v2170_v9, %v2167_v8  ;;  %v2028_v36 = vshrl.u32 %v7011_v16, 16  ;;  %v2507_v37 = vor.u32 %v2506_v20, %v2503_v19  ;;  %v2031_v54 = vshll.u32 %v7011_v16, 16  ;;  %v6108_v9 = vld [vmem:[%s8351_s1 + $0x1b8] sm:$0xff] }
  0x3a   : > { %3008 = vmatpush.bf16.msrb.mxu2 %v6097_v6  ;;  %3241 = vmatpush.bf16.msrb.mxu3 %v6057_v7  ;;  %v6054_v6 = vld [vmem:[%s8351_s1 + $0x8] sm:$0xff]  ;;  %v2162_v7 = vrot.slane %v2160_v47, 4  ;;  %v1649_v47 = vpack.c.b16 %v6236_v32, %v6236_v32  ;;  %v2547_v8 = vshll.u32 %v6707_v52, 16 }
  0x3b   : > { %2919 = vmatpush.bf16.msrb.mxu1 %v6089_v22  ;;  %3330 = vmatpush.bf16.msrb.mxu0 %v6065_v23  ;;  %v2514_v22 = vrot.slane %v2512_v60, 4  ;;  %v6086_v23 = vld [vmem:[%s8351_s1 + $0x108] sm:$0xff]  ;;  %v7045_v51 = vrot.slane %v2028_v36, 3  ;;  %v2200_v60 = vshrl.u32 %v6699_v43, 16 }
  0x3c   : > { %2840 = vmatmul.bf16.gmra.mxu0 %v1957_v30  ;;  %2860 = vmatmul.bf16.gmra.mxu1 %v2129_v31  ;;  %v7030_v30 = vor.u32 %v1998_v2, %v1995_v1  ;;  %v2163_v31 = vor.u32 %v2162_v7, %v2159_v4  ;;  %v2544_v7 = vshrl.u32 %v6707_v52, 16  ;;  %v6397_v32 = vld [vmem:[%s6860_s28 + $0x8] sm:$0xff]  }
  0x3d   : > { %2880 = vmatmul.bf16.gmra.mxu2 %v2301_v34  ;;  %2900 = vmatmul.bf16.gmra.mxu3 %v2473_v35  ;;  %v2335_v34 = vor.u32 %v2334_v13, %v2331_v10  ;;  %v2343_v35 = vor.u32 %v2342_v15, %v2339_v14  ;;  %v6116_v10 = vld [vmem:[%s8351_s1 + $0x1f8] sm:$0xff]  ;;  %v2033_v14 = vrot.slane %v2031_v54, 4 }
  0x3e   : > { %3009 = vmatpush.bf16.msrb.mxu2 %v6096_v26  ;;  %3242 = vmatpush.bf16.msrb.mxu3 %v6056_v27  ;;  %v6428_v26 = vld [vmem:[%s6860_s28 + $0x188] sm:$0xff]   ;;  %v6093_v27 = vld [vmem:[%s8351_s1 + $0x140] sm:$0xff]  ;;  %v2000_v48 = vsel %vm677_vm0, %v1991_v29, %v7030_v30  ;;  %v2172_v49 = vsel %vm677_vm0, %v2163_v31, %v2171_v33  ;;  %v6076_v13 = vld [vmem:[%s8351_s1 + $0xb8] sm:$0xff]  ;;  %v2546_v29 = vrot.slane %v2544_v7, 3  ;;  %v2549_v31 = vrot.slane %v2547_v8, 4 }
  0x3f   : > { %2920 = vmatpush.bf16.msrb.mxu1 %v6088_v38  ;;  %3331 = vmatpush.bf16.msrb.mxu0 %v6064_v39  ;;  %v2515_v38 = vor.u32 %v2514_v22, %v2511_v21  ;;  %v1633_v39 = vpack.c.b16 %v6204_v17, %v6204_v17  ;;  %v6252_v40 = vunpack.c.h.b16 %v6428_v26  ;;  %v2344_v50 = vsel %vm677_vm0, %v2335_v34, %v2343_v35 }
  0x40   : > { %v1818_v17 = vunpack.c.l.b16 %v5541_v0  ;;  %v2202_v21 = vrot.slane %v2200_v60, 3  ;;  %v2034_v36 = vor.u32 %v2033_v14, %v7045_v51  ;;  %v6128_v51 = vunpack.c.h.b16 %v6397_v32  ;;  %v6676_v60 = vld [vmem:[%s6860_s28 + $0x4] sm:$0xff]  }
  0x41   : > { %v2516_v53 = vsel %vm677_vm0, %v2507_v37, %v2515_v38  ;;  %v2036_v57 = vshrl.u32 %v1633_v39, 16  ;;  %v1657_v58 = vpack.c.b16 %v6252_v40, %v6252_v40  ;;  %v2039_v59 = vshll.u32 %v1633_v39, 16 }
  0x42   : > { %3010 = vmatpush.bf16.msrb.mxu2 %v6095_v44  ;;  %3243 = vmatpush.bf16.msrb.mxu3 %v6055_v45  ;;  %v1641_v44 = vpack.c.b16 %v6220_v25, %v6220_v25  ;;  %v6703_v45 = vld [vmem:[%s6860_s28 + $0x124] sm:$0xff]   ;;  %v1834_v35 = vpack.c.b16 %v1818_v17, %v1818_v17  ;;  %v1675_v37 = vshrl.u32 %v6863_v3, 16  ;;  %v1678_v38 = vshll.u32 %v6863_v3, 16 }
  0x43   : > { %2921 = vmatpush.bf16.msrb.mxu1 %v6087_v61  ;;  %3332 = vmatpush.bf16.msrb.mxu0 %v6063_v63  ;;  %v2203_v61 = vshll.u32 %v6699_v43, 16  ;;  %v2372_v2 = vshrl.u32 %v6703_v45, 16  ;;  %v2375_v4 = vshll.u32 %v6703_v45, 16  ;;  %v2552_v15 = vshrl.u32 %v1657_v58, 16 }
  0x44   : > { %v2208_v63 = vshrl.u32 %v1641_v44, 16  ;;  %v2211_v1 = vshll.u32 %v1641_v44, 16  ;;  %v2555_v16 = vshll.u32 %v1657_v58, 16  ;;  %v2038_v19 = vrot.slane %v2036_v57, 3 }
  0x45   : > { %v2041_v20 = vrot.slane %v2039_v59, 4  ;;  %v2205_v22 = vrot.slane %v2203_v61, 4  ;;  %v2374_v25 = vrot.slane %v2372_v2, 3  ;;  %v2377_v26 = vrot.slane %v2375_v4, 4  ;;  %v5545_v2 = vld [vmem:[%s6860_s28 + $0x40] sm:$0xf] }
  0x46   : > { %3011 = vmatpush.bf16.msrb.mxu2 %v6094_v5  ;;  %3244 = vmatpush.bf16.msrb.mxu3 %v6054_v6  ;;  %v2380_v5 = vshrl.u32 %v1649_v47, 16  ;;  %v2383_v6 = vshll.u32 %v1649_v47, 16  ;;  %v2554_v33 = vrot.slane %v2552_v15, 3  ;;  %v2557_v34 = vrot.slane %v2555_v16, 4 }
  0x47   : > { %2922 = vmatpush.bf16.msrb.mxu1 %v6086_v23  ;;  %3333 = vmatpush.bf16.msrb.mxu0 %v6062_v24  ;;  %v2210_v23 = vrot.slane %v2208_v63, 3  ;;  %v2213_v24 = vrot.slane %v2211_v1, 4  ;;  %v7067_v39 = vor.u32 %v2041_v20, %v2038_v19  ;;  %v2206_v40 = vor.u32 %v2205_v22, %v2202_v21 }
  0x48   : > { %v2378_v44 = vor.u32 %v2377_v26, %v2374_v25  ;;  %v2550_v47 = vor.u32 %v2549_v31, %v2546_v29  ;;  %v1677_v52 = vrot.slane %v1675_v37, 4  ;;  %v405_v0 = vpack.c.b16 %v6128_v51, %v6128_v51  ;;  %v6398_v26 = vld [vmem:[%s6860_s28 + $0x20] sm:$0xff]  }
  0x49   : > { %v2214_v43 = vor.u32 %v2213_v24, %v2210_v23  ;;  %v2043_v58 = vsel %vm677_vm0, %v2034_v36, %v7067_v39  ;;  %v1819_v15 = vunpack.c.l.b16 %v5545_v2  ;;  %v461_v37 = vshrl.u32 %v6398_v26, 16 }
  0x4a   : > { %3012 = vmatpush.bf16.msrb.mxu2 %v6093_v27  ;;  %3245 = vmatpush.bf16.msrb.mxu3 %v6053_v28  ;;  %v2382_v27 = vrot.slane %v2380_v5, 3  ;;  %v2385_v28 = vrot.slane %v2383_v6, 4  ;;  %v690_v14 = vshll.u32 %v405_v0, 16 }
  0x4b   : > { %2923 = vmatpush.bf16.msrb.mxu1 %v6085_v41  ;;  %3334 = vmatpush.bf16.msrb.mxu0 %v6061_v42  ;;  %v453_v41 = vshrl.u32 %v6397_v32, 16  ;;  %v456_v42 = vshll.u32 %v6397_v32, 16  ;;  %v2215_v59 = vsel %vm677_vm0, %v2206_v40, %v2214_v43  ;;  %v1835_v29 = vpack.c.b16 %v1819_v15, %v1819_v15 }
  0x4c   : > { %2845 = vmatmul.bf16.gmra.mxu0 %v2000_v48  ;;  %2865 = vmatmul.bf16.gmra.mxu1 %v2172_v49  ;;  %v2386_v45 = vor.u32 %v2385_v28, %v2382_v27  ;;  %v2558_v48 = vor.u32 %v2557_v34, %v2554_v33  ;;  %v1850_v49 = vrot.slane %v6863_v3, 5  ;;  %v692_v28 = vrot.slane %v690_v14, 4 }
  0x4d   : > { %2885 = vmatmul.bf16.gmra.mxu2 %v2344_v50  ;;  %2905 = vmatmul.bf16.gmra.mxu3 %v2516_v53  ;;  %v1851_v50 = vrot.slane %v1834_v35, 5  ;;  %v1680_v53 = vrot.slane %v1678_v38, 5  ;;  %v455_v54 = vrot.slane %v453_v41, 4  ;;  %v458_v57 = vrot.slane %v456_v42, 5 }
  0x4e   : > { %4870 = vmatpush.bf16.msra.mxu2 %v6108_v9  ;;  %4959 = vmatpush.bf16.msra.mxu3 %v6116_v10  ;;  %v2387_v61 = vsel %vm677_vm0, %v2378_v44, %v2386_v45  ;;  %v2559_v63 = vsel %vm677_vm0, %v2550_v47, %v2558_v48  ;;  %v1925_v4 = vshrl.u32 %v1850_v49, 16  ;;  %v1928_v5 = vshll.u32 %v1850_v49, 16 }
  0x4f   : > { %3416 = vmatpush.bf16.msra.mxu1 %v6076_v13  ;;  %5048 = vmatpush.bf16.msra.mxu0 %v6124_v18  ;;  %v1852_v3 = vsel %vm628_vm1, %v1850_v49, %v1851_v50  ;;  %v1681_v1 = vor.u32 %v1680_v53, %v1677_v52  ;;  %v459_v6 = vor.u32 %v458_v57, %v455_v54  ;;  %v679_v9 = vshrl.u32 %v6676_v60, 16  ;;  %v6677_v54 = vld [vmem:[%s6860_s28 + $0x1c] sm:$0xff]  }
  0x50   : > { %v1933_v7 = vshrl.u32 %v1852_v3, 16  ;;  %v1936_v8 = vshll.u32 %v1852_v3, 16  ;;  %v682_v10 = vshll.u32 %v6676_v60, 16  ;;  %v687_v13 = vshrl.u32 %v405_v0, 16  ;;  %v5549_v3 = vld [vmem:[%s6860_s28 + $0x58] sm:$0xf] }
  0x51   : > { %v1916_v16 = vshrl.u32 %v1681_v1, 16  ;;  %v1919_v17 = vshll.u32 %v1681_v1, 16  ;;  %v1927_v18 = vrot.slane %v1925_v4, 3  ;;  %v1930_v19 = vrot.slane %v1928_v5, 4  ;;  %v6107_v4 = vld [vmem:[%s8351_s1 + $0x1b0] sm:$0xff] }
  0x52   : > { %v696_v20 = vshrl.u32 %v459_v6, 16  ;;  %v699_v21 = vshll.u32 %v459_v6, 16  ;;  %v1935_v22 = vrot.slane %v1933_v7, 3  ;;  %v1938_v23 = vrot.slane %v1936_v8, 4  ;;  %v6115_v5 = vld [vmem:[%s8351_s1 + $0x1f0] sm:$0xff]  ;;  %4871 = vmatpush.bf16.msra.mxu2 %v6107_v4 }
  0x53   : > { %v681_v24 = vrot.slane %v679_v9, 3  ;;  %v684_v25 = vrot.slane %v682_v10, 4  ;;  %v689_v27 = vrot.slane %v687_v13, 3  ;;  %v1918_v31 = vrot.slane %v1916_v16, 3  ;;  %v6075_v6 = vld [vmem:[%s8351_s1 + $0xb0] sm:$0xff]  ;;  %4960 = vmatpush.bf16.msra.mxu3 %v6115_v5 }
  0x54   : > { %v1921_v32 = vrot.slane %v1919_v17, 4  ;;  %v1683_v33 = vshrl.u32 %v6883_v46, 16  ;;  %v1686_v34 = vshll.u32 %v6883_v46, 16  ;;  %v698_v35 = vrot.slane %v696_v20, 3  ;;  %v6123_v13 = vld [vmem:[%s8351_s1 + $0x230] sm:$0xff]  ;;  %3417 = vmatpush.bf16.msra.mxu1 %v6075_v6 }
  0x55   : > { %v701_v36 = vrot.slane %v699_v21, 4  ;;  %v464_v38 = vshll.u32 %v6398_v26, 16  ;;  %v1931_v40 = vor.u32 %v1930_v19, %v1927_v18  ;;  %v1939_v41 = vor.u32 %v1938_v23, %v1935_v22  ;;  %5049 = vmatpush.bf16.msra.mxu0 %v6123_v13 }
  0x56   : > { %v685_v42 = vor.u32 %v684_v25, %v681_v24  ;;  %v693_v43 = vor.u32 %v692_v28, %v689_v27  ;;  %v1853_v44 = vrot.slane %v6883_v46, 5  ;;  %v1854_v45 = vrot.slane %v1835_v29, 5 }
  0x57   : > { %v6132_v47 = vunpack.c.h.b16 %v6398_v26  ;;  %v1685_v48 = vrot.slane %v1683_v33, 4  ;;  %v1688_v49 = vrot.slane %v1686_v34, 5  ;;  %v1922_v50 = vor.u32 %v1921_v32, %v1918_v31 }
  0x58   : > { %v702_v51 = vor.u32 %v701_v36, %v698_v35  ;;  %v463_v52 = vrot.slane %v461_v37, 4  ;;  %v466_v53 = vrot.slane %v464_v38, 5  ;;  %v1940_v57 = vsel %vm677_vm0, %v1931_v40, %v1939_v41 }
  0x59   : > { %v407_v60 = vpack.c.b16 %v6132_v47, %v6132_v47  ;;  %v1968_v46 = vshrl.u32 %v1853_v44, 16  ;;  %v1971_v0 = vshll.u32 %v1853_v44, 16  ;;  %v722_v2 = vshrl.u32 %v6677_v54, 16  ;;  %v6678_v47 = vld [vmem:[%s6860_s28 + $0x34] sm:$0xff]  }
  0x5a   : > { %v725_v8 = vshll.u32 %v6677_v54, 16  ;;  %v1820_v16 = vunpack.c.l.b16 %v5549_v3  ;;  %v1691_v33 = vshrl.u32 %v6934_v56, 16  ;;  %v1694_v34 = vshll.u32 %v6934_v56, 16 }
  0x5b   : > { %v730_v9 = vshrl.u32 %v407_v60, 16  ;;  %v733_v10 = vshll.u32 %v407_v60, 16  ;;  %v1970_v19 = vrot.slane %v1968_v46, 3  ;;  %v1973_v20 = vrot.slane %v1971_v0, 4 }
  0x5c   : > { %2850 = vmatmul.bf16.gmra.mxu0 %v2043_v58  ;;  %2870 = vmatmul.bf16.gmra.mxu1 %v2215_v59  ;;  %v694_v58 = vsel %vm677_vm0, %v685_v42, %v693_v43  ;;  %v1855_v59 = vsel %vm628_vm1, %v1853_v44, %v1854_v45  ;;  %v724_v22 = vrot.slane %v722_v2, 3  ;;  %v727_v24 = vrot.slane %v725_v8, 4 }
  0x5d   : > { %2890 = vmatmul.bf16.gmra.mxu2 %v2387_v61  ;;  %2910 = vmatmul.bf16.gmra.mxu3 %v2559_v63  ;;  %v1689_v61 = vor.u32 %v1688_v49, %v1685_v48  ;;  %v467_v63 = vor.u32 %v466_v53, %v463_v52  ;;  %v1976_v1 = vshrl.u32 %v1855_v59, 16  ;;  %v1979_v7 = vshll.u32 %v1855_v59, 16 }
  0x5e   : > { %v732_v25 = vrot.slane %v730_v9, 3  ;;  %v735_v26 = vrot.slane %v733_v10, 4  ;;  %v1836_v29 = vpack.c.b16 %v1820_v16, %v1820_v16  ;;  %v1974_v35 = vor.u32 %v1973_v20, %v1970_v19 }
  0x5f   : > { %v1959_v14 = vshrl.u32 %v1689_v61, 16  ;;  %v1962_v15 = vshll.u32 %v1689_v61, 16  ;;  %v739_v17 = vshrl.u32 %v467_v63, 16  ;;  %v742_v18 = vshll.u32 %v467_v63, 16 }
  0x60   : > { %v1978_v21 = vrot.slane %v1976_v1, 3  ;;  %v1981_v23 = vrot.slane %v1979_v7, 4  ;;  %v728_v37 = vor.u32 %v727_v24, %v724_v22  ;;  %v736_v38 = vor.u32 %v735_v26, %v732_v25  ;;  %v5557_v24 = vld [vmem:[%s6860_s28 + $0x88] sm:$0xf] }
  0x61   : > { %v1961_v27 = vrot.slane %v1959_v14, 3  ;;  %v1964_v28 = vrot.slane %v1962_v15, 4  ;;  %v741_v31 = vrot.slane %v739_v17, 3  ;;  %v744_v32 = vrot.slane %v742_v18, 4 }
  0x62   : > { %v1982_v36 = vor.u32 %v1981_v23, %v1978_v21  ;;  %v1856_v40 = vrot.slane %v6934_v56, 5  ;;  %v1857_v41 = vrot.slane %v1836_v29, 5  ;;  %v1693_v44 = vrot.slane %v1691_v33, 4  ;;  %v6679_v23 = vld [vmem:[%s6860_s28 + $0x4c] sm:$0xff]  }
  0x63   : > { %v1965_v42 = vor.u32 %v1964_v28, %v1961_v27  ;;  %v745_v43 = vor.u32 %v744_v32, %v741_v31  ;;  %v1696_v45 = vrot.slane %v1694_v34, 5  ;;  %v737_v49 = vsel %vm677_vm0, %v728_v37, %v736_v38  ;;  %v6106_v28 = vld [vmem:[%s8351_s1 + $0x1a8] sm:$0xff] }
  0x64   : > { %v1983_v48 = vsel %vm677_vm0, %v1974_v35, %v1982_v36  ;;  %v2011_v53 = vshrl.u32 %v1856_v40, 16  ;;  %v2014_v56 = vshll.u32 %v1856_v40, 16  ;;  %v765_v54 = vshrl.u32 %v6678_v47, 16  ;;  %4872 = vmatpush.bf16.msra.mxu2 %v6106_v28 }
  0x65   : > { %v1697_v52 = vor.u32 %v1696_v45, %v1693_v44  ;;  %v768_v59 = vshll.u32 %v6678_v47, 16  ;;  %v1699_v8 = vshrl.u32 %v6993_v55, 16  ;;  %v1702_v9 = vshll.u32 %v6993_v55, 16 }
  0x66   : > { %v2013_v63 = vrot.slane %v2011_v53, 3  ;;  %v2016_v3 = vrot.slane %v2014_v56, 4  ;;  %v767_v0 = vrot.slane %v765_v54, 3  ;;  %v1859_v15 = vrot.slane %v6993_v55, 5 }
  0x67   : > { %v2002_v61 = vshrl.u32 %v1697_v52, 16  ;;  %v2005_v46 = vshll.u32 %v1697_v52, 16  ;;  %v770_v4 = vrot.slane %v768_v59, 4  ;;  %v1701_v18 = vrot.slane %v1699_v8, 4 }
  0x68   : > { %v2017_v10 = vor.u32 %v2016_v3, %v2013_v63  ;;  %v1704_v19 = vrot.slane %v1702_v9, 5  ;;  %v2054_v26 = vshrl.u32 %v1859_v15, 16  ;;  %v2057_v55 = vshll.u32 %v1859_v15, 16  ;;  %v6680_v3 = vld [vmem:[%s6860_s28 + $0x64] sm:$0xff]  }
  0x69   : > { %v2004_v6 = vrot.slane %v2002_v61, 3  ;;  %v2007_v7 = vrot.slane %v2005_v46, 4  ;;  %v771_v14 = vor.u32 %v770_v4, %v767_v0  ;;  %v808_v31 = vshrl.u32 %v6679_v23, 16  ;;  %v5561_v0 = vld [vmem:[%s6860_s28 + $0xa0] sm:$0xf] }
  0x6a   : > { %v1705_v25 = vor.u32 %v1704_v19, %v1701_v18  ;;  %v811_v32 = vshll.u32 %v6679_v23, 16  ;;  %v1822_v33 = vunpack.c.l.b16 %v5557_v24  ;;  %v2056_v36 = vrot.slane %v2054_v26, 3  ;;  %v6402_v18 = vld [vmem:[%s6860_s28 + $0x80] sm:$0xff]  }
  0x6b   : > { %v2008_v17 = vor.u32 %v2007_v7, %v2004_v6  ;;  %v780_v21 = vsel %vm677_vm0, %v771_v14, %v6954_v11  ;;  %v6114_v11 = vld [vmem:[%s8351_s1 + $0x1e8] sm:$0xff]  ;;  %v2059_v37 = vrot.slane %v2057_v55, 4  ;;  %v851_v7 = vshrl.u32 %v6680_v3, 16 }
  0x6c   : > { %2924 = vmatmul.bf16.vlgmr.msrb.gmra.mxu1 %v1922_v50  ;;  %3335 = vmatmul.bf16.vlgmr.msrb.gmra.mxu0 %v702_v51  ;;  %v1858_v50 = vsel %vm628_vm1, %v1856_v40, %v1857_v41  ;;  %v5553_v51 = vld [vmem:[%s6860_s28 + $0x70] sm:$0xf]  ;;  %v2045_v34 = vshrl.u32 %v1705_v25, 16  ;;  %v2048_v35 = vshll.u32 %v1705_v25, 16  ;;  %v6074_v40 = vld [vmem:[%s8351_s1 + $0xa8] sm:$0xff]  ;;  %v813_v44 = vrot.slane %v811_v32, 4 }
  0x6d   : > { %3013 = vmatmul.bf16.vlgmr.msrb.gmra.mxu2 %v1940_v57  ;;  %3246 = vmatmul.bf16.vlgmr.msrb.gmra.mxu3 %v694_v58  ;;  %v2019_v57 = vshrl.u32 %v1858_v50, 16  ;;  %v2022_v58 = vshll.u32 %v1858_v50, 16  ;;  %v1821_v60 = vunpack.c.l.b16 %v5553_v51  ;;  %v6122_v41 = vld [vmem:[%s8351_s1 + $0x228] sm:$0xff]  ;;  %v1838_v45 = vpack.c.b16 %v1822_v33, %v1822_v33 }
  0x6e   : > { %4961 = vmatpush.bf16.msra.mxu3 %v6114_v11  ;;  %3418 = vmatpush.bf16.msra.mxu1 %v6074_v40  ;;  %v2047_v47 = vrot.slane %v2045_v34, 3  ;;  %v2060_v52 = vor.u32 %v2059_v37, %v2056_v36  ;;  %v854_v8 = vshll.u32 %v6680_v3, 16  ;;  %v1823_v9 = vunpack.c.l.b16 %v5561_v0 }
  0x6f   : > { %v2021_v1 = vrot.slane %v2019_v57, 3  ;;  %v2024_v2 = vrot.slane %v2022_v58, 4  ;;  %v1837_v5 = vpack.c.b16 %v1821_v60, %v1821_v60  ;;  %5050 = vmatpush.bf16.msra.mxu0 %v6122_v41  ;;  %v1863_v57 = vrot.slane %v1838_v45, 5 }
  0x70   : > { %v856_v19 = vrot.slane %v854_v8, 4  ;;  %v493_v26 = vshrl.u32 %v6402_v18, 16  ;;  %v496_v55 = vshll.u32 %v6402_v18, 16  ;;  %v6148_v32 = vunpack.c.h.b16 %v6402_v18 }
  0x71   : > { %v2025_v13 = vor.u32 %v2024_v2, %v2021_v1  ;;  %v1860_v16 = vrot.slane %v1837_v5, 5 }
  0x72   : > { %v495_v36 = vrot.slane %v493_v26, 4  ;;  %v498_v37 = vrot.slane %v496_v55, 5  ;;  %v415_v45 = vpack.c.b16 %v6148_v32, %v6148_v32  ;;  %v6752_v55 = vld [vmem:[%s6860_s28 + $0xb0] sm:$0xff]  }
  0x73   : > { %v2026_v20 = vsel %vm677_vm0, %v2017_v10, %v2025_v13  ;;  %v1861_v22 = vsel %vm628_vm1, %v1859_v15, %v1860_v16 }
  0x74   : > { %v2062_v27 = vshrl.u32 %v1861_v22, 16  ;;  %v2065_v29 = vshll.u32 %v1861_v22, 16 }
  0x76   : > { %v2064_v38 = vrot.slane %v2062_v27, 3 }
  0x7c   : > { %2929 = vmatmul.bf16.gmra.mxu1 %v1965_v42  ;;  %3340 = vmatmul.bf16.gmra.mxu0 %v745_v43  ;;  %v810_v43 = vrot.slane %v808_v31, 3 }
  0x7d   : > { %3018 = vmatmul.bf16.gmra.mxu2 %v1983_v48  ;;  %3251 = vmatmul.bf16.gmra.mxu3 %v737_v49  ;;  %v2050_v48 = vrot.slane %v2048_v35, 4  ;;  %v6750_v49 = vld [vmem:[%s6860_s28 + $0x80] sm:$0xff]  }
  0x7e   : > { %v1707_v50 = vshrl.u32 %v6750_v49, 16  ;;  %v1710_v51 = vshll.u32 %v6750_v49, 16  ;;  %v814_v56 = vor.u32 %v813_v44, %v810_v43  ;;  %v1862_v54 = vrot.slane %v6750_v49, 5  ;;  %v6681_v44 = vld [vmem:[%s6860_s28 + $0x7c] sm:$0xff]  }
  0x7f   : > { %v2051_v58 = vor.u32 %v2050_v48, %v2047_v47  ;;  %v5565_v47 = vld [vmem:[%s6860_s28 + $0xb8] sm:$0xf] }
  0x80   : > { %v1709_v59 = vrot.slane %v1707_v50, 4  ;;  %v1712_v60 = vrot.slane %v1710_v51, 5  ;;  %v823_v46 = vsel %vm677_vm0, %v814_v56, %v7030_v30  ;;  %v1864_v63 = vsel %vm628_vm1, %v1862_v54, %v1863_v57 }
  0x81   : > { %v2097_v2 = vshrl.u32 %v1862_v54, 16  ;;  %v2100_v4 = vshll.u32 %v1862_v54, 16  ;;  %v2105_v5 = vshrl.u32 %v1864_v63, 16  ;;  %v2108_v6 = vshll.u32 %v1864_v63, 16  ;;  %v6113_v54 = vld [vmem:[%s8351_s1 + $0x1e0] sm:$0xff] }
  0x82   : > { %v1713_v1 = vor.u32 %v1712_v60, %v1709_v59  ;;  %v499_v50 = vor.u32 %v498_v37, %v495_v36  ;;  %v1824_v56 = vunpack.c.l.b16 %v5565_v47  ;;  %v894_v57 = vshrl.u32 %v6681_v44, 16  ;;  %4962 = vmatpush.bf16.msra.mxu3 %v6113_v54 }
  0x83   : > { %v2099_v13 = vrot.slane %v2097_v2, 3  ;;  %v2102_v14 = vrot.slane %v2100_v4, 4  ;;  %v2107_v15 = vrot.slane %v2105_v5, 3  ;;  %v2110_v16 = vrot.slane %v2108_v6, 4 }
  0x84   : > { %v2088_v10 = vshrl.u32 %v1713_v1, 16  ;;  %v2091_v30 = vshll.u32 %v1713_v1, 16  ;;  %v897_v59 = vshll.u32 %v6681_v44, 16  ;;  %v902_v60 = vshrl.u32 %v415_v45, 16 }
  0x85   : > { %v2103_v27 = vor.u32 %v2102_v14, %v2099_v13  ;;  %v2111_v28 = vor.u32 %v2110_v16, %v2107_v15  ;;  %v911_v1 = vshrl.u32 %v499_v50, 16  ;;  %v914_v2 = vshll.u32 %v499_v50, 16  ;;  %v6121_v13 = vld [vmem:[%s8351_s1 + $0x220] sm:$0xff] }
  0x86   : > { %v2090_v24 = vrot.slane %v2088_v10, 3  ;;  %v2093_v25 = vrot.slane %v2091_v30, 4  ;;  %v6403_v10 = vld [vmem:[%s6860_s28 + $0x98] sm:$0xff]   ;;  %v6073_v30 = vld [vmem:[%s8351_s1 + $0xa0] sm:$0xff]  ;;  %v896_v14 = vrot.slane %v894_v57, 3  ;;  %v899_v15 = vrot.slane %v897_v59, 4  ;;  %5051 = vmatpush.bf16.msra.mxu0 %v6121_v13 }
  0x87   : > { %v2112_v41 = vsel %vm677_vm0, %v2103_v27, %v2111_v28  ;;  %v904_v16 = vrot.slane %v902_v60, 3  ;;  %3419 = vmatpush.bf16.msra.mxu1 %v6073_v30  ;;  %v1868_v27 = vrot.slane %v6752_v55, 5  ;;  %v6152_v32 = vunpack.c.h.b16 %v6403_v10  ;;  %v6404_v13 = vld [vmem:[%s6860_s28 + $0xb0] sm:$0xff]  }
  0x88   : > { %v2094_v35 = vor.u32 %v2093_v25, %v2090_v24  ;;  %v501_v24 = vshrl.u32 %v6403_v10, 16  ;;  %v504_v25 = vshll.u32 %v6403_v10, 16 }
  0x89   : > { %v417_v50 = vpack.c.b16 %v6152_v32, %v6152_v32  ;;  %v1871_v32 = vrot.slane %v7008_v12, 5 }
  0x8c   : > { %2934 = vmatmul.bf16.gmra.mxu1 %v2008_v17  ;;  %3345 = vmatmul.bf16.gmra.mxu0 %v1965_v42  ;;  %v2067_v42 = vrot.slane %v2065_v29, 4 }
  0x8d   : > { %3023 = vmatmul.bf16.gmra.mxu2 %v2026_v20  ;;  %3256 = vmatmul.bf16.gmra.mxu3 %v780_v21  ;;  %v1839_v20 = vpack.c.b16 %v1823_v9, %v1823_v9  ;;  %v6751_v21 = vld [vmem:[%s6860_s28 + $0x98] sm:$0xff]   ;;  %v1840_v9 = vpack.c.b16 %v1824_v56, %v1824_v56  ;;  %v2186_v56 = vshll.u32 %v1868_v27, 16 }
  0x8e   : > { %v2068_v53 = vor.u32 %v2067_v42, %v2064_v38  ;;  %v1715_v22 = vshrl.u32 %v6751_v21, 16  ;;  %v1718_v23 = vshll.u32 %v6751_v21, 16  ;;  %v1865_v29 = vrot.slane %v6751_v21, 5 }
  0x8f   : > { %v1866_v31 = vrot.slane %v1839_v20, 5  ;;  %v1723_v20 = vshrl.u32 %v6940_v62, 16  ;;  %v1726_v21 = vshll.u32 %v6940_v62, 16  ;;  %v1869_v28 = vrot.slane %v1840_v9, 5 }
  0x90   : > { %v2069_v61 = vsel %vm677_vm0, %v2060_v52, %v2068_v53  ;;  %v1717_v33 = vrot.slane %v1715_v22, 4  ;;  %v1720_v34 = vrot.slane %v1718_v23, 5  ;;  %v2140_v49 = vshrl.u32 %v1865_v29, 16 }
  0x91   : > { %v1867_v43 = vsel %vm628_vm1, %v1865_v29, %v1866_v31  ;;  %v2143_v51 = vshll.u32 %v1865_v29, 16  ;;  %v913_v22 = vrot.slane %v911_v1, 3  ;;  %v916_v23 = vrot.slane %v914_v2, 4 }
  0x92   : > { %v1721_v48 = vor.u32 %v1720_v34, %v1717_v33  ;;  %v2148_v52 = vshrl.u32 %v1867_v43, 16  ;;  %v2151_v53 = vshll.u32 %v1867_v43, 16  ;;  %v2142_v0 = vrot.slane %v2140_v49, 3  ;;  %v6682_v49 = vld [vmem:[%s6860_s28 + $0x94] sm:$0xff]  }
  0x93   : > { %v2145_v6 = vrot.slane %v2143_v51, 4  ;;  %v900_v29 = vor.u32 %v899_v15, %v896_v14  ;;  %v1725_v33 = vrot.slane %v1723_v20, 4  ;;  %v1728_v34 = vrot.slane %v1726_v21, 5  ;;  %v5569_v51 = vld [vmem:[%s6860_s28 + $0xd0] sm:$0xf] }
  0x94   : > { %v2153_v8 = vrot.slane %v2151_v53, 4  ;;  %v917_v37 = vor.u32 %v916_v23, %v913_v22  ;;  %v2183_v53 = vshrl.u32 %v1868_v27, 16  ;;  %v1825_v59 = vunpack.c.l.b16 %v5569_v51 }
  0x95   : > { %v2146_v26 = vor.u32 %v2145_v6, %v2142_v0  ;;  %v937_v60 = vshrl.u32 %v6682_v49, 16 }
  0x96   : > { %v2185_v2 = vrot.slane %v2183_v53, 3 }
  0x97   : > { %v939_v20 = vrot.slane %v937_v60, 3 }
  0x9c   : > { %2939 = vmatmul.bf16.gmra.mxu1 %v2051_v58  ;;  %3350 = vmatmul.bf16.gmra.mxu0 %v2008_v17  ;;  %v853_v17 = vrot.slane %v851_v7, 3  ;;  %v2150_v7 = vrot.slane %v2148_v52, 3  ;;  %v1729_v52 = vor.u32 %v1728_v34, %v1725_v33 }
  0x9d   : > { %3028 = vmatmul.bf16.gmra.mxu2 %v2069_v61  ;;  %3261 = vmatmul.bf16.gmra.mxu3 %v823_v46  ;;  %v2131_v61 = vshrl.u32 %v1721_v48, 16  ;;  %v2134_v46 = vshll.u32 %v1721_v48, 16 }
  0x9e   : > { %v857_v11 = vor.u32 %v856_v19, %v853_v17  ;;  %v2174_v0 = vshrl.u32 %v1729_v52, 16  ;;  %v2177_v1 = vshll.u32 %v1729_v52, 16 }
  0x9f   : > { %v2133_v17 = vrot.slane %v2131_v61, 3  ;;  %v2136_v19 = vrot.slane %v2134_v46, 4  ;;  %v945_v61 = vshrl.u32 %v417_v50, 16  ;;  %v948_v46 = vshll.u32 %v417_v50, 16 }
  0xa0   : > { %v866_v42 = vsel %vm677_vm0, %v857_v11, %v7067_v39  ;;  %v6105_v39 = vld [vmem:[%s8351_s1 + $0x1a0] sm:$0xff]  ;;  %v2154_v11 = vor.u32 %v2153_v8, %v2150_v7  ;;  %v2188_v8 = vrot.slane %v2186_v56, 4  ;;  %v2179_v55 = vrot.slane %v2177_v1, 4 }
  0xa1   : > { %4873 = vmatpush.bf16.msra.mxu2 %v6105_v39  ;;  %v2137_v36 = vor.u32 %v2136_v19, %v2133_v17  ;;  %v1734_v17 = vshll.u32 %v7008_v12, 16  ;;  %v1841_v19 = vpack.c.b16 %v1825_v59, %v1825_v59  ;;  %v947_v22 = vrot.slane %v945_v61, 3 }
  0xa2   : > { %v2155_v47 = vsel %vm677_vm0, %v2146_v26, %v2154_v11  ;;  %v950_v23 = vrot.slane %v948_v46, 4  ;;  %v512_v26 = vshll.u32 %v6404_v13, 16  ;;  %v2229_v46 = vshll.u32 %v1871_v32, 16 }
  0xa3   : > { %v1872_v33 = vrot.slane %v1841_v19, 5 }
  0xa5   : > { %v1873_v56 = vsel %vm628_vm1, %v1871_v32, %v1872_v33 }
  0xa9   : > { %v7137_v38 = vpop.f32.mrf.mxu0  ;;  %v7139_v40 = vpop.f32.mrf.mxu1 }
  0xac   : > { %2944 = vmatmul.bf16.gmra.mxu1 %v2094_v35  ;;  %3355 = vmatmul.bf16.gmra.mxu0 %v2051_v58  ;;  %v905_v58 = vshll.u32 %v415_v45, 16  ;;  %v1870_v45 = vsel %vm628_vm1, %v1868_v27, %v1869_v28  ;;  %v2189_v27 = vor.u32 %v2188_v8, %v2185_v2  ;;  %v2237_v2 = vshll.u32 %v1873_v56, 16 }
  0xad   : > { %3033 = vmatmul.bf16.gmra.mxu2 %v2112_v41  ;;  %3266 = vmatmul.bf16.gmra.mxu3 %v866_v42  ;;  %v503_v41 = vrot.slane %v501_v24, 4  ;;  %v506_v42 = vrot.slane %v504_v25, 5  ;;  %v2191_v39 = vshrl.u32 %v1870_v45, 16  ;;  %v2194_v57 = vshll.u32 %v1870_v45, 16 }
  0xae   : > { %v907_v18 = vrot.slane %v905_v58, 4  ;;  %v940_v58 = vshll.u32 %v6682_v49, 16  ;;  %v2176_v24 = vrot.slane %v2174_v0, 3  ;;  %v509_v25 = vshrl.u32 %v6404_v13, 16 }
  0xaf   : > { %v507_v54 = vor.u32 %v506_v42, %v503_v41  ;;  %v2193_v9 = vrot.slane %v2191_v39, 3  ;;  %v6156_v41 = vunpack.c.h.b16 %v6404_v13  ;;  %v514_v45 = vrot.slane %v512_v26, 5  ;;  %v6683_v39 = vld [vmem:[%s6860_s28 + $0xac] sm:$0xff]   ;;  %v6753_v26 = vld [vmem:[%s6860_s28 + $0xe0] sm:$0xff]  }
  0xb0   : > { %v7153_v63 = vpop.f32.mrf.mxu2  ;;  %v7155_v3 = vpop.f32.mrf.mxu3  ;;  %v908_v31 = vor.u32 %v907_v18, %v904_v16  ;;  %v2196_v16 = vrot.slane %v2194_v57, 4  ;;  %v1731_v18 = vshrl.u32 %v7008_v12, 16  ;;  %v942_v21 = vrot.slane %v940_v58, 4 }
  0xb1   : > { %v7157_v4 = vpop.f32.mrf.mxu0  ;;  %v7159_v5 = vpop.f32.mrf.mxu1  ;;  %v954_v10 = vshrl.u32 %v507_v54, 16  ;;  %v957_v30 = vshll.u32 %v507_v54, 16  ;;  %v511_v42 = vrot.slane %v509_v25, 4  ;;  %v2180_v50 = vor.u32 %v2179_v55, %v2176_v24 }
  0xb2   : > { %v909_v48 = vsel %vm677_vm0, %v900_v29, %v908_v31  ;;  %v1733_v29 = vrot.slane %v1731_v18, 4  ;;  %v1736_v31 = vrot.slane %v1734_v17, 5  ;;  %v2197_v34 = vor.u32 %v2196_v16, %v2193_v9 }
  0xb3   : > { %v956_v28 = vrot.slane %v954_v10, 3  ;;  %v959_v11 = vrot.slane %v957_v30, 4  ;;  %v419_v59 = vpack.c.b16 %v6156_v41, %v6156_v41  ;;  %v2226_v58 = vshrl.u32 %v1871_v32, 16  ;;  %v6104_v10 = vld [vmem:[%s8351_s1 + $0x198] sm:$0xff] }
  0xb4   : > { %v1737_v12 = vor.u32 %v1736_v31, %v1733_v29  ;;  %v2198_v54 = vsel %vm677_vm0, %v2189_v27, %v2197_v34  ;;  %v515_v61 = vor.u32 %v514_v45, %v511_v42  ;;  %v2234_v0 = vshrl.u32 %v1873_v56, 16  ;;  %v6112_v30 = vld [vmem:[%s8351_s1 + $0x1d8] sm:$0xff]  ;;  %4874 = vmatpush.bf16.msra.mxu2 %v6104_v10 }
  0xb5   : > { %v960_v51 = vor.u32 %v959_v11, %v956_v28  ;;  %v980_v8 = vshrl.u32 %v6683_v39, 16  ;;  %v983_v9 = vshll.u32 %v6683_v39, 16  ;;  %v988_v13 = vshrl.u32 %v419_v59, 16  ;;  %4963 = vmatpush.bf16.msra.mxu3 %v6112_v30  ;;  %v6405_v28 = vld [vmem:[%s6860_s28 + $0xc8] sm:$0xff]   ;;  %v6120_v56 = vld [vmem:[%s8351_s1 + $0x218] sm:$0xff] }
  0xb6   : > { %v2217_v1 = vshrl.u32 %v1737_v12, 16  ;;  %v991_v16 = vshll.u32 %v419_v59, 16  ;;  %v2220_v17 = vshll.u32 %v1737_v12, 16  ;;  %v2228_v19 = vrot.slane %v2226_v58, 3  ;;  %v6072_v12 = vld [vmem:[%s8351_s1 + $0x98] sm:$0xff]  ;;  %5052 = vmatpush.bf16.msra.mxu0 %v6120_v56 }
  0xb7   : > { %v2231_v24 = vrot.slane %v2229_v46, 4  ;;  %v2236_v25 = vrot.slane %v2234_v0, 3  ;;  %v1739_v55 = vshrl.u32 %v6753_v26, 16  ;;  %v1742_v27 = vshll.u32 %v6753_v26, 16  ;;  %3420 = vmatpush.bf16.msra.mxu1 %v6072_v12 }
  0xb8   : > { %v7171_v35 = vpop.f32.mrf.mxu2  ;;  %v7173_v62 = vpop.f32.mrf.mxu3  ;;  %v2219_v31 = vrot.slane %v2217_v1, 3  ;;  %v2239_v32 = vrot.slane %v2237_v2, 4  ;;  %v982_v33 = vrot.slane %v980_v8, 3  ;;  %v985_v34 = vrot.slane %v983_v9, 4  ;;  %v6684_v2 = vld [vmem:[%s6860_s28 + $0xc4] sm:$0xff]  }
  0xb9   : > { %v7175_v43 = vpop.f32.mrf.mxu0  ;;  %v7177_v44 = vpop.f32.mrf.mxu1  ;;  %v1874_v41 = vrot.slane %v6753_v26, 5  ;;  %v2222_v45 = vrot.slane %v2220_v17, 4  ;;  %v1741_v39 = vrot.slane %v1739_v55, 4  ;;  %v520_v59 = vshll.u32 %v6405_v28, 16  ;;  %v5577_v9 = vld [vmem:[%s6860_s28 + $0x100] sm:$0xf] }
  0xba   : > { %v2240_v58 = vor.u32 %v2239_v32, %v2236_v25  ;;  %v1026_v32 = vshll.u32 %v6684_v2, 16 }
  0xbb   : > { %v2223_v1 = vor.u32 %v2222_v45, %v2219_v31  ;;  %v522_v17 = vrot.slane %v520_v59, 5  ;;  %v1023_v31 = vshrl.u32 %v6684_v2, 16 }
  0xbc   : > { %2949 = vmatmul.bf16.gmra.mxu1 %v2137_v36  ;;  %3360 = vmatmul.bf16.gmra.mxu0 %v917_v37  ;;  %v943_v36 = vor.u32 %v942_v21, %v939_v20  ;;  %v951_v37 = vor.u32 %v950_v23, %v947_v22  ;;  %v997_v20 = vshrl.u32 %v515_v61, 16  ;;  %v1000_v21 = vshll.u32 %v515_v61, 16 }
  0xbd   : > { %3038 = vmatmul.bf16.gmra.mxu2 %v2155_v47  ;;  %3271 = vmatmul.bf16.gmra.mxu3 %v909_v48  ;;  %v5573_v47 = vld [vmem:[%s6860_s28 + $0xe8] sm:$0xf]  ;;  %v986_v61 = vor.u32 %v985_v34, %v982_v33 }
  0xbe   : > { %v952_v57 = vsel %vm677_vm0, %v943_v36, %v951_v37  ;;  %v1826_v60 = vunpack.c.l.b16 %v5573_v47  ;;  %v990_v36 = vrot.slane %v988_v13, 3  ;;  %v993_v37 = vrot.slane %v991_v16, 4 }
  0xbf   : > { %v999_v47 = vrot.slane %v997_v20, 3 }
  0xc0   : > { %v7184_v6 = vpop.f32.mrf.mxu2  ;;  %v7186_v7 = vpop.f32.mrf.mxu3  ;;  %v1842_v18 = vpack.c.b16 %v1826_v60, %v1826_v60  ;;  %v2232_v60 = vor.u32 %v2231_v24, %v2228_v19  ;;  %v994_v46 = vor.u32 %v993_v37, %v990_v36  ;;  %v2272_v24 = vshll.u32 %v1874_v41, 16 }
  0xc1   : > { %v7189_v14 = vpop.f32.mrf.mxu0  ;;  %v7191_v15 = vpop.f32.mrf.mxu1 }
  0xc2   : > { %v1875_v42 = vrot.slane %v1842_v18, 5  ;;  %v2241_v26 = vsel %vm677_vm0, %v2232_v60, %v2240_v58  ;;  %v995_v55 = vsel %vm677_vm0, %v986_v61, %v994_v46  ;;  %v2274_v45 = vrot.slane %v2272_v24, 4 }
  0xc4   : > { %v1876_v0 = vsel %vm628_vm1, %v1874_v41, %v1875_v42 }
  0xc5   : > { %v2277_v25 = vshrl.u32 %v1876_v0, 16 }
  0xc8   : > { %v7197_v48 = vpop.f32.mrf.mxu2  ;;  %v7199_v49 = vpop.f32.mrf.mxu3 }
  0xc9   : > { %v7201_v52 = vpop.f32.mrf.mxu0  ;;  %v7203_v53 = vpop.f32.mrf.mxu1 }
  0xcc   : > { %2954 = vmatmul.bf16.gmra.mxu1 %v2180_v50  ;;  %3365 = vmatmul.bf16.gmra.mxu0 %v960_v51  ;;  %v1002_v50 = vrot.slane %v1000_v21, 4  ;;  %v6160_v51 = vunpack.c.h.b16 %v6405_v28  ;;  %v2269_v21 = vshrl.u32 %v1874_v41, 16 }
  0xcd   : > { %3043 = vmatmul.bf16.gmra.mxu2 %v2198_v54  ;;  %3276 = vmatmul.bf16.gmra.mxu3 %v952_v57  ;;  %v1744_v54 = vrot.slane %v1742_v27, 5  ;;  %v517_v57 = vshrl.u32 %v6405_v28, 16  ;;  %v2280_v27 = vshll.u32 %v1876_v0, 16  ;;  %v1827_v28 = vunpack.c.l.b16 %v5577_v9 }
  0xce   : > { %v421_v8 = vpack.c.b16 %v6160_v51, %v6160_v51  ;;  %v1003_v13 = vor.u32 %v1002_v50, %v999_v47  ;;  %v2271_v41 = vrot.slane %v2269_v21, 3  ;;  %v2279_v47 = vrot.slane %v2277_v25, 3  ;;  %v6754_v51 = vld [vmem:[%s6860_s28 + $0xf8] sm:$0xff]  }
  0xcf   : > { %v1745_v16 = vor.u32 %v1744_v54, %v1741_v39  ;;  %v519_v18 = vrot.slane %v517_v57, 4  ;;  %v2282_v50 = vrot.slane %v2280_v27, 4  ;;  %v1747_v12 = vshrl.u32 %v6754_v51, 16 }
  0xd0   : > { %v7215_v22 = vpop.f32.mrf.mxu2  ;;  %v7217_v23 = vpop.f32.mrf.mxu3  ;;  %v1031_v33 = vshrl.u32 %v421_v8, 16  ;;  %v1034_v34 = vshll.u32 %v421_v8, 16  ;;  %v1750_v56 = vshll.u32 %v6754_v51, 16  ;;  %v1843_v39 = vpack.c.b16 %v1827_v28, %v1827_v28  ;;  %v5581_v28 = vld [vmem:[%s6860_s28 + $0x118] sm:$0xf] }
  0xd1   : > { %8355 = vst [vmem:[#allocation2_spill] sm:$0xff] %v7217_v23  ;;  %v7221_v11 = vpop.f32.mrf.mxu0  ;;  %v7223_v29 = vpop.f32.mrf.mxu1  ;;  %v2260_v36 = vshrl.u32 %v1745_v16, 16  ;;  %v523_v37 = vor.u32 %v522_v17, %v519_v18  ;;  %v2263_v42 = vshll.u32 %v1745_v16, 16  ;;  %v1025_v54 = vrot.slane %v1023_v31, 3 }
  0xd2   : > { %v1028_v57 = vrot.slane %v1026_v32, 4  ;;  %v1033_v59 = vrot.slane %v1031_v33, 3  ;;  %v1036_v60 = vrot.slane %v1034_v34, 4  ;;  %v2275_v16 = vor.u32 %v2274_v45, %v2271_v41  ;;  %v6685_v45 = vld [vmem:[%s6860_s28 + $0xdc] sm:$0xff]  }
  0xd3   : > { %v1040_v46 = vshrl.u32 %v523_v37, 16  ;;  %v1043_v0 = vshll.u32 %v523_v37, 16  ;;  %v2262_v9 = vrot.slane %v2260_v36, 3  ;;  %v1749_v18 = vrot.slane %v1747_v12, 4 }
  0xd4   : > { %v1752_v17 = vrot.slane %v1750_v56, 5  ;;  %v1877_v21 = vrot.slane %v6754_v51, 5  ;;  %v1878_v24 = vrot.slane %v1843_v39, 5  ;;  %v2283_v25 = vor.u32 %v2282_v50, %v2279_v47 }
  0xd5   : > { %v1042_v31 = vrot.slane %v1040_v46, 3  ;;  %v1045_v32 = vrot.slane %v1043_v0, 4  ;;  %v1828_v36 = vunpack.c.l.b16 %v5581_v28 }
  0xd6   : > { %v1753_v37 = vor.u32 %v1752_v17, %v1749_v18  ;;  %v2284_v41 = vsel %vm677_vm0, %v2275_v16, %v2283_v25  ;;  %v2315_v46 = vshll.u32 %v1877_v21, 16  ;;  %v1066_v17 = vshrl.u32 %v6685_v45, 16 }
  0xd7   : > { %v1046_v56 = vor.u32 %v1045_v32, %v1042_v31  ;;  %v1844_v18 = vpack.c.b16 %v1828_v36, %v1828_v36 }
  0xd8   : > { %v7234_v10 = vpop.f32.mrf.mxu2  ;;  %v7236_v30 = vpop.f32.mrf.mxu3  ;;  %v2306_v16 = vshll.u32 %v1753_v37, 16 }
  0xd9   : > { %8356 = vst [vmem:[#allocation3_spill] sm:$0xff] %v7236_v30  ;;  %v7238_v19 = vpop.f32.mrf.mxu0  ;;  %v7240_v20 = vpop.f32.mrf.mxu1 }
  0xda   : > { %v7275_v36 = vrot.slane %v2306_v16, 4 }
  0xdc   : > { %2959 = vmatmul.bf16.gmra.mxu1 %v2223_v1  ;;  %3370 = vmatmul.bf16.gmra.mxu0 %v1003_v13  ;;  %v6406_v1 = vld [vmem:[%s6860_s28 + $0xe0] sm:$0xff]   ;;  %v2265_v13 = vrot.slane %v2263_v42, 4 }
  0xdd   : > { %3048 = vmatmul.bf16.gmra.mxu2 %v2241_v26  ;;  %3281 = vmatmul.bf16.gmra.mxu3 %v995_v55  ;;  %v1029_v26 = vor.u32 %v1028_v57, %v1025_v54  ;;  %v1037_v55 = vor.u32 %v1036_v60, %v1033_v59  ;;  %v6164_v27 = vunpack.c.h.b16 %v6406_v1  ;;  %v525_v33 = vshrl.u32 %v6406_v1, 16 }
  0xde   : > { %v528_v34 = vshll.u32 %v6406_v1, 16  ;;  %v2266_v42 = vor.u32 %v2265_v13, %v2262_v9  ;;  %v2312_v60 = vshrl.u32 %v1877_v21, 16  ;;  %v2303_v13 = vshrl.u32 %v1753_v37, 16 }
  0xdf   : > { %v423_v51 = vpack.c.b16 %v6164_v27, %v6164_v27  ;;  %v1038_v50 = vsel %vm677_vm0, %v1029_v26, %v1037_v55  ;;  %v527_v39 = vrot.slane %v525_v33, 4  ;;  %v6755_v27 = vld [vmem:[%s6860_s28 + $0x110] sm:$0xff]  }
  0xe0   : > { %v7245_v58 = vpop.f32.mrf.mxu2  ;;  %v7247_v61 = vpop.f32.mrf.mxu3  ;;  %v530_v54 = vrot.slane %v528_v34, 5  ;;  %v1755_v28 = vshrl.u32 %v6755_v27, 16  ;;  %v1758_v31 = vshll.u32 %v6755_v27, 16  ;;  %v6103_v33 = vld [vmem:[%s8351_s1 + $0x190] sm:$0xff]  ;;  %v7273_v37 = vrot.slane %v2303_v13, 3 }
  0xe1   : > { %8357 = vst [vmem:[#allocation4_spill] sm:$0xff] %v7247_v61  ;;  %v7250_v2 = vpop.f32.mrf.mxu0  ;;  %v7252_v8 = vpop.f32.mrf.mxu1  ;;  %v1879_v61 = vsel %vm628_vm1, %v1877_v21, %v1878_v24  ;;  %v1069_v24 = vshll.u32 %v6685_v45, 16  ;;  %v1074_v25 = vshrl.u32 %v423_v51, 16  ;;  %v1077_v26 = vshll.u32 %v423_v51, 16  ;;  %v6111_v34 = vld [vmem:[%s8351_s1 + $0x1d0] sm:$0xff]  ;;  %4875 = vmatpush.bf16.msra.mxu2 %v6103_v33 }
  0xe2   : > { %v2320_v0 = vshrl.u32 %v1879_v61, 16  ;;  %v2323_v1 = vshll.u32 %v1879_v61, 16  ;;  %v531_v55 = vor.u32 %v530_v54, %v527_v39  ;;  %v2314_v21 = vrot.slane %v2312_v60, 3  ;;  %4964 = vmatpush.bf16.msra.mxu3 %v6111_v34 }
  0xe3   : > { %v2317_v61 = vrot.slane %v2315_v46, 4  ;;  %v1881_v45 = vrot.slane %v1844_v18, 5  ;;  %v1068_v51 = vrot.slane %v1066_v17, 3  ;;  %v1079_v39 = vrot.slane %v1077_v26, 4 }
  0xe4   : > { %v2322_v32 = vrot.slane %v2320_v0, 3  ;;  %v1083_v60 = vshrl.u32 %v531_v55, 16  ;;  %v1086_v46 = vshll.u32 %v531_v55, 16  ;;  %v1757_v0 = vrot.slane %v1755_v28, 4  ;;  %v6686_v55 = vld [vmem:[%s6860_s28 + $0xf4] sm:$0xff]  }
  0xe5   : > { %v2318_v30 = vor.u32 %v2317_v61, %v2314_v21  ;;  %v6119_v28 = vld [vmem:[%s8351_s1 + $0x210] sm:$0xff] }
  0xe6   : > { %5053 = vmatpush.bf16.msra.mxu0 %v6119_v28 }
  0xe8   : > { %v7258_v12 = vpop.f32.mrf.mxu2  ;;  %v7260_v47 = vpop.f32.mrf.mxu3 }
  0xe9   : > { %8358 = vst [vmem:[#allocation5_spill] sm:$0xff] %v7260_v47  ;;  %v2925_v57 = vpop.f32.mrf.mxu1  ;;  %v7263_v59 = vpop.f32.mrf.mxu0 }
  0xea   : > { %v2926_v9 = vadd.f32 %v2925_v57, %v7137_v38  ;;  %v2325_v38 = vrot.slane %v2323_v1, 4  ;;  %v1760_v1 = vrot.slane %v1758_v31, 5  ;;  %v1088_v31 = vrot.slane %v1086_v46, 4 }
  0xec   : > { %2964 = vmatmul.bf16.gmra.mxu1 %v2266_v42  ;;  %3375 = vmatmul.bf16.gmra.mxu0 %v1046_v56  ;;  %v1880_v42 = vrot.slane %v6755_v27, 5  ;;  %v1076_v56 = vrot.slane %v1074_v25, 3  ;;  %v2326_v27 = vor.u32 %v2325_v38, %v2322_v32  ;;  %v1761_v21 = vor.u32 %v1760_v1, %v1757_v0 }
  0xed   : > { %3053 = vmatmul.bf16.gmra.mxu2 %v2284_v41  ;;  %3286 = vmatmul.bf16.gmra.mxu3 %v1038_v50  ;;  %v6407_v41 = vld [vmem:[%s6860_s28 + $0xf8] sm:$0xff]   ;;  %v1071_v50 = vrot.slane %v1069_v24, 4 }
  0xee   : > { %v6168_v18 = vunpack.c.h.b16 %v6407_v41  ;;  %v1882_v24 = vsel %vm628_vm1, %v1880_v42, %v1881_v45  ;;  %v533_v25 = vshrl.u32 %v6407_v41, 16  ;;  %v536_v26 = vshll.u32 %v6407_v41, 16  ;;  %v5585_v45 = vld [vmem:[%s6860_s28 + $0x130] sm:$0xf] }
  0xef   : > { %v1072_v34 = vor.u32 %v1071_v50, %v1068_v51  ;;  %v1080_v23 = vor.u32 %v1079_v39, %v1076_v56  ;;  %v2355_v61 = vshrl.u32 %v1880_v42, 16  ;;  %v2358_v32 = vshll.u32 %v1880_v42, 16 }
  0xf0   : > { %v3014_v54 = vpop.f32.mrf.mxu2  ;;  %v3247_v57 = vpop.f32.mrf.mxu3  ;;  %v2363_v38 = vshrl.u32 %v1882_v24, 16  ;;  %v2327_v51 = vsel %vm677_vm0, %v2318_v30, %v2326_v27  ;;  %v425_v50 = vpack.c.b16 %v6168_v18, %v6168_v18  ;;  %v535_v56 = vrot.slane %v533_v25, 4 }
  0xf1   : > { %v3015_v13 = vadd.f32 %v3014_v54, %v2926_v9  ;;  %v2927_v47 = vpop.f32.mrf.mxu1  ;;  %v3338_v16 = vpop.f32.mrf.mxu0  ;;  %v6071_v9 = vld [vmem:[%s8351_s1 + $0x90] sm:$0xff]  ;;  %v538_v39 = vrot.slane %v536_v26, 5  ;;  %v1081_v54 = vsel %vm677_vm0, %v1072_v34, %v1080_v23  ;;  %v2346_v0 = vshrl.u32 %v1761_v21, 16 }
  0xf2   : > { %v2928_v17 = vadd.f32 %v2927_v47, %v7157_v4  ;;  %v2309_v4 = vor.u32 %v7275_v36, %v7273_v37  ;;  %v1085_v47 = vrot.slane %v1083_v60, 3  ;;  %3421 = vmatpush.bf16.msra.mxu1 %v6071_v9  ;;  %v2366_v37 = vshll.u32 %v1882_v24, 16 }
  0xf3   : > { %v3248_v33 = vadd.f32 %v3247_v57, %v3015_v13  ;;  %v1109_v36 = vshrl.u32 %v6686_v55, 16  ;;  %v1112_v57 = vshll.u32 %v6686_v55, 16  ;;  %v2349_v1 = vshll.u32 %v1761_v21, 16 }
  0xf4   : > { %v1089_v42 = vor.u32 %v1088_v31, %v1085_v47  ;;  %v1829_v13 = vunpack.c.l.b16 %v5585_v45  ;;  %v2357_v28 = vrot.slane %v2355_v61, 3  ;;  %v2360_v30 = vrot.slane %v2358_v32, 4  ;;  %v6756_v31 = vld [vmem:[%s6860_s28 + $0x128] sm:$0xff]  }
  0xf5   : > { %v7291_v41 = vadd.f32 %v7263_v59, %v3248_v33  ;;  %v2365_v27 = vrot.slane %v2363_v38, 3  ;;  %v1117_v25 = vshrl.u32 %v425_v50, 16  ;;  %v1120_v23 = vshll.u32 %v425_v50, 16 }
  0xf6   : > { %v539_v24 = vor.u32 %v538_v39, %v535_v56  ;;  %v2368_v34 = vrot.slane %v2366_v37, 4  ;;  %v1111_v55 = vrot.slane %v1109_v36, 3  ;;  %v1114_v47 = vrot.slane %v1112_v57, 4  ;;  %v6408_v39 = vld [vmem:[%s6860_s28 + $0x110] sm:$0xff]  }
  0xf7   : > { %v1766_v21 = vshll.u32 %v6756_v31, 16  ;;  %v1845_v45 = vpack.c.b16 %v1829_v13, %v1829_v13  ;;  %v7297_v61 = vrot.slane %v2346_v0, 3  ;;  %v1122_v38 = vrot.slane %v1120_v23, 4 }
  0xf8   : > { %v3016_v60 = vpop.f32.mrf.mxu2  ;;  %v3249_v46 = vpop.f32.mrf.mxu3  ;;  %v1126_v50 = vshrl.u32 %v539_v24, 16  ;;  %v1129_v56 = vshll.u32 %v539_v24, 16  ;;  %v2351_v37 = vrot.slane %v2349_v1, 4  ;;  %v2361_v36 = vor.u32 %v2360_v30, %v2357_v28 }
  0xf9   : > { %v3017_v9 = vadd.f32 %v3016_v60, %v2928_v17  ;;  %v2930_v59 = vpop.f32.mrf.mxu1  ;;  %v3341_v33 = vpop.f32.mrf.mxu0  ;;  %v1763_v17 = vshrl.u32 %v6756_v31, 16  ;;  %v2369_v57 = vor.u32 %v2368_v34, %v2365_v27  ;;  %v1884_v0 = vrot.slane %v1845_v45, 5  ;;  %v5589_v34 = vld [vmem:[%s6860_s28 + $0x148] sm:$0xf] }
  0xfa   : > { %v2931_v18 = vadd.f32 %v2930_v59, %v7175_v43  ;;  %v1119_v43 = vrot.slane %v1117_v25, 3  ;;  %v6172_v59 = vunpack.c.h.b16 %v6408_v39  ;;  %v541_v25 = vshrl.u32 %v6408_v39, 16 }
  0xfb   : > { %v3250_v26 = vadd.f32 %v3249_v46, %v3017_v9  ;;  %v544_v23 = vshll.u32 %v6408_v39, 16  ;;  %v1128_v28 = vrot.slane %v1126_v50, 3  ;;  %v1131_v30 = vrot.slane %v1129_v56, 4 }
  0xfc   : > { %2969 = vmatmul.bf16.gmra.mxu1 %v2309_v4  ;;  %3380 = vmatmul.bf16.gmra.mxu0 %v1089_v42  ;;  %v1115_v4 = vor.u32 %v1114_v47, %v1111_v55  ;;  %v1765_v42 = vrot.slane %v1763_v17, 4  ;;  %v1123_v1 = vor.u32 %v1122_v38, %v1119_v43  ;;  %v2352_v55 = vor.u32 %v2351_v37, %v7297_v61 }
  0xfd   : > { %3058 = vmatmul.bf16.gmra.mxu2 %v2327_v51  ;;  %3291 = vmatmul.bf16.gmra.mxu3 %v1081_v54  ;;  %v7299_v32 = vadd.f32 %v3338_v16, %v3250_v26  ;;  %v1768_v51 = vrot.slane %v1766_v21, 5  ;;  %v1883_v54 = vrot.slane %v6756_v31, 5  ;;  %v6687_v26 = vld [vmem:[%s6860_s28 + $0x10c] sm:$0xff]   ;;  %v2370_v47 = vsel %vm677_vm0, %v2361_v36, %v2369_v57 }
  0xfe   : > { %v427_v17 = vpack.c.b16 %v6172_v59, %v6172_v59  ;;  %v543_v21 = vrot.slane %v541_v25, 4  ;;  %v546_v45 = vrot.slane %v544_v23, 5  ;;  %v1132_v43 = vor.u32 %v1131_v30, %v1128_v28 }
  0xff   : > { %8359 = vst [vmem:[#allocation6_spill] sm:$0xff] %v7299_v32  ;;  %v1769_v31 = vor.u32 %v1768_v51, %v1765_v42  ;;  %v2398_v38 = vshrl.u32 %v1883_v54, 16  ;;  %v1830_v50 = vunpack.c.l.b16 %v5589_v34  ;;  %v2401_v56 = vshll.u32 %v1883_v54, 16  ;;  %v6757_v51 = vld [vmem:[%s6860_s28 + $0x140] sm:$0xff]  }
 0x100   : > { %v3019_v60 = vpop.f32.mrf.mxu2  ;;  %v3252_v46 = vpop.f32.mrf.mxu3  ;;  %v1152_v61 = vshrl.u32 %v6687_v26, 16  ;;  %v1155_v42 = vshll.u32 %v6687_v26, 16  ;;  %v1160_v25 = vshrl.u32 %v427_v17, 16  ;;  %v547_v23 = vor.u32 %v546_v45, %v543_v21 }
 0x101   : > { %v3020_v13 = vadd.f32 %v3019_v60, %v2931_v18  ;;  %v2932_v16 = vpop.f32.mrf.mxu1  ;;  %v3343_v9 = vpop.f32.mrf.mxu0  ;;  %v1885_v18 = vsel %vm628_vm1, %v1883_v54, %v1884_v0  ;;  %v2389_v57 = vshrl.u32 %v1769_v31, 16  ;;  %v1771_v0 = vshrl.u32 %v6757_v51, 16 }
 0x102   : > { %v2933_v24 = vadd.f32 %v2932_v16, %v7189_v14  ;;  %v1124_v14 = vsel %vm677_vm0, %v1115_v4, %v1123_v1  ;;  %v2406_v60 = vshrl.u32 %v1885_v18, 16  ;;  %v1163_v4 = vshll.u32 %v427_v17, 16 }
 0x103   : > { %v3253_v27 = vadd.f32 %v3252_v46, %v3020_v13  ;;  %v2409_v46 = vshll.u32 %v1885_v18, 16  ;;  %v1774_v13 = vshll.u32 %v6757_v51, 16  ;;  %v2392_v54 = vshll.u32 %v1769_v31, 16  ;;  %v6102_v31 = vld [vmem:[%s8351_s1 + $0x188] sm:$0xff] }
 0x104   : > { %v2400_v28 = vrot.slane %v2398_v38, 3  ;;  %v1846_v30 = vpack.c.b16 %v1830_v50, %v1830_v50  ;;  %v2403_v34 = vrot.slane %v2401_v56, 4  ;;  %v2408_v18 = vrot.slane %v2406_v60, 3  ;;  %v6110_v38 = vld [vmem:[%s8351_s1 + $0x1c8] sm:$0xff]  ;;  %4876 = vmatpush.bf16.msra.mxu2 %v6102_v31 }
 0x105   : > { %v7308_v39 = vadd.f32 %v3341_v33, %v3253_v27  ;;  %v2411_v26 = vrot.slane %v2409_v46, 4  ;;  %v1776_v32 = vrot.slane %v1774_v13, 5  ;;  %v1162_v17 = vrot.slane %v1160_v25, 3  ;;  %4965 = vmatpush.bf16.msra.mxu3 %v6110_v38 }
 0x106   : > { %v1165_v21 = vrot.slane %v1163_v4, 4  ;;  %v1169_v45 = vshrl.u32 %v547_v23, 16  ;;  %v1886_v50 = vrot.slane %v6757_v51, 5  ;;  %v1887_v56 = vrot.slane %v1846_v30, 5  ;;  %v6688_v30 = vld [vmem:[%s6860_s28 + $0x124] sm:$0xff]  }
 0x107   : > { %8360 = vst [vmem:[#allocation7_spill] sm:$0xff] %v7308_v39  ;;  %v1154_v39 = vrot.slane %v1152_v61, 3  ;;  %v2404_v60 = vor.u32 %v2403_v34, %v2400_v28 }
 0x108   : > { %v3021_v37 = vpop.f32.mrf.mxu2  ;;  %v3254_v36 = vpop.f32.mrf.mxu3  ;;  %v1171_v4 = vrot.slane %v1169_v45, 3  ;;  %v1888_v28 = vsel %vm628_vm1, %v1886_v50, %v1887_v56  ;;  %v1198_v56 = vshll.u32 %v6688_v30, 16 }
 0x109   : > { %v3022_v16 = vadd.f32 %v3021_v37, %v2933_v24  ;;  %v2935_v59 = vpop.f32.mrf.mxu1  ;;  %v7312_v33 = vpop.f32.mrf.mxu0  ;;  %v1157_v24 = vrot.slane %v1155_v42, 4  ;;  %v1773_v37 = vrot.slane %v1771_v0, 4 }
 0x10a   : > { %v2936_v1 = vadd.f32 %v2935_v59, %v7201_v52  ;;  %v6409_v52 = vld [vmem:[%s6860_s28 + $0x128] sm:$0xff]  }
 0x10b   : > { %v3255_v27 = vadd.f32 %v3254_v36, %v3022_v16  ;;  %v2412_v36 = vor.u32 %v2411_v26, %v2408_v18  ;;  %v1777_v42 = vor.u32 %v1776_v32, %v1773_v37  ;;  %v549_v0 = vshrl.u32 %v6409_v52, 16  ;;  %v5593_v16 = vld [vmem:[%s6860_s28 + $0x160] sm:$0xf] }
 0x10c   : > { %2974 = vmatmul.bf16.gmra.mxu1 %v2352_v55  ;;  %3385 = vmatmul.bf16.gmra.mxu0 %v1132_v43  ;;  %v1172_v43 = vshll.u32 %v547_v23, 16  ;;  %v552_v13 = vshll.u32 %v6409_v52, 16  ;;  %v1158_v51 = vor.u32 %v1157_v24, %v1154_v39  ;;  %v2441_v18 = vshrl.u32 %v1886_v50, 16  ;;  %v6118_v39 = vld [vmem:[%s8351_s1 + $0x208] sm:$0xff] }
 0x10d   : > { %3063 = vmatmul.bf16.gmra.mxu2 %v2370_v47  ;;  %3296 = vmatmul.bf16.gmra.mxu3 %v1124_v14  ;;  %v7322_v55 = vadd.f32 %v3343_v9, %v3255_v27  ;;  %v7324_v47 = vrot.slane %v2389_v57, 3  ;;  %v7326_v14 = vrot.slane %v2392_v54, 4  ;;  %v1166_v57 = vor.u32 %v1165_v21, %v1162_v17 }
 0x10e   : > { %v1174_v54 = vrot.slane %v1172_v43, 4  ;;  %v6176_v27 = vunpack.c.h.b16 %v6409_v52  ;;  %v2444_v32 = vshll.u32 %v1886_v50, 16  ;;  %v1831_v26 = vunpack.c.l.b16 %v5593_v16  ;;  %5054 = vmatpush.bf16.msra.mxu0 %v6118_v39 }
 0x10f   : > { %v2432_v24 = vshrl.u32 %v1777_v42, 16  ;;  %v2435_v37 = vshll.u32 %v1777_v42, 16  ;;  %v554_v17 = vrot.slane %v552_v13, 5  ;;  %v2395_v21 = vor.u32 %v7326_v14, %v7324_v47 }
 0x110   : > { %v3024_v46 = vpop.f32.mrf.mxu2  ;;  %v3257_v61 = vpop.f32.mrf.mxu3  ;;  %v2413_v45 = vsel %vm677_vm0, %v2404_v60, %v2412_v36  ;;  %v2449_v52 = vshrl.u32 %v1888_v28, 16  ;;  %v1167_v38 = vsel %vm677_vm0, %v1158_v51, %v1166_v57  ;;  %v2452_v43 = vshll.u32 %v1888_v28, 16  ;;  %v6758_v57 = vld [vmem:[%s6860_s28 + $0x158] sm:$0xff]   ;;  %v6410_v28 = vld [vmem:[%s6860_s28 + $0x140] sm:$0xff]  }
 0x111   : > { %v3025_v9 = vadd.f32 %v3024_v46, %v2936_v1  ;;  %v2937_v59 = vpop.f32.mrf.mxu1  ;;  %v7329_v25 = vpop.f32.mrf.mxu0  ;;  %v6070_v1 = vld [vmem:[%s8351_s1 + $0x88] sm:$0xff]  ;;  %v1195_v50 = vshrl.u32 %v6688_v30, 16  ;;  %v1175_v46 = vor.u32 %v1174_v54, %v1171_v4  ;;  %v429_v42 = vpack.c.b16 %v6176_v27, %v6176_v27 }
 0x112   : > { %v2938_v23 = vadd.f32 %v2937_v59, %v7221_v11  ;;  %v551_v11 = vrot.slane %v549_v0, 4  ;;  %3422 = vmatpush.bf16.msra.mxu1 %v6070_v1  ;;  %v1847_v47 = vpack.c.b16 %v1831_v26, %v1831_v26  ;;  %v7349_v36 = vrot.slane %v2432_v24, 3 }
 0x113   : > { %v3258_v34 = vadd.f32 %v3257_v61, %v3025_v9  ;;  %v7347_v61 = vrot.slane %v2441_v18, 3  ;;  %v7351_v0 = vrot.slane %v2435_v37, 4  ;;  %v7355_v51 = vrot.slane %v2449_v52, 3 }
 0x114   : > { %v555_v13 = vor.u32 %v554_v17, %v551_v11  ;;  %v1779_v4 = vshrl.u32 %v6758_v57, 16  ;;  %v1782_v54 = vshll.u32 %v6758_v57, 16  ;;  %v7360_v27 = vrot.slane %v2452_v43, 4 }
 0x115   : > { %v7344_v31 = vadd.f32 %v7312_v33, %v3258_v34  ;;  %v7353_v33 = vrot.slane %v2444_v32, 4  ;;  %v7362_v34 = vrot.slane %v1195_v50, 3  ;;  %v7364_v18 = vrot.slane %v1198_v56, 4 }
 0x116   : > { %v1203_v1 = vshrl.u32 %v429_v42, 16  ;;  %v1889_v39 = vrot.slane %v6758_v57, 5  ;;  %v1206_v26 = vshll.u32 %v429_v42, 16  ;;  %v1212_v24 = vshrl.u32 %v555_v13, 16 }
 0x117   : > { %8361 = vst [vmem:[#allocation8_spill] sm:$0xff] %v7344_v31  ;;  %v1215_v37 = vshll.u32 %v555_v13, 16  ;;  %v6180_v11 = vunpack.c.h.b16 %v6410_v28  ;;  %v1784_v17 = vrot.slane %v1782_v54, 5  ;;  %v2447_v50 = vor.u32 %v7353_v33, %v7347_v61 }
 0x118   : > { %v3026_v14 = vpop.f32.mrf.mxu2  ;;  %v3259_v60 = vpop.f32.mrf.mxu3  ;;  %v1201_v56 = vor.u32 %v7364_v18, %v7362_v34  ;;  %v557_v57 = vshrl.u32 %v6410_v28, 16  ;;  %v2484_v54 = vshrl.u32 %v1889_v39, 16  ;;  %v5597_v18 = vld [vmem:[%s6860_s28 + $0x178] sm:$0xf] }
 0x119   : > { %v3027_v16 = vadd.f32 %v3026_v14, %v2938_v23  ;;  %v2940_v9 = vpop.f32.mrf.mxu1  ;;  %v3351_v59 = vpop.f32.mrf.mxu0  ;;  %v1890_v23 = vrot.slane %v1847_v47, 5  ;;  %v1208_v47 = vrot.slane %v1206_v26, 4  ;;  %v1214_v14 = vrot.slane %v1212_v24, 3 }
 0x11a   : > { %v2941_v30 = vadd.f32 %v2940_v9, %v7238_v19  ;;  %v1781_v19 = vrot.slane %v1779_v4, 4  ;;  %v431_v13 = vpack.c.b16 %v6180_v11, %v6180_v11 }
 0x11b   : > { %v3260_v32 = vadd.f32 %v3259_v60, %v3027_v16  ;;  %v1217_v60 = vrot.slane %v1215_v37, 4 }
 0x11c   : > { %2979 = vmatmul.bf16.gmra.mxu1 %v2395_v21  ;;  %3390 = vmatmul.bf16.gmra.mxu0 %v1175_v46  ;;  %v2455_v21 = vor.u32 %v7360_v27, %v7355_v51  ;;  %v1205_v46 = vrot.slane %v1203_v1, 3  ;;  %v1785_v33 = vor.u32 %v1784_v17, %v1781_v19  ;;  %v560_v51 = vshll.u32 %v6410_v28, 16 }
 0x11d   : > { %3068 = vmatmul.bf16.gmra.mxu2 %v2413_v45  ;;  %3301 = vmatmul.bf16.gmra.mxu3 %v1167_v38  ;;  %v7367_v52 = vadd.f32 %v7329_v25, %v3260_v32  ;;  %v1891_v45 = vsel %vm628_vm1, %v1889_v39, %v1890_v23  ;;  %v6689_v38 = vld [vmem:[%s6860_s28 + $0x13c] sm:$0xff]   ;;  %v2487_v27 = vshll.u32 %v1889_v39, 16  ;;  %v1218_v24 = vor.u32 %v1217_v60, %v1214_v14  ;;  %v6759_v14 = vld [vmem:[%s6860_s28 + $0x170] sm:$0xff]  }
 0x11e   : > { %v2492_v34 = vshrl.u32 %v1891_v45, 16  ;;  %v2495_v1 = vshll.u32 %v1891_v45, 16  ;;  %v1238_v23 = vshrl.u32 %v6689_v38, 16  ;;  %v1241_v43 = vshll.u32 %v6689_v38, 16 }
 0x11f   : > { %8362 = vst [vmem:[#allocation9_spill] sm:$0xff] %v7367_v52  ;;  %v1209_v26 = vor.u32 %v1208_v47, %v1205_v46  ;;  %v1246_v37 = vshrl.u32 %v431_v13, 16  ;;  %v1249_v11 = vshll.u32 %v431_v13, 16  ;;  %v1832_v19 = vunpack.c.l.b16 %v5597_v18 }
 0x120   : > { %v3029_v42 = vpop.f32.mrf.mxu2  ;;  %v3262_v25 = vpop.f32.mrf.mxu3  ;;  %v2475_v28 = vshrl.u32 %v1785_v33, 16  ;;  %v2489_v39 = vrot.slane %v2487_v27, 4  ;;  %v2494_v52 = vrot.slane %v2492_v34, 3  ;;  %v2497_v31 = vrot.slane %v2495_v1, 4 }
 0x121   : > { %v3030_v16 = vadd.f32 %v3029_v42, %v2941_v30  ;;  %v2942_v9 = vpop.f32.mrf.mxu1  ;;  %v3353_v61 = vpop.f32.mrf.mxu0  ;;  %v559_v30 = vrot.slane %v557_v57, 4  ;;  %v562_v42 = vrot.slane %v560_v51, 5  ;;  %v1243_v45 = vrot.slane %v1241_v43, 4 }
 0x122   : > { %v2943_v4 = vadd.f32 %v2942_v9, %v7250_v2  ;;  %v2478_v2 = vshll.u32 %v1785_v33, 16  ;;  %v2486_v9 = vrot.slane %v2484_v54, 3  ;;  %v1248_v46 = vrot.slane %v1246_v37, 3  ;;  %v6411_v37 = vld [vmem:[%s6860_s28 + $0x158] sm:$0xff]  }
 0x123   : > { %v3263_v32 = vadd.f32 %v3262_v25, %v3030_v16  ;;  %v1240_v25 = vrot.slane %v1238_v23, 3  ;;  %v1251_v47 = vrot.slane %v1249_v11, 4  ;;  %v1787_v60 = vshrl.u32 %v6759_v14, 16 }
 0x124   : > { %v1790_v13 = vshll.u32 %v6759_v14, 16  ;;  %v563_v18 = vor.u32 %v562_v42, %v559_v30  ;;  %v1848_v33 = vpack.c.b16 %v1832_v19, %v1832_v19  ;;  %v2456_v54 = vsel %vm677_vm0, %v2447_v50, %v2455_v21 }
 0x125   : > { %v7381_v17 = vadd.f32 %v3351_v59, %v3263_v32  ;;  %v1210_v27 = vsel %vm677_vm0, %v1201_v56, %v1209_v26  ;;  %v7388_v34 = vrot.slane %v2475_v28, 3  ;;  %v7390_v32 = vrot.slane %v2478_v2, 4 }
 0x126   : > { %v2490_v1 = vor.u32 %v2489_v39, %v2486_v9  ;;  %v2498_v23 = vor.u32 %v2497_v31, %v2494_v52  ;;  %v1244_v11 = vor.u32 %v1243_v45, %v1240_v25  ;;  %v1252_v30 = vor.u32 %v1251_v47, %v1248_v46  ;;  %v6101_v31 = vld [vmem:[%s8351_s1 + $0x180] sm:$0xff] }
 0x127   : > { %v1789_v42 = vrot.slane %v1787_v60, 4  ;;  %v1792_v19 = vrot.slane %v1790_v13, 5  ;;  %v1255_v50 = vshrl.u32 %v563_v18, 16  ;;  %v1892_v21 = vrot.slane %v6759_v14, 5  ;;  %4877 = vmatpush.bf16.msra.mxu2 %v6101_v31  ;;  %v6690_v60 = vld [vmem:[%s6860_s28 + $0x154] sm:$0xff]  }
 0x128   : > { %v3031_v16 = vpop.f32.mrf.mxu2  ;;  %v3264_v38 = vpop.f32.mrf.mxu3  ;;  %v1893_v56 = vrot.slane %v1848_v33, 5  ;;  %v1258_v52 = vshll.u32 %v563_v18, 16  ;;  %v565_v26 = vshrl.u32 %v6411_v37, 16  ;;  %v2481_v39 = vor.u32 %v7390_v32, %v7388_v34  ;;  %v6069_v34 = vld [vmem:[%s8351_s1 + $0x80] sm:$0xff] }
 0x129   : > { %v3032_v57 = vadd.f32 %v3031_v16, %v2943_v4  ;;  %v2945_v51 = vpop.f32.mrf.mxu1  ;;  %v7384_v59 = vpop.f32.mrf.mxu0  ;;  %v8363_v4 = vor.u32 %v7351_v0, %v7349_v36  ;;  %v6109_v36 = vld [vmem:[%s8351_s1 + $0x1c0] sm:$0xff]  ;;  %v7408_v25 = vsel %vm677_vm0, %v2490_v1, %v2498_v23  ;;  %v1793_v45 = vor.u32 %v1792_v19, %v1789_v42  ;;  %v5601_v16 = vld [vmem:[%s6860_s28 + $0x190] sm:$0xf]  ;;  %3423 = vmatpush.bf16.msra.mxu1 %v6069_v34 }
 0x12a   : > { %v2946_v28 = vadd.f32 %v2945_v51, %v7139_v40  ;;  %4966 = vmatpush.bf16.msra.mxu3 %v6109_v36  ;;  %v1253_v47 = vsel %vm677_vm0, %v1244_v11, %v1252_v30  ;;  %v1257_v14 = vrot.slane %v1255_v50, 3  ;;  %v1894_v40 = vsel %vm628_vm1, %v1892_v21, %v1893_v56  ;;  %v6760_v30 = vld [vmem:[%s6860_s28 + $0x188] sm:$0xff]  }
 0x12b   : > { %v3265_v43 = vadd.f32 %v3264_v38, %v3032_v57  ;;  %v1260_v13 = vrot.slane %v1258_v52, 4  ;;  %v6184_v57 = vunpack.c.h.b16 %v6411_v37  ;;  %v567_v51 = vrot.slane %v565_v26, 4 }
 0x12c   : > { %2984 = vmatmul.bf16.gmra.mxu1 %v8363_v4  ;;  %3395 = vmatmul.bf16.gmra.mxu0 %v1218_v24  ;;  %v568_v24 = vshll.u32 %v6411_v37, 16  ;;  %v1833_v32 = vunpack.c.l.b16 %v5601_v16  ;;  %v2518_v1 = vshrl.u32 %v1793_v45, 16  ;;  %v2521_v23 = vshll.u32 %v1793_v45, 16 }
 0x12d   : > { %3073 = vmatmul.bf16.gmra.mxu2 %v2456_v54  ;;  %3306 = vmatmul.bf16.gmra.mxu3 %v1210_v27  ;;  %v7402_v0 = vadd.f32 %v3353_v61, %v3265_v43  ;;  %v2527_v54 = vshrl.u32 %v1892_v21, 16  ;;  %v2530_v27 = vshll.u32 %v1892_v21, 16  ;;  %v6117_v43 = vld [vmem:[%s8351_s1 + $0x200] sm:$0xff]  ;;  %v2535_v4 = vshrl.u32 %v1894_v40, 16 }
 0x12e   : > { %v570_v18 = vrot.slane %v568_v24, 5  ;;  %v2538_v11 = vshll.u32 %v1894_v40, 16  ;;  %v1281_v37 = vshrl.u32 %v6690_v60, 16  ;;  %5055 = vmatpush.bf16.msra.mxu0 %v6117_v43  ;;  %v1795_v42 = vshrl.u32 %v6760_v30, 16 }
 0x12f   : > { %v1798_v19 = vshll.u32 %v6760_v30, 16  ;;  %v1261_v21 = vor.u32 %v1260_v13, %v1257_v14  ;;  %v433_v56 = vpack.c.b16 %v6184_v57, %v6184_v57  ;;  %v1284_v31 = vshll.u32 %v6690_v60, 16  ;;  %v6412_v14 = vld [vmem:[%s6860_s28 + $0x170] sm:$0xff]  }
 0x130   : > { %v3034_v2 = vpop.f32.mrf.mxu2  ;;  %v3267_v9 = vpop.f32.mrf.mxu3  ;;  %v571_v36 = vor.u32 %v570_v18, %v567_v51  ;;  %v7427_v26 = vrot.slane %v2527_v54, 3  ;;  %v7429_v24 = vrot.slane %v2530_v27, 4  ;;  %v7431_v45 = vrot.slane %v2518_v1, 3 }
 0x131   : > { %v3035_v61 = vadd.f32 %v3034_v2, %v2946_v28  ;;  %v2947_v38 = vpop.f32.mrf.mxu1  ;;  %v7411_v46 = vpop.f32.mrf.mxu0  ;;  %v1849_v28 = vpack.c.b16 %v1833_v32, %v1833_v32  ;;  %v7433_v16 = vrot.slane %v2521_v23, 4  ;;  %v1800_v57 = vrot.slane %v1798_v19, 5 }
 0x132   : > { %v2948_v52 = vadd.f32 %v2947_v38, %v7159_v5  ;;  %v7440_v5 = vrot.slane %v1281_v37, 3  ;;  %v1797_v38 = vrot.slane %v1795_v42, 4  ;;  %v7442_v51 = vrot.slane %v1284_v31, 4  ;;  %v247_v31 = vld [vmem:[%s6860_s28 + $0x10] sm:$0xf] }
 0x133   : > { %v3268_v33 = vadd.f32 %v3267_v9, %v3035_v61  ;;  %v7435_v61 = vrot.slane %v2535_v4, 3  ;;  %v1289_v18 = vshrl.u32 %v433_v56, 16  ;;  %v1298_v54 = vshrl.u32 %v571_v36, 16 }
 0x134   : > { %v1895_v34 = vrot.slane %v6760_v30, 5  ;;  %v1896_v43 = vrot.slane %v1849_v28, 5  ;;  %v6188_v32 = vunpack.c.h.b16 %v6412_v14  ;;  %v1301_v23 = vshll.u32 %v571_v36, 16 }
 0x135   : > { %v7424_v50 = vadd.f32 %v7384_v59, %v3268_v33  ;;  %v7437_v59 = vrot.slane %v2538_v11, 4  ;;  %v1292_v33 = vshll.u32 %v433_v56, 16  ;;  %v573_v4 = vshrl.u32 %v6412_v14, 16 }
 0x136   : > { %v576_v11 = vshll.u32 %v6412_v14, 16  ;;  %v1801_v42 = vor.u32 %v1800_v57, %v1797_v38  ;;  %v1287_v19 = vor.u32 %v7442_v51, %v7440_v5  ;;  %v435_v28 = vpack.c.b16 %v6188_v32, %v6188_v32 }
 0x137   : > { %v1294_v56 = vrot.slane %v1292_v33, 4  ;;  %v575_v14 = vrot.slane %v573_v4, 4  ;;  %v2570_v51 = vshrl.u32 %v1895_v34, 16  ;;  %v5845_v4 = vld [vmem:[%s6860_s28 + $0x40] sm:$0xf] }
 0x138   : > { %v3036_v2 = vpop.f32.mrf.mxu2  ;;  %v3269_v9 = vpop.f32.mrf.mxu3  ;;  %v2561_v57 = vshrl.u32 %v1801_v42, 16 }
 0x139   : > { %v3037_v40 = vadd.f32 %v3036_v2, %v2948_v52  ;;  %v2950_v60 = vpop.f32.mrf.mxu1  ;;  %v3361_v13 = vpop.f32.mrf.mxu0  ;;  %v6691_v52 = vld [vmem:[%s6860_s28 + $0x16c] sm:$0xff]   ;;  %v2572_v1 = vrot.slane %v2570_v51, 3 }
 0x13a   : > { %v2951_v36 = vadd.f32 %v2950_v60, %v7177_v44  ;;  %v2573_v44 = vshll.u32 %v1895_v34, 16  ;;  %v1327_v32 = vshll.u32 %v6691_v52, 16  ;;  %v7466_v37 = vrot.slane %v2561_v57, 3  ;;  %v6761_v57 = vld [vmem:[%s6860_s28 + $0x8] sm:$0xff]  }
 0x13b   : > { %v3270_v27 = vadd.f32 %v3269_v9, %v3037_v40  ;;  %v1303_v9 = vrot.slane %v1301_v23, 4  ;;  %v578_v40 = vrot.slane %v576_v11, 5  ;;  %v1332_v23 = vshrl.u32 %v435_v28, 16 }
 0x13c   : > { %2989 = vmatmul.bf16.gmra.mxu1 %v2481_v39  ;;  %3400 = vmatmul.bf16.gmra.mxu0 %v1261_v21  ;;  %v2541_v39 = vor.u32 %v7437_v59, %v7435_v61  ;;  %v1291_v21 = vrot.slane %v1289_v18, 3  ;;  %v596_v61 = vunpack.c.l.b16 %v247_v31  ;;  %v2564_v18 = vshll.u32 %v1801_v42, 16 }
 0x13d   : > { %3078 = vmatmul.bf16.gmra.mxu2 %v7408_v25  ;;  %3311 = vmatmul.bf16.gmra.mxu3 %v1253_v47  ;;  %v7450_v30 = vadd.f32 %v7411_v46, %v3270_v27  ;;  %v7458_v25 = vrot.slane %v1298_v54, 3  ;;  %v1897_v47 = vsel %vm628_vm1, %v1895_v34, %v1896_v43  ;;  %v1324_v43 = vshrl.u32 %v6691_v52, 16 }
 0x13e   : > { %v1295_v60 = vor.u32 %v1294_v56, %v1291_v21  ;;  %v2578_v33 = vshrl.u32 %v1897_v47, 16  ;;  %v2581_v54 = vshll.u32 %v1897_v47, 16  ;;  %v1335_v31 = vshll.u32 %v435_v28, 16 }
 0x13f   : > { %8364 = vst [vmem:[#allocation10_spill] sm:$0xff] %v7450_v30  ;;  %v1304_v11 = vor.u32 %v1303_v9, %v7458_v25  ;;  %v2575_v34 = vrot.slane %v2573_v44, 4  ;;  %v7470_v42 = vrot.slane %v2564_v18, 4  ;;  %v3861_v52 = vunpack.c.l.b16 %v5845_v4 }
 0x140   : > { %v3039_v2 = vpop.f32.mrf.mxu2  ;;  %v3272_v46 = vpop.f32.mrf.mxu3  ;;  %v2580_v56 = vrot.slane %v2578_v33, 3  ;;  %v2583_v47 = vrot.slane %v2581_v54, 4  ;;  %v1326_v30 = vrot.slane %v1324_v43, 3  ;;  %v1329_v25 = vrot.slane %v1327_v32, 4 }
 0x141   : > { %v3040_v59 = vadd.f32 %v3039_v2, %v2951_v36  ;;  %v2952_v5 = vpop.f32.mrf.mxu1  ;;  %v7462_v38 = vpop.f32.mrf.mxu0  ;;  %v579_v36 = vor.u32 %v578_v40, %v575_v14  ;;  %v612_v2 = vpack.c.b16 %v596_v61, %v596_v61  ;;  %v1334_v28 = vrot.slane %v1332_v23, 3 }
 0x142   : > { %v1337_v40 = vrot.slane %v1335_v31, 4  ;;  %v629_v51 = vrot.slane %v6761_v57, 5  ;;  %v1296_v43 = vsel %vm677_vm0, %v1287_v19, %v1295_v60  ;;  %v2576_v32 = vor.u32 %v2575_v34, %v2572_v1  ;;  %v6708_v1 = vld [vmem:[%s6860_s28 + $0x34] sm:$0xff]  }
 0x143   : > { %v3273_v27 = vadd.f32 %v3272_v46, %v3040_v59  ;;  %v6429_v46 = vld [vmem:[%s6860_s28 + $0x38] sm:$0xff]   ;;  %v2953_v59 = vadd.f32 %v2952_v5, %v7191_v15  ;;  %v1341_v61 = vshrl.u32 %v579_v36, 16  ;;  %v630_v44 = vrot.slane %v612_v2, 5 }
 0x144   : > { %v6256_v33 = vunpack.c.h.b16 %v6429_v46  ;;  %v3718_v54 = vshrl.u32 %v6429_v46, 16  ;;  %v8366_v15 = vor.u32 %v7429_v24, %v7427_v26  ;;  %v3877_v23 = vpack.c.b16 %v3861_v52, %v3861_v52 }
 0x145   : > { %v7468_v21 = vadd.f32 %v3361_v13, %v3273_v27  ;;  %v2567_v31 = vor.u32 %v7470_v42, %v7466_v37  ;;  %v2584_v2 = vor.u32 %v2583_v47, %v2580_v56  ;;  %v1338_v26 = vor.u32 %v1337_v40, %v1334_v28 }
 0x146   : > { %v2542_v5 = vsel %vm677_vm0, %v8366_v15, %v2541_v39  ;;  %v7485_v24 = vrot.slane %v1341_v61, 3  ;;  %v631_v39 = vsel %vm628_vm1, %v629_v51, %v630_v44  ;;  %v3670_v60 = vpack.c.b16 %v6256_v33, %v6256_v33 }
 0x147   : > { %8365 = vst [vmem:[#allocation11_spill] sm:$0xff] %v7468_v21  ;;  %v1344_v21 = vshll.u32 %v579_v36, 16  ;;  %v8367_v36 = vor.u32 %v7433_v16, %v7431_v45  ;;  %v3720_v34 = vrot.slane %v3718_v54, 4  ;;  %v705_v45 = vshrl.u32 %v629_v51, 16 }
 0x148   : > { %v3041_v9 = vpop.f32.mrf.mxu2  ;;  %v3274_v14 = vpop.f32.mrf.mxu3  ;;  %v708_v16 = vshll.u32 %v629_v51, 16  ;;  %v3894_v47 = vrot.slane %v3877_v23, 5  ;;  %v3942_v44 = vshrl.u32 %v6708_v1, 16  ;;  %v3950_v33 = vshrl.u32 %v3670_v60, 16 }
 0x149   : > { %v3042_v13 = vadd.f32 %v3041_v9, %v2953_v59  ;;  %v2955_v27 = vpop.f32.mrf.mxu1  ;;  %v3366_v18 = vpop.f32.mrf.mxu0  ;;  %v3721_v59 = vshll.u32 %v6429_v46, 16  ;;  %v1330_v9 = vor.u32 %v1329_v25, %v1326_v30  ;;  %v7489_v19 = vrot.slane %v1344_v21, 4  ;;  %v251_v30 = vld [vmem:[%s6860_s28 + $0x28] sm:$0xf] }
 0x14a   : > { %v2956_v52 = vadd.f32 %v2955_v27, %v7203_v53  ;;  %v713_v25 = vshrl.u32 %v631_v39, 16  ;;  %v7497_v21 = vsel %vm677_vm0, %v2576_v32, %v2584_v2  ;;  %v3945_v27 = vshll.u32 %v6708_v1, 16 }
 0x14b   : > { %v3275_v4 = vadd.f32 %v3274_v14, %v3042_v13  ;;  %v3723_v28 = vrot.slane %v3721_v59, 5  ;;  %v597_v14 = vunpack.c.l.b16 %v251_v30  ;;  %v7500_v57 = vsel %vm677_vm0, %v1330_v9, %v1338_v26 }
 0x14c   : > { %2994 = vmatmul.bf16.gmra.mxu1 %v8367_v36  ;;  %3405 = vmatmul.bf16.gmra.mxu0 %v1304_v11  ;;  %v3893_v11 = vrot.slane %v6429_v46, 5  ;;  %v1347_v53 = vor.u32 %v7489_v19, %v7485_v24  ;;  %v7506_v54 = vrot.slane %v705_v45, 3  ;;  %v7508_v15 = vrot.slane %v708_v16, 4  ;;  %v6430_v19 = vld [vmem:[%s6860_s28 + $0x50] sm:$0xff]  }
 0x14d   : > { %3083 = vmatmul.bf16.gmra.mxu2 %v2542_v5  ;;  %3316 = vmatmul.bf16.gmra.mxu3 %v1296_v43  ;;  %v7492_v56 = vadd.f32 %v7462_v38, %v3275_v4  ;;  %v716_v38 = vshll.u32 %v631_v39, 16  ;;  %v613_v43 = vpack.c.b16 %v597_v14, %v597_v14  ;;  %v7511_v23 = vrot.slane %v713_v25, 3 }
 0x14e   : > { %v3895_v5 = vsel %vm628_vm1, %v3893_v11, %v3894_v47  ;;  %v3953_v4 = vshll.u32 %v3670_v60, 16  ;;  %v3724_v2 = vor.u32 %v3723_v28, %v3720_v34  ;;  %v7515_v36 = vrot.slane %v3942_v44, 3  ;;  %v6762_v47 = vld [vmem:[%s6860_s28 + $0x20] sm:$0xff]  }
 0x14f   : > { %v7513_v59 = vrot.slane %v716_v38, 4  ;;  %v3968_v9 = vshrl.u32 %v3893_v11, 16  ;;  %v3971_v26 = vshll.u32 %v3893_v11, 16  ;;  %v7517_v24 = vrot.slane %v3945_v27, 4 }
 0x150   : > { %v3044_v40 = vpop.f32.mrf.mxu2  ;;  %v3277_v61 = vpop.f32.mrf.mxu3  ;;  %v7519_v39 = vrot.slane %v3950_v33, 3  ;;  %v3976_v1 = vshrl.u32 %v3895_v5, 16  ;;  %v3979_v60 = vshll.u32 %v3895_v5, 16  ;;  %v632_v34 = vrot.slane %v6762_v47, 5 }
 0x151   : > { %v3045_v13 = vadd.f32 %v3044_v40, %v2956_v52  ;;  %v2957_v51 = vpop.f32.mrf.mxu1  ;;  %v7502_v46 = vpop.f32.mrf.mxu0  ;;  %v633_v30 = vrot.slane %v613_v43, 5  ;;  %v5849_v52 = vld [vmem:[%s6860_s28 + $0x58] sm:$0xf]  ;;  %v3955_v28 = vrot.slane %v3953_v4, 4  ;;  %v3959_v11 = vshrl.u32 %v3724_v2, 16 }
 0x152   : > { %v2958_v25 = vadd.f32 %v2957_v51, %v7223_v29  ;;  %v3962_v14 = vshll.u32 %v3724_v2, 16  ;;  %v719_v38 = vor.u32 %v7513_v59, %v7511_v23  ;;  %v3973_v44 = vrot.slane %v3971_v26, 4  ;;  %v6709_v26 = vld [vmem:[%s6860_s28 + $0x4c] sm:$0xff]  }
 0x153   : > { %v3278_v32 = vadd.f32 %v3277_v61, %v3045_v13  ;;  %v6260_v13 = vunpack.c.h.b16 %v6430_v19  ;;  %v3948_v43 = vor.u32 %v7517_v24, %v7515_v36  ;;  %v3862_v29 = vunpack.c.l.b16 %v5849_v52 }
 0x154   : > { %v3981_v51 = vrot.slane %v3979_v60, 4  ;;  %v634_v4 = vsel %vm628_vm1, %v632_v34, %v633_v30  ;;  %v3726_v2 = vshrl.u32 %v6430_v19, 16  ;;  %v3729_v47 = vshll.u32 %v6430_v19, 16 }
 0x155   : > { %v7522_v45 = vadd.f32 %v3366_v18, %v3278_v32  ;;  %v3970_v18 = vrot.slane %v3968_v9, 3  ;;  %v3978_v32 = vrot.slane %v3976_v1, 3  ;;  %v3956_v23 = vor.u32 %v3955_v28, %v7519_v39 }
 0x156   : > { %v7535_v59 = vrot.slane %v3959_v11, 3  ;;  %v7537_v9 = vrot.slane %v3962_v14, 4  ;;  %v748_v24 = vshrl.u32 %v632_v34, 16  ;;  %v751_v1 = vshll.u32 %v632_v34, 16 }
 0x157   : > { %8368 = vst [vmem:[#allocation12_spill] sm:$0xff] %v7522_v45  ;;  %v3974_v36 = vor.u32 %v3973_v44, %v3970_v18  ;;  %v3672_v60 = vpack.c.b16 %v6260_v13, %v6260_v13  ;;  %v756_v39 = vshrl.u32 %v634_v4, 16  ;;  %v759_v30 = vshll.u32 %v634_v4, 16 }
 0x158   : > { %v3046_v40 = vpop.f32.mrf.mxu2  ;;  %v3279_v61 = vpop.f32.mrf.mxu3  ;;  %v3878_v52 = vpack.c.b16 %v3862_v29, %v3862_v29  ;;  %v3982_v28 = vor.u32 %v3981_v51, %v3978_v32  ;;  %v3728_v11 = vrot.slane %v3726_v2, 4  ;;  %v3731_v37 = vrot.slane %v3729_v47, 5 }
 0x159   : > { %v3047_v27 = vadd.f32 %v3046_v40, %v2958_v25  ;;  %v2960_v33 = vpop.f32.mrf.mxu1  ;;  %v3371_v5 = vpop.f32.mrf.mxu0  ;;  %v3896_v42 = vrot.slane %v6430_v19, 5  ;;  %v3985_v14 = vshrl.u32 %v6709_v26, 16  ;;  %v3988_v34 = vshll.u32 %v6709_v26, 16 }
 0x15a   : > { %v750_v18 = vrot.slane %v748_v24, 3  ;;  %v3993_v44 = vshrl.u32 %v3672_v60, 16  ;;  %v3996_v13 = vshll.u32 %v3672_v60, 16  ;;  %v761_v32 = vrot.slane %v759_v30, 4 }
 0x15b   : > { %v3280_v16 = vadd.f32 %v3279_v61, %v3047_v27  ;;  %v3897_v51 = vrot.slane %v3878_v52, 5  ;;  %v8370_v19 = vor.u32 %v7508_v15, %v7506_v54  ;;  %v3965_v47 = vor.u32 %v7537_v9, %v7535_v59  ;;  %v6431_v15 = vld [vmem:[%s6860_s28 + $0x68] sm:$0xff]  }
 0x15c   : > { %2999 = vmatmul.bf16.gmra.mxu1 %v2567_v31  ;;  %3410 = vmatmul.bf16.gmra.mxu0 %v1347_v53  ;;  %v255_v31 = vld [vmem:[%s6860_s28 + $0x40] sm:$0xf]  ;;  %v2961_v53 = vadd.f32 %v2960_v33, %v7240_v20  ;;  %v3957_v33 = vsel %vm677_vm0, %v3948_v43, %v3956_v23  ;;  %v3983_v26 = vsel %vm677_vm0, %v3974_v36, %v3982_v28  ;;  %v7558_v60 = vrot.slane %v3985_v14, 3  ;;  %v6763_v36 = vld [vmem:[%s6860_s28 + $0x38] sm:$0xff]   ;;  %v5853_v14 = vld [vmem:[%s6860_s28 + $0x70] sm:$0xf] }
 0x15d   : > { %3088 = vmatmul.bf16.gmra.mxu2 %v7497_v21  ;;  %3321 = vmatmul.bf16.gmra.mxu3 %v7500_v57  ;;  %v7546_v25 = vadd.f32 %v7502_v46, %v3280_v16  ;;  %v598_v40 = vunpack.c.l.b16 %v255_v31  ;;  %v753_v57 = vrot.slane %v751_v1, 4  ;;  %v758_v16 = vrot.slane %v756_v39, 3 }
 0x15e   : > { %v720_v20 = vsel %vm677_vm0, %v8370_v19, %v719_v38  ;;  %v3732_v24 = vor.u32 %v3731_v37, %v3728_v11  ;;  %v7560_v39 = vrot.slane %v3988_v34, 4  ;;  %v7562_v54 = vrot.slane %v3993_v44, 3 }
 0x15f   : > { %8369 = vst [vmem:[#allocation13_spill] sm:$0xff] %v7546_v25  ;;  %v614_v4 = vpack.c.b16 %v598_v40, %v598_v40  ;;  %v754_v1 = vor.u32 %v753_v57, %v750_v18  ;;  %v762_v38 = vor.u32 %v761_v32, %v758_v16  ;;  %v7565_v43 = vrot.slane %v3996_v13, 4 }
 0x160   : > { %v3049_v61 = vpop.f32.mrf.mxu2  ;;  %v3282_v21 = vpop.f32.mrf.mxu3  ;;  %v3898_v23 = vsel %vm628_vm1, %v3896_v42, %v3897_v51  ;;  %v4011_v59 = vshrl.u32 %v3896_v42, 16  ;;  %v4014_v9 = vshll.u32 %v3896_v42, 16  ;;  %v635_v52 = vrot.slane %v6763_v36, 5  ;;  %v6710_v51 = vld [vmem:[%s6860_s28 + $0x64] sm:$0xff]  }
 0x161   : > { %v3050_v27 = vadd.f32 %v3049_v61, %v2961_v53  ;;  %v2962_v29 = vpop.f32.mrf.mxu1  ;;  %v3373_v46 = vpop.f32.mrf.mxu0  ;;  %v636_v28 = vrot.slane %v614_v4, 5  ;;  %v4002_v37 = vshrl.u32 %v3732_v24, 16  ;;  %v4005_v31 = vshll.u32 %v3732_v24, 16 }
 0x162   : > { %v2963_v11 = vadd.f32 %v2962_v29, %v7252_v8  ;;  %v6264_v53 = vunpack.c.h.b16 %v6431_v15  ;;  %v3991_v61 = vor.u32 %v7560_v39, %v7558_v60  ;;  %v3734_v18 = vshrl.u32 %v6431_v15, 16 }
 0x163   : > { %v3283_v2 = vadd.f32 %v3282_v21, %v3050_v27  ;;  %v4019_v21 = vshrl.u32 %v3898_v23, 16  ;;  %v7578_v13 = vsel %vm677_vm0, %v754_v1, %v762_v38  ;;  %v3999_v8 = vor.u32 %v7565_v43, %v7562_v54 }
 0x164   : > { %v3737_v27 = vshll.u32 %v6431_v15, 16  ;;  %v4013_v29 = vrot.slane %v4011_v59, 3  ;;  %v4016_v16 = vrot.slane %v4014_v9, 4  ;;  %v637_v32 = vsel %vm628_vm1, %v635_v52, %v636_v28 }
 0x165   : > { %v7568_v30 = vadd.f32 %v3371_v5, %v3283_v2  ;;  %v4022_v5 = vshll.u32 %v3898_v23, 16  ;;  %v3863_v19 = vunpack.c.l.b16 %v5853_v14  ;;  %v7584_v2 = vrot.slane %v4002_v37, 3 }
 0x166   : > { %v7586_v24 = vrot.slane %v4005_v31, 4  ;;  %v3674_v23 = vpack.c.b16 %v6264_v53, %v6264_v53  ;;  %v4021_v1 = vrot.slane %v4019_v21, 3  ;;  %v791_v36 = vshrl.u32 %v635_v52, 16 }
 0x167   : > { %8371 = vst [vmem:[#allocation14_spill] sm:$0xff] %v7568_v30  ;;  %v4024_v38 = vrot.slane %v4022_v5, 4  ;;  %v3736_v54 = vrot.slane %v3734_v18, 4  ;;  %v794_v43 = vshll.u32 %v635_v52, 16  ;;  %v799_v59 = vshrl.u32 %v637_v32, 16 }
 0x168   : > { %v3051_v34 = vpop.f32.mrf.mxu2  ;;  %v3284_v40 = vpop.f32.mrf.mxu3  ;;  %v3739_v9 = vrot.slane %v3737_v27, 5  ;;  %v4028_v37 = vshrl.u32 %v6710_v51, 16  ;;  %v4031_v14 = vshll.u32 %v6710_v51, 16  ;;  %v3879_v31 = vpack.c.b16 %v3863_v19, %v3863_v19 }
 0x169   : > { %v3052_v57 = vadd.f32 %v3051_v34, %v2963_v11  ;;  %v2965_v42 = vpop.f32.mrf.mxu1  ;;  %v7575_v44 = vpop.f32.mrf.mxu0  ;;  %v802_v11 = vshll.u32 %v637_v32, 16  ;;  %v259_v34 = vld [vmem:[%s6860_s28 + $0x58] sm:$0xf]  ;;  %v4039_v53 = vshll.u32 %v3674_v23, 16  ;;  %v7592_v52 = vrot.slane %v791_v36, 3 }
 0x16a   : > { %v3899_v18 = vrot.slane %v6431_v15, 5  ;;  %v7596_v32 = vrot.slane %v794_v43, 4  ;;  %v7598_v51 = vrot.slane %v799_v59, 3  ;;  %v6764_v43 = vld [vmem:[%s6860_s28 + $0x50] sm:$0xff]  }
 0x16b   : > { %v3285_v4 = vadd.f32 %v3284_v40, %v3052_v57  ;;  %v599_v40 = vunpack.c.l.b16 %v259_v34  ;;  %v7603_v19 = vrot.slane %v802_v11, 4  ;;  %v638_v59 = vrot.slane %v6764_v43, 5 }
 0x16c   : > { %3424 = vmatmul.bf16.vlgmr.msra.gmra.mxu1 %v720_v20  ;;  %5056 = vmatmul.bf16.vlgmr.msra.gmra.mxu0 %v3983_v26  ;;  %v2966_v20 = vadd.f32 %v2965_v42, %v7153_v63  ;;  %v4036_v26 = vshrl.u32 %v3674_v23, 16  ;;  %v7601_v42 = vld [vmem:[%s6860_s28 + $0x80] sm:$0xff]   ;;  %v4054_v36 = vshrl.u32 %v3899_v18, 16 }
 0x16d   : > { %4878 = vmatmul.bf16.vlgmr.msra.gmra.mxu2 %v3957_v33  ;;  %4967 = vmatmul.bf16.vlgmr.msra.gmra.mxu3 %v3965_v47  ;;  %v7588_v28 = vadd.f32 %v3373_v46, %v3285_v4  ;;  %v4017_v33 = vor.u32 %v4016_v16, %v4013_v29  ;;  %v4025_v47 = vor.u32 %v4024_v38, %v4021_v1  ;;  %v7605_v4 = vrot.slane %v4028_v37, 3 }
 0x16e   : > { %v615_v63 = vpack.c.b16 %v599_v40, %v599_v40  ;;  %v7607_v29 = vrot.slane %v4031_v14, 4  ;;  %v3900_v16 = vrot.slane %v3879_v31, 5  ;;  %v7609_v23 = vrot.slane %v4036_v26, 3 }
 0x16f   : > { %8372 = vst [vmem:[#allocation15_spill] sm:$0xff] %v7588_v28  ;;  %v7611_v1 = vrot.slane %v4039_v53, 4  ;;  %v7613_v38 = vor.u32 %v3739_v9, %v3736_v54  ;;  %v6268_v11 = vunpack.c.h.b16 %v7601_v42  ;;  %v4000_v37 = vsel %vm677_vm0, %v3991_v61, %v3999_v8  ;;  %v5857_v61 = vld [vmem:[%s6860_s28 + $0x88] sm:$0xf]  ;;  %v263_v28 = vld [vmem:[%s6860_s28 + $0x70] sm:$0xf] }
 0x170   : > { %v3054_v21 = vpop.f32.mrf.mxu2  ;;  %v3287_v5 = vpop.f32.mrf.mxu3  ;;  %v639_v34 = vrot.slane %v615_v63, 5  ;;  %v4008_v14 = vor.u32 %v7586_v24, %v7584_v2  ;;  %v4026_v31 = vsel %vm677_vm0, %v4017_v33, %v4025_v47  ;;  %v3901_v39 = vsel %vm628_vm1, %v3899_v18, %v3900_v16  ;;  %v6711_v33 = vld [vmem:[%s6860_s28 + $0x7c] sm:$0xff]  }
 0x171   : > { %v3055_v46 = vadd.f32 %v3054_v21, %v2966_v20  ;;  %v2967_v57 = vpop.f32.mrf.mxu1  ;;  %v7594_v27 = vpop.f32.mrf.mxu0  ;;  %v4057_v24 = vshll.u32 %v3899_v18, 16  ;;  %v4048_v40 = vshll.u32 %v7613_v38, 16  ;;  %v7640_v21 = vrot.slane %v4054_v36, 3 }
 0x172   : > { %v2968_v8 = vadd.f32 %v2967_v57, %v7171_v35  ;;  %v3676_v47 = vpack.c.b16 %v6268_v11, %v6268_v11  ;;  %v4062_v35 = vshrl.u32 %v3901_v39, 16  ;;  %v4065_v57 = vshll.u32 %v3901_v39, 16 }
 0x173   : > { %v3288_v15 = vadd.f32 %v3287_v5, %v3055_v46  ;;  %v640_v5 = vsel %vm628_vm1, %v638_v59, %v639_v34  ;;  %v834_v43 = vshrl.u32 %v638_v59, 16  ;;  %v837_v60 = vshll.u32 %v638_v59, 16 }
 0x174   : > { %v3742_v18 = vshrl.u32 %v7601_v42, 16  ;;  %v3745_v2 = vshll.u32 %v7601_v42, 16  ;;  %v4059_v36 = vrot.slane %v4057_v24, 4  ;;  %v842_v9 = vshrl.u32 %v640_v5, 16 }
 0x175   : > { %v7625_v54 = vadd.f32 %v7575_v44, %v3288_v15  ;;  %v4045_v44 = vshrl.u32 %v7613_v38, 16  ;;  %v3864_v15 = vunpack.c.l.b16 %v5857_v61  ;;  %v845_v20 = vshll.u32 %v640_v5, 16 }
 0x176   : > { %v4071_v34 = vshrl.u32 %v6711_v33, 16  ;;  %v4074_v11 = vshll.u32 %v6711_v33, 16  ;;  %v4064_v39 = vrot.slane %v4062_v35, 3  ;;  %v4067_v59 = vrot.slane %v4065_v57, 4 }
 0x177   : > { %8373 = vst [vmem:[#allocation16_spill] sm:$0xff] %v7625_v54  ;;  %v3880_v61 = vpack.c.b16 %v3864_v15, %v3864_v15  ;;  %v839_v24 = vrot.slane %v837_v60, 4  ;;  %v3747_v5 = vrot.slane %v3745_v2, 5  ;;  %v847_v30 = vrot.slane %v845_v20, 4 }
 0x178   : > { %v3056_v26 = vpop.f32.mrf.mxu2  ;;  %v3289_v53 = vpop.f32.mrf.mxu3  ;;  %v600_v33 = vunpack.c.l.b16 %v263_v28  ;;  %v3902_v60 = vrot.slane %v7601_v42, 5  ;;  %v8375_v28 = vor.u32 %v7596_v32, %v7592_v52  ;;  %v4047_v20 = vrot.slane %v4045_v44, 3  ;;  %v6433_v44 = vld [vmem:[%s6860_s28 + $0x98] sm:$0xff]  }
 0x179   : > { %v3057_v46 = vadd.f32 %v3056_v26, %v2968_v8  ;;  %v2970_v63 = vpop.f32.mrf.mxu1  ;;  %v7644_v16 = vpop.f32.mrf.mxu0  ;;  %v4079_v8 = vshrl.u32 %v3676_v47, 16  ;;  %v4082_v26 = vshll.u32 %v3676_v47, 16  ;;  %v3903_v2 = vrot.slane %v3880_v61, 5 }
 0x17a   : > { %v8377_v42 = vor.u32 %v7607_v29, %v7605_v4 }
 0x17b   : > { %v3290_v38 = vadd.f32 %v3289_v53, %v3057_v46  ;;  %v836_v53 = vrot.slane %v834_v43, 3  ;;  %v3744_v46 = vrot.slane %v3742_v18, 4  ;;  %v4081_v35 = vrot.slane %v4079_v8, 3 }
 0x17c   : > { %3429 = vmatmul.bf16.gmra.mxu1 %v7578_v13  ;;  %5061 = vmatmul.bf16.gmra.mxu0 %v4026_v31  ;;  %v2971_v13 = vadd.f32 %v2970_v63, %v7184_v6  ;;  %v844_v31 = vrot.slane %v842_v9, 3  ;;  %v4084_v57 = vrot.slane %v4082_v26, 4  ;;  %v616_v43 = vpack.c.b16 %v600_v33, %v600_v33  ;;  %v6765_v26 = vld [vmem:[%s6860_s28 + $0x68] sm:$0xff]  }
 0x17d   : > { %4883 = vmatmul.bf16.gmra.mxu2 %v4000_v37  ;;  %4972 = vmatmul.bf16.gmra.mxu3 %v4008_v14  ;;  %v7650_v54 = vadd.f32 %v7594_v27, %v3290_v38  ;;  %v4073_v37 = vrot.slane %v4071_v34, 3  ;;  %v4076_v14 = vrot.slane %v4074_v11, 4  ;;  %v8374_v6 = vor.u32 %v7603_v19, %v7598_v51 }
 0x17e   : > { %v3748_v63 = vor.u32 %v3747_v5, %v3744_v46  ;;  %v8376_v38 = vor.u32 %v7611_v1, %v7609_v23  ;;  %v4060_v51 = vor.u32 %v4059_v36, %v7640_v21  ;;  %v4068_v19 = vor.u32 %v4067_v59, %v4064_v39  ;;  %v5861_v5 = vld [vmem:[%s6860_s28 + $0xa0] sm:$0xf] }
 0x17f   : > { %v806_v9 = vsel %vm677_vm0, %v8375_v28, %v8374_v6  ;;  %v840_v11 = vor.u32 %v839_v24, %v836_v53  ;;  %v848_v52 = vor.u32 %v847_v30, %v844_v31  ;;  %v4077_v32 = vor.u32 %v4076_v14, %v4073_v37 }
 0x180   : > { %v3059_v25 = vpop.f32.mrf.mxu2  ;;  %v3292_v47 = vpop.f32.mrf.mxu3  ;;  %v4043_v34 = vsel %vm677_vm0, %v8377_v42, %v8376_v38  ;;  %v4085_v8 = vor.u32 %v4084_v57, %v4081_v35  ;;  %v641_v61 = vrot.slane %v6765_v26, 5  ;;  %v642_v46 = vrot.slane %v616_v43, 5 }
 0x181   : > { %v3060_v15 = vadd.f32 %v3059_v25, %v2971_v13  ;;  %v2972_v45 = vpop.f32.mrf.mxu1  ;;  %v7654_v27 = vpop.f32.mrf.mxu0  ;;  %v4050_v25 = vrot.slane %v4048_v40, 4  ;;  %v3904_v40 = vsel %vm628_vm1, %v3902_v60, %v3903_v2  ;;  %v4088_v29 = vshrl.u32 %v3748_v63, 16  ;;  %v6712_v2 = vld [vmem:[%s6860_s28 + $0x94] sm:$0xff]  }
 0x182   : > { %v4097_v1 = vshrl.u32 %v3902_v60, 16  ;;  %v4100_v13 = vshll.u32 %v3902_v60, 16  ;;  %v2973_v21 = vadd.f32 %v2972_v45, %v7197_v48  ;;  %v4069_v30 = vsel %vm677_vm0, %v4060_v51, %v4068_v19 }
 0x183   : > { %v3293_v18 = vadd.f32 %v3292_v47, %v3060_v15  ;;  %v4051_v4 = vor.u32 %v4050_v25, %v4047_v20  ;;  %v4091_v36 = vshll.u32 %v3748_v63, 16  ;;  %v6272_v39 = vunpack.c.h.b16 %v6433_v44 }
 0x184   : > { %v7682_v24 = vsel %vm677_vm0, %v840_v11, %v848_v52  ;;  %v7685_v31 = vsel %vm677_vm0, %v4077_v32, %v4085_v8  ;;  %v3865_v33 = vunpack.c.l.b16 %v5861_v5  ;;  %v4108_v48 = vshll.u32 %v3904_v40, 16 }
 0x185   : > { %v7677_v23 = vadd.f32 %v7644_v16, %v3293_v18  ;;  %v4105_v16 = vshrl.u32 %v3904_v40, 16  ;;  %v643_v45 = vsel %vm628_vm1, %v641_v61, %v642_v46  ;;  %v3750_v35 = vshrl.u32 %v6433_v44, 16  ;;  %v267_v46 = vld [vmem:[%s6860_s28 + $0x88] sm:$0xf] }
 0x186   : > { %v7690_v57 = vrot.slane %v4088_v29, 3  ;;  %v7692_v15 = vrot.slane %v4097_v1, 3  ;;  %v7694_v60 = vrot.slane %v4100_v13, 4  ;;  %v3753_v43 = vshll.u32 %v6433_v44, 16 }
 0x187   : > { %v7697_v28 = vrot.slane %v4091_v36, 4  ;;  %v877_v20 = vshrl.u32 %v641_v61, 16  ;;  %v3678_v25 = vpack.c.b16 %v6272_v39, %v6272_v39  ;;  %v880_v63 = vshll.u32 %v641_v61, 16 }
 0x188   : > { %v3061_v59 = vpop.f32.mrf.mxu2  ;;  %v3294_v53 = vpop.f32.mrf.mxu3  ;;  %v885_v18 = vshrl.u32 %v643_v45, 16  ;;  %v888_v38 = vshll.u32 %v643_v45, 16  ;;  %v3881_v42 = vpack.c.b16 %v3865_v33, %v3865_v33  ;;  %v4107_v51 = vrot.slane %v4105_v16, 3 }
 0x189   : > { %v3062_v47 = vadd.f32 %v3061_v59, %v2973_v21  ;;  %v2975_v37 = vpop.f32.mrf.mxu1  ;;  %v7687_v14 = vpop.f32.mrf.mxu0  ;;  %v4110_v19 = vrot.slane %v4108_v48, 4  ;;  %v3752_v11 = vrot.slane %v3750_v35, 4  ;;  %v4114_v32 = vshrl.u32 %v6712_v2, 16 }
 0x18a   : > { %v4117_v8 = vshll.u32 %v6712_v2, 16  ;;  %v3755_v40 = vrot.slane %v3753_v43, 5  ;;  %v3905_v26 = vrot.slane %v6433_v44, 5  ;;  %v879_v5 = vrot.slane %v877_v20, 3  ;;  %v6434_v2 = vld [vmem:[%s6860_s28 + $0xb0] sm:$0xff]  }
 0x18b   : > { %v3295_v6 = vadd.f32 %v3294_v53, %v3062_v47  ;;  %v4122_v61 = vshrl.u32 %v3678_v25, 16  ;;  %v601_v29 = vunpack.c.l.b16 %v267_v46  ;;  %v890_v21 = vrot.slane %v888_v38, 4 }
 0x18c   : > { %3434 = vmatmul.bf16.gmra.mxu1 %v806_v9  ;;  %5066 = vmatmul.bf16.gmra.mxu0 %v4069_v30  ;;  %v2976_v9 = vadd.f32 %v2975_v37, %v7215_v22  ;;  %v3906_v30 = vrot.slane %v3881_v42, 5  ;;  %v4103_v44 = vor.u32 %v7694_v60, %v7692_v15  ;;  %v4125_v59 = vshll.u32 %v3678_v25, 16 }
 0x18d   : > { %4888 = vmatmul.bf16.gmra.mxu2 %v4043_v34  ;;  %4977 = vmatmul.bf16.gmra.mxu3 %v4051_v4  ;;  %v7700_v52 = vadd.f32 %v7654_v27, %v3295_v6  ;;  %v882_v34 = vrot.slane %v880_v63, 4  ;;  %v887_v4 = vrot.slane %v885_v18, 3  ;;  %v617_v22 = vpack.c.b16 %v601_v29, %v601_v29  ;;  %v5865_v63 = vld [vmem:[%s6860_s28 + $0xb8] sm:$0xf] }
 0x18e   : > { %v4094_v53 = vor.u32 %v7697_v28, %v7690_v57  ;;  %v4111_v16 = vor.u32 %v4110_v19, %v4107_v51  ;;  %v3756_v33 = vor.u32 %v3755_v40, %v3752_v11  ;;  %v4140_v47 = vshrl.u32 %v3905_v26, 16  ;;  %v6766_v57 = vld [vmem:[%s6860_s28 + $0x80] sm:$0xff]  }
 0x18f   : > { %v7710_v48 = vrot.slane %v4114_v32, 3  ;;  %v7712_v45 = vrot.slane %v4117_v8, 4  ;;  %v4143_v35 = vshll.u32 %v3905_v26, 16  ;;  %v883_v43 = vor.u32 %v882_v34, %v879_v5 }
 0x190   : > { %v3064_v1 = vpop.f32.mrf.mxu2  ;;  %v3297_v13 = vpop.f32.mrf.mxu3  ;;  %v891_v6 = vor.u32 %v890_v21, %v887_v4  ;;  %v7715_v15 = vrot.slane %v4122_v61, 3  ;;  %v3907_v60 = vsel %vm628_vm1, %v3905_v26, %v3906_v30  ;;  %v7718_v20 = vrot.slane %v4125_v59, 4  ;;  %v6713_v4 = vld [vmem:[%s6860_s28 + $0xac] sm:$0xff]  }
 0x191   : > { %v3065_v36 = vadd.f32 %v3064_v1, %v2976_v9  ;;  %v2977_v27 = vpop.f32.mrf.mxu1  ;;  %v7704_v39 = vpop.f32.mrf.mxu0  ;;  %v644_v28 = vrot.slane %v6766_v57, 5  ;;  %v645_v25 = vrot.slane %v617_v22, 5  ;;  %v4131_v38 = vshrl.u32 %v3756_v33, 16 }
 0x192   : > { %v4134_v42 = vshll.u32 %v3756_v33, 16  ;;  %v7725_v51 = vrot.slane %v4140_v47, 3  ;;  %v6276_v19 = vunpack.c.h.b16 %v6434_v2  ;;  %v2978_v11 = vadd.f32 %v2977_v27, %v7234_v10 }
 0x193   : > { %v3298_v37 = vadd.f32 %v3297_v13, %v3065_v36  ;;  %v7728_v32 = vrot.slane %v4143_v35, 4  ;;  %v4148_v8 = vshrl.u32 %v3907_v60, 16  ;;  %v4151_v40 = vshll.u32 %v3907_v60, 16 }
 0x194   : > { %v4112_v9 = vsel %vm677_vm0, %v4103_v44, %v4111_v16  ;;  %v7732_v5 = vsel %vm677_vm0, %v883_v43, %v891_v6  ;;  %v3866_v61 = vunpack.c.l.b16 %v5865_v63  ;;  %v4128_v10 = vor.u32 %v7718_v20, %v7715_v15 }
 0x195   : > { %v7723_v18 = vadd.f32 %v7687_v14, %v3298_v37  ;;  %v4120_v14 = vor.u32 %v7712_v45, %v7710_v48  ;;  %v646_v34 = vsel %vm628_vm1, %v644_v28, %v645_v25  ;;  %v3758_v21 = vshrl.u32 %v6434_v2, 16 }
 0x196   : > { %v7742_v30 = vrot.slane %v4131_v38, 3  ;;  %v7744_v36 = vrot.slane %v4134_v42, 4  ;;  %v3680_v27 = vpack.c.b16 %v6276_v19, %v6276_v19  ;;  %v3761_v44 = vshll.u32 %v6434_v2, 16 }
 0x197   : > { %v4146_v22 = vor.u32 %v7728_v32, %v7725_v51  ;;  %v4150_v16 = vrot.slane %v4148_v8, 3  ;;  %v4153_v33 = vrot.slane %v4151_v40, 4  ;;  %v920_v47 = vshrl.u32 %v644_v28, 16 }
 0x198   : > { %v3066_v26 = vpop.f32.mrf.mxu2  ;;  %v3299_v46 = vpop.f32.mrf.mxu3  ;;  %v923_v37 = vshll.u32 %v644_v28, 16  ;;  %v928_v48 = vshrl.u32 %v646_v34, 16  ;;  %v3882_v45 = vpack.c.b16 %v3866_v61, %v3866_v61  ;;  %v931_v35 = vshll.u32 %v646_v34, 16 }
 0x199   : > { %v3067_v29 = vadd.f32 %v3066_v26, %v2978_v11  ;;  %v2980_v1 = vpop.f32.mrf.mxu1  ;;  %v7736_v13 = vpop.f32.mrf.mxu0  ;;  %v4157_v43 = vshrl.u32 %v6713_v4, 16  ;;  %v3760_v6 = vrot.slane %v3758_v21, 4  ;;  %v4160_v60 = vshll.u32 %v6713_v4, 16  ;;  %v6767_v21 = vld [vmem:[%s6860_s28 + $0x98] sm:$0xff]  }
 0x19a   : > { %v4165_v20 = vshrl.u32 %v3680_v27, 16  ;;  %v4168_v57 = vshll.u32 %v3680_v27, 16  ;;  %v3763_v25 = vrot.slane %v3761_v44, 5  ;;  %v2981_v63 = vadd.f32 %v2980_v1, %v7245_v58  ;;  %v7776_v1 = vld [vmem:[%s6860_s28 + $0xc8] sm:$0xff]  }
 0x19b   : > { %v3300_v59 = vadd.f32 %v3299_v46, %v3067_v29  ;;  %v4154_v38 = vor.u32 %v4153_v33, %v4150_v16  ;;  %v3908_v28 = vrot.slane %v6434_v2, 5  ;;  %v7757_v19 = vrot.slane %v923_v37, 4 }
 0x19c   : > { %3439 = vmatmul.bf16.gmra.mxu1 %v7682_v24  ;;  %5071 = vmatmul.bf16.gmra.mxu0 %v4112_v9  ;;  %v271_v24 = vld [vmem:[%s6860_s28 + $0xa0] sm:$0xf]  ;;  %v3909_v11 = vrot.slane %v3882_v45, 5  ;;  %v7763_v26 = vrot.slane %v931_v35, 4  ;;  %v7765_v58 = vrot.slane %v4157_v43, 3  ;;  %v7767_v46 = vrot.slane %v4160_v60, 4 }
 0x19d   : > { %4893 = vmatmul.bf16.gmra.mxu2 %v7685_v31  ;;  %4982 = vmatmul.bf16.gmra.mxu3 %v4094_v53  ;;  %v7751_v15 = vadd.f32 %v7704_v39, %v3300_v59  ;;  %v602_v42 = vunpack.c.l.b16 %v271_v24  ;;  %v7755_v53 = vrot.slane %v920_v47, 3  ;;  %v7759_v39 = vrot.slane %v928_v48, 3  ;;  %v5869_v35 = vld [vmem:[%s6860_s28 + $0xd0] sm:$0xf]  ;;  %v6714_v24 = vld [vmem:[%s6860_s28 + $0xc4] sm:$0xff]  }
 0x19e   : > { %v7769_v9 = vrot.slane %v4165_v20, 3  ;;  %v7771_v61 = vrot.slane %v4168_v57, 4  ;;  %v7773_v29 = vor.u32 %v3763_v25, %v3760_v6  ;;  %v4129_v4 = vsel %vm677_vm0, %v4120_v14, %v4128_v10 }
 0x19f   : > { %v618_v2 = vpack.c.b16 %v602_v42, %v602_v42  ;;  %v647_v27 = vrot.slane %v6767_v21, 5  ;;  %v4137_v59 = vor.u32 %v7744_v36, %v7742_v30  ;;  %v4155_v16 = vsel %vm677_vm0, %v4146_v22, %v4154_v38 }
 0x1a0   : > { %v3069_v51 = vpop.f32.mrf.mxu2  ;;  %v3302_v31 = vpop.f32.mrf.mxu3  ;;  %v926_v33 = vor.u32 %v7757_v19, %v7755_v53  ;;  %v3910_v47 = vsel %vm628_vm1, %v3908_v28, %v3909_v11  ;;  %v4183_v37 = vshrl.u32 %v3908_v28, 16  ;;  %v4186_v48 = vshll.u32 %v3908_v28, 16 }
 0x1a1   : > { %v3070_v32 = vadd.f32 %v3069_v51, %v2981_v63  ;;  %v2982_v8 = vpop.f32.mrf.mxu1  ;;  %v7761_v40 = vpop.f32.mrf.mxu0  ;;  %v648_v44 = vrot.slane %v618_v2, 5  ;;  %v6280_v45 = vunpack.c.h.b16 %v7776_v1  ;;  %v934_v10 = vor.u32 %v7763_v26, %v7759_v39 }
 0x1a2   : > { %v4174_v22 = vshrl.u32 %v7773_v29, 16  ;;  %v2983_v43 = vadd.f32 %v2982_v8, %v7258_v12  ;;  %v4191_v6 = vshrl.u32 %v3910_v47, 16  ;;  %v4194_v60 = vshll.u32 %v3910_v47, 16 }
 0x1a3   : > { %v3303_v34 = vadd.f32 %v3302_v31, %v3070_v32  ;;  %v649_v20 = vsel %vm628_vm1, %v647_v27, %v648_v44  ;;  %v4177_v25 = vshll.u32 %v7773_v29, 16  ;;  %v3766_v63 = vshrl.u32 %v7776_v1, 16 }
 0x1a4   : > { %v3769_v38 = vshll.u32 %v7776_v1, 16  ;;  %v3867_v28 = vunpack.c.l.b16 %v5869_v35  ;;  %v4185_v11 = vrot.slane %v4183_v37, 3  ;;  %v4188_v12 = vrot.slane %v4186_v48, 4 }
 0x1a5   : > { %v7789_v14 = vadd.f32 %v7736_v13, %v3303_v34  ;;  %v3682_v32 = vpack.c.b16 %v6280_v45, %v6280_v45  ;;  %v963_v8 = vshrl.u32 %v647_v27, 16  ;;  %v966_v2 = vshll.u32 %v647_v27, 16 }
 0x1a6   : > { %v971_v34 = vshrl.u32 %v649_v20, 16  ;;  %v974_v21 = vshll.u32 %v649_v20, 16  ;;  %v7806_v47 = vrot.slane %v4174_v22, 3  ;;  %v4193_v29 = vrot.slane %v4191_v6, 3 }
 0x1a7   : > { %v4196_v30 = vrot.slane %v4194_v60, 4  ;;  %v4200_v35 = vshrl.u32 %v6714_v24, 16  ;;  %v3883_v36 = vpack.c.b16 %v3867_v28, %v3867_v28  ;;  %v4203_v37 = vshll.u32 %v6714_v24, 16 }
 0x1a8   : > { %v3071_v57 = vpop.f32.mrf.mxu2  ;;  %v3304_v13 = vpop.f32.mrf.mxu3  ;;  %v4208_v48 = vshrl.u32 %v3682_v32, 16  ;;  %v4211_v27 = vshll.u32 %v3682_v32, 16  ;;  %v965_v22 = vrot.slane %v963_v8, 3  ;;  %v968_v20 = vrot.slane %v966_v2, 4 }
 0x1a9   : > { %v3072_v42 = vadd.f32 %v3071_v57, %v2983_v43  ;;  %v2985_v51 = vpop.f32.mrf.mxu1  ;;  %v7804_v31 = vpop.f32.mrf.mxu0  ;;  %v3768_v43 = vrot.slane %v3766_v63, 4  ;;  %v3771_v57 = vrot.slane %v3769_v38, 5  ;;  %v973_v6 = vrot.slane %v971_v34, 3 }
 0x1aa   : > { %v976_v60 = vrot.slane %v974_v21, 4  ;;  %v4189_v63 = vor.u32 %v4188_v12, %v4185_v11  ;;  %v4197_v24 = vor.u32 %v4196_v30, %v4193_v29  ;;  %v7816_v28 = vrot.slane %v4200_v35, 3 }
 0x1ab   : > { %v3305_v44 = vadd.f32 %v3304_v13, %v3072_v42  ;;  %v275_v13 = vld [vmem:[%s6860_s28 + $0xb8] sm:$0xf]  ;;  %v3912_v42 = vrot.slane %v3883_v36, 5  ;;  %v7821_v34 = vrot.slane %v4203_v37, 4  ;;  %v969_v11 = vor.u32 %v968_v20, %v965_v22  ;;  %v6768_v36 = vld [vmem:[%s6860_s28 + $0xb0] sm:$0xff]  }
 0x1ac   : > { %3444 = vmatmul.bf16.gmra.mxu1 %v7732_v5  ;;  %5076 = vmatmul.bf16.gmra.mxu0 %v4155_v16  ;;  %v2986_v5 = vadd.f32 %v2985_v51, %v7155_v3  ;;  %v7814_v16 = vrot.slane %v4177_v25, 4  ;;  %v603_v38 = vunpack.c.l.b16 %v275_v13  ;;  %v7823_v3 = vrot.slane %v4208_v48, 3  ;;  %v7826_v51 = vld [vmem:[%s6860_s28 + $0xe0] sm:$0xff]  }
 0x1ad   : > { %4898 = vmatmul.bf16.gmra.mxu2 %v4129_v4  ;;  %4987 = vmatmul.bf16.gmra.mxu3 %v4137_v59  ;;  %v7810_v45 = vadd.f32 %v7761_v40, %v3305_v44  ;;  %v3911_v40 = vrot.slane %v7776_v1, 5  ;;  %v977_v12 = vor.u32 %v976_v60, %v973_v6  ;;  %v7828_v30 = vrot.slane %v4211_v27, 4 }
 0x1ae   : > { %v619_v25 = vpack.c.b16 %v603_v38, %v603_v38  ;;  %v3772_v21 = vor.u32 %v3771_v57, %v3768_v43  ;;  %v935_v1 = vsel %vm677_vm0, %v926_v33, %v934_v10  ;;  %v650_v29 = vrot.slane %v6768_v36, 5 }
 0x1af   : > { %v3913_v37 = vsel %vm628_vm1, %v3911_v40, %v3912_v42  ;;  %v4226_v48 = vshrl.u32 %v3911_v40, 16  ;;  %v4229_v22 = vshll.u32 %v3911_v40, 16  ;;  %v6284_v27 = vunpack.c.h.b16 %v7826_v51 }
 0x1b0   : > { %v3074_v4 = vpop.f32.mrf.mxu2  ;;  %v3307_v59 = vpop.f32.mrf.mxu3  ;;  %v651_v35 = vrot.slane %v619_v25, 5  ;;  %v8378_v43 = vor.u32 %v7771_v61, %v7769_v9  ;;  %v8379_v39 = vor.u32 %v7767_v46, %v7765_v58  ;;  %v4180_v19 = vor.u32 %v7814_v16, %v7806_v47  ;;  %v5873_v61 = vld [vmem:[%s6860_s28 + $0xe8] sm:$0xf] }
 0x1b1   : > { %v3075_v32 = vadd.f32 %v3074_v4, %v2986_v5  ;;  %v2987_v8 = vpop.f32.mrf.mxu1  ;;  %v7819_v2 = vpop.f32.mrf.mxu0  ;;  %v4198_v26 = vsel %vm677_vm0, %v4189_v63, %v4197_v24  ;;  %v7854_v10 = vsel %vm677_vm0, %v969_v11, %v977_v12  ;;  %v4206_v9 = vor.u32 %v7821_v34, %v7816_v28  ;;  %v6715_v63 = vld [vmem:[%s6860_s28 + $0xdc] sm:$0xff]  }
 0x1b2   : > { %v4172_v53 = vsel %vm677_vm0, %v8379_v39, %v8378_v43  ;;  %v4214_v58 = vor.u32 %v7828_v30, %v7823_v3  ;;  %v4217_v46 = vshrl.u32 %v3772_v21, 16  ;;  %v2988_v57 = vadd.f32 %v2987_v8, %v7173_v62 }
 0x1b3   : > { %v3308_v44 = vadd.f32 %v3307_v59, %v3075_v32  ;;  %v4234_v47 = vshrl.u32 %v3913_v37, 16  ;;  %v4237_v20 = vshll.u32 %v3913_v37, 16  ;;  %v652_v6 = vsel %vm628_vm1, %v650_v29, %v651_v35 }
 0x1b4   : > { %v4220_v13 = vshll.u32 %v3772_v21, 16  ;;  %v7863_v5 = vrot.slane %v4226_v48, 3  ;;  %v7865_v16 = vrot.slane %v4229_v22, 4  ;;  %v3684_v38 = vpack.c.b16 %v6284_v27, %v6284_v27 }
 0x1b5   : > { %v7851_v33 = vadd.f32 %v7804_v31, %v3308_v44  ;;  %v3774_v40 = vshrl.u32 %v7826_v51, 16  ;;  %v3777_v62 = vshll.u32 %v7826_v51, 16  ;;  %v3868_v42 = vunpack.c.l.b16 %v5873_v61 }
 0x1b6   : > { %v1006_v32 = vshrl.u32 %v650_v29, 16  ;;  %v1009_v8 = vshll.u32 %v650_v29, 16  ;;  %v1014_v25 = vshrl.u32 %v652_v6, 16  ;;  %v1017_v11 = vshll.u32 %v652_v6, 16 }
 0x1b7   : > { %v7872_v21 = vrot.slane %v4217_v46, 3  ;;  %v4236_v44 = vrot.slane %v4234_v47, 3  ;;  %v4239_v36 = vrot.slane %v4237_v20, 4  ;;  %v4243_v35 = vshrl.u32 %v6715_v63, 16  ;;  %v279_v20 = vld [vmem:[%s6860_s28 + $0xd0] sm:$0xf] }
 0x1b8   : > { %v3076_v60 = vpop.f32.mrf.mxu2  ;;  %v3309_v31 = vpop.f32.mrf.mxu3  ;;  %v4246_v37 = vshll.u32 %v6715_v63, 16  ;;  %v4251_v48 = vshrl.u32 %v3684_v38, 16  ;;  %v4254_v22 = vshll.u32 %v3684_v38, 16  ;;  %v3776_v27 = vrot.slane %v3774_v40, 4 }
 0x1b9   : > { %v3077_v4 = vadd.f32 %v3076_v60, %v2988_v57  ;;  %v2990_v59 = vpop.f32.mrf.mxu1  ;;  %v7868_v24 = vpop.f32.mrf.mxu0  ;;  %v3779_v43 = vrot.slane %v3777_v62, 5  ;;  %v3884_v39 = vpack.c.b16 %v3868_v42, %v3868_v42  ;;  %v1008_v61 = vrot.slane %v1006_v32, 3  ;;  %v6437_v42 = vld [vmem:[%s6860_s28 + $0xf8] sm:$0xff]  }
 0x1ba   : > { %v1011_v46 = vrot.slane %v1009_v8, 4  ;;  %v1016_v57 = vrot.slane %v1014_v25, 3  ;;  %v1019_v47 = vrot.slane %v1017_v11, 4  ;;  %v3914_v6 = vrot.slane %v7826_v51, 5 }
 0x1bb   : > { %v3310_v12 = vadd.f32 %v3309_v31, %v3077_v4  ;;  %v4245_v31 = vrot.slane %v4243_v35, 3  ;;  %v4248_v63 = vrot.slane %v4246_v37, 4  ;;  %v4256_v38 = vrot.slane %v4254_v22, 4  ;;  %v6769_v35 = vld [vmem:[%s6860_s28 + $0xc8] sm:$0xff]  }
 0x1bc   : > { %3449 = vmatmul.bf16.gmra.mxu1 %v935_v1  ;;  %5081 = vmatmul.bf16.gmra.mxu0 %v4198_v26  ;;  %v2991_v1 = vadd.f32 %v2990_v59, %v7186_v7  ;;  %v7879_v26 = vrot.slane %v4220_v13, 4  ;;  %v4232_v7 = vor.u32 %v7865_v16, %v7863_v5  ;;  %v4240_v13 = vor.u32 %v4239_v36, %v4236_v44  ;;  %v5877_v16 = vld [vmem:[%s6860_s28 + $0x100] sm:$0xf] }
 0x1bd   : > { %4903 = vmatmul.bf16.gmra.mxu2 %v4172_v53  ;;  %4992 = vmatmul.bf16.gmra.mxu3 %v4180_v19  ;;  %v7875_v29 = vadd.f32 %v7819_v2, %v3310_v12  ;;  %v604_v53 = vunpack.c.l.b16 %v279_v20  ;;  %v4253_v2 = vrot.slane %v4251_v48, 3  ;;  %v1012_v51 = vor.u32 %v1011_v46, %v1008_v61 }
 0x1be   : > { %v1020_v32 = vor.u32 %v1019_v47, %v1016_v57  ;;  %v7887_v8 = vor.u32 %v3779_v43, %v3776_v27  ;;  %v3915_v25 = vrot.slane %v3884_v39, 5  ;;  %v4215_v12 = vsel %vm677_vm0, %v4206_v9, %v4214_v58 }
 0x1bf   : > { %v620_v59 = vpack.c.b16 %v604_v53, %v604_v53  ;;  %v653_v37 = vrot.slane %v6769_v35, 5  ;;  %v4249_v44 = vor.u32 %v4248_v63, %v4245_v31  ;;  %v4257_v36 = vor.u32 %v4256_v38, %v4253_v2 }
 0x1c0   : > { %v3079_v19 = vpop.f32.mrf.mxu2  ;;  %v3312_v60 = vpop.f32.mrf.mxu3  ;;  %v4269_v48 = vshrl.u32 %v3914_v6, 16  ;;  %v6288_v22 = vunpack.c.h.b16 %v6437_v42  ;;  %v4223_v27 = vor.u32 %v7879_v26, %v7872_v21  ;;  %v4241_v43 = vsel %vm677_vm0, %v4232_v7, %v4240_v13  ;;  %v6716_v26 = vld [vmem:[%s6860_s28 + $0xf4] sm:$0xff]  }
 0x1c1   : > { %v3080_v4 = vadd.f32 %v3079_v19, %v2991_v1  ;;  %v2992_v40 = vpop.f32.mrf.mxu1  ;;  %v7882_v62 = vpop.f32.mrf.mxu0  ;;  %v654_v5 = vrot.slane %v620_v59, 5  ;;  %v4272_v3 = vshll.u32 %v3914_v6, 16  ;;  %v7905_v28 = vsel %vm677_vm0, %v1012_v51, %v1020_v32 }
 0x1c2   : > { %v4260_v34 = vshrl.u32 %v7887_v8, 16  ;;  %v3916_v9 = vsel %vm628_vm1, %v3914_v6, %v3915_v25  ;;  %v3869_v58 = vunpack.c.l.b16 %v5877_v16  ;;  %v2993_v39 = vadd.f32 %v2992_v40, %v7199_v49 }
 0x1c3   : > { %v3313_v11 = vadd.f32 %v3312_v60, %v3080_v4  ;;  %v655_v61 = vsel %vm628_vm1, %v653_v37, %v654_v5  ;;  %v3782_v21 = vshrl.u32 %v6437_v42, 16  ;;  %v3785_v46 = vshll.u32 %v6437_v42, 16 }
 0x1c4   : > { %v7912_v20 = vsel %vm677_vm0, %v4249_v44, %v4257_v36  ;;  %v7915_v1 = vrot.slane %v4269_v48, 3  ;;  %v3686_v53 = vpack.c.b16 %v6288_v22, %v6288_v22  ;;  %v7920_v49 = vrot.slane %v4272_v3, 4  ;;  %v283_v3 = vld [vmem:[%s6860_s28 + $0xe8] sm:$0xf] }
 0x1c5   : > { %v7902_v30 = vadd.f32 %v7868_v24, %v3313_v11  ;;  %v4263_v24 = vshll.u32 %v7887_v8, 16  ;;  %v4277_v31 = vshrl.u32 %v3916_v9, 16  ;;  %v4280_v63 = vshll.u32 %v3916_v9, 16 }
 0x1c6   : > { %v1049_v2 = vshrl.u32 %v653_v37, 16  ;;  %v1052_v38 = vshll.u32 %v653_v37, 16  ;;  %v1057_v4 = vshrl.u32 %v655_v61, 16  ;;  %v1060_v40 = vshll.u32 %v655_v61, 16 }
 0x1c7   : > { %v3784_v13 = vrot.slane %v3782_v21, 4  ;;  %v3787_v59 = vrot.slane %v3785_v46, 5  ;;  %v3885_v51 = vpack.c.b16 %v3869_v58, %v3869_v58  ;;  %v4286_v32 = vshrl.u32 %v6716_v26, 16 }
 0x1c8   : > { %v3081_v57 = vpop.f32.mrf.mxu2  ;;  %v3314_v47 = vpop.f32.mrf.mxu3  ;;  %v4289_v8 = vshll.u32 %v6716_v26, 16  ;;  %v4294_v25 = vshrl.u32 %v3686_v53, 16  ;;  %v4297_v11 = vshll.u32 %v3686_v53, 16  ;;  %v4279_v35 = vrot.slane %v4277_v31, 3 }
 0x1c9   : > { %v3082_v19 = vadd.f32 %v3081_v57, %v2993_v39  ;;  %v2995_v6 = vpop.f32.mrf.mxu1  ;;  %v7918_v60 = vpop.f32.mrf.mxu0  ;;  %v4282_v5 = vrot.slane %v4280_v63, 4  ;;  %v3917_v16 = vrot.slane %v6437_v42, 5  ;;  %v1051_v44 = vrot.slane %v1049_v2, 3 }
 0x1ca   : > { %v1054_v36 = vrot.slane %v1052_v38, 4  ;;  %v1059_v48 = vrot.slane %v1057_v4, 3  ;;  %v1062_v22 = vrot.slane %v1060_v40, 4  ;;  %v3918_v58 = vrot.slane %v3885_v51, 5 }
 0x1cb   : > { %v3315_v7 = vadd.f32 %v3314_v47, %v3082_v19  ;;  %v605_v39 = vunpack.c.l.b16 %v283_v3  ;;  %v4296_v46 = vrot.slane %v4294_v25, 3  ;;  %v4299_v42 = vrot.slane %v4297_v11, 4  ;;  %v6770_v25 = vld [vmem:[%s6860_s28 + $0xe0] sm:$0xff]  }
 0x1cc   : > { %3454 = vmatmul.bf16.gmra.mxu1 %v7854_v10  ;;  %5086 = vmatmul.bf16.gmra.mxu0 %v4241_v43  ;;  %v8380_v10 = vld [vmem:[#allocation2_spill] sm:$0xff]  ;;  %v3788_v43 = vor.u32 %v3787_v59, %v3784_v13  ;;  %v4262_v26 = vrot.slane %v4260_v34, 3  ;;  %v4312_v53 = vshrl.u32 %v3917_v16, 16  ;;  %v4265_v31 = vrot.slane %v4263_v24, 4  ;;  %v6438_v13 = vld [vmem:[%s6860_s28 + $0x110] sm:$0xff]  }
 0x1cd   : > { %4908 = vmatmul.bf16.gmra.mxu2 %v4215_v12  ;;  %4997 = vmatmul.bf16.gmra.mxu3 %v4223_v27  ;;  %v7924_v37 = vadd.f32 %v7882_v62, %v3315_v7  ;;  %v2996_v9 = vadd.f32 %v2995_v6, %v8380_v10  ;;  %v4288_v12 = vrot.slane %v4286_v32, 3  ;;  %v4291_v27 = vrot.slane %v4289_v8, 4  ;;  %v8382_v10 = vld [vmem:[#allocation3_spill] sm:$0xff] }
 0x1ce   : > { %v621_v19 = vpack.c.b16 %v605_v39, %v605_v39  ;;  %v4275_v6 = vor.u32 %v7920_v49, %v7915_v1  ;;  %v4283_v63 = vor.u32 %v4282_v5, %v4279_v35  ;;  %v4315_v2 = vshll.u32 %v3917_v16, 16  ;;  %v5881_v1 = vld [vmem:[%s6860_s28 + $0x118] sm:$0xf] }
 0x1cf   : > { %v4303_v4 = vshrl.u32 %v3788_v43, 16  ;;  %v4306_v40 = vshll.u32 %v3788_v43, 16  ;;  %v3919_v7 = vsel %vm628_vm1, %v3917_v16, %v3918_v58  ;;  %v1055_v59 = vor.u32 %v1054_v36, %v1051_v44 }
 0x1d0   : > { %v3084_v61 = vpop.f32.mrf.mxu2  ;;  %v3317_v21 = vpop.f32.mrf.mxu3  ;;  %v1063_v51 = vor.u32 %v1062_v22, %v1059_v48  ;;  %v4292_v32 = vor.u32 %v4291_v27, %v4288_v12  ;;  %v4300_v34 = vor.u32 %v4299_v42, %v4296_v46  ;;  %v7934_v8 = vrot.slane %v4312_v53, 3 }
 0x1d1   : > { %v3085_v57 = vadd.f32 %v3084_v61, %v2996_v9  ;;  %v2997_v62 = vpop.f32.mrf.mxu1  ;;  %v7928_v47 = vpop.f32.mrf.mxu0  ;;  %v656_v24 = vrot.slane %v6770_v25, 5  ;;  %v657_v11 = vrot.slane %v621_v19, 5  ;;  %v7941_v35 = vrot.slane %v4315_v2, 4  ;;  %v6717_v61 = vld [vmem:[%s6860_s28 + $0x10c] sm:$0xff]  }
 0x1d2   : > { %v4320_v5 = vshrl.u32 %v3919_v7, 16  ;;  %v4323_v3 = vshll.u32 %v3919_v7, 16  ;;  %v6292_v16 = vunpack.c.h.b16 %v6438_v13  ;;  %v2998_v44 = vadd.f32 %v2997_v62, %v8382_v10 }
 0x1d3   : > { %v3318_v38 = vadd.f32 %v3317_v21, %v3085_v57  ;;  %v4266_v36 = vor.u32 %v4265_v31, %v4262_v26  ;;  %v7944_v48 = vrot.slane %v4303_v4, 3  ;;  %v7946_v22 = vrot.slane %v4306_v40, 4 }
 0x1d4   : > { %v4284_v58 = vsel %vm677_vm0, %v4275_v6, %v4283_v63  ;;  %v7950_v39 = vsel %vm677_vm0, %v1055_v59, %v1063_v51  ;;  %v3870_v21 = vunpack.c.l.b16 %v5881_v1  ;;  %v658_v42 = vsel %vm628_vm1, %v656_v24, %v657_v11  ;;  %v287_v1 = vld [vmem:[%s6860_s28 + $0x100] sm:$0xf] }
 0x1d5   : > { %v7939_v49 = vadd.f32 %v7918_v60, %v3318_v38  ;;  %v7953_v60 = vsel %vm677_vm0, %v4292_v32, %v4300_v34  ;;  %v3790_v57 = vshrl.u32 %v6438_v13, 16  ;;  %v3793_v62 = vshll.u32 %v6438_v13, 16 }
 0x1d6   : > { %v4318_v26 = vor.u32 %v7941_v35, %v7934_v8  ;;  %v4322_v53 = vrot.slane %v4320_v5, 3  ;;  %v4325_v19 = vrot.slane %v4323_v3, 4  ;;  %v3688_v31 = vpack.c.b16 %v6292_v16, %v6292_v16  ;;  %v8384_v35 = vld [vmem:[#allocation4_spill] sm:$0xff] }
 0x1d7   : > { %8381 = vst [vmem:[#allocation2_spill] sm:$0xff] %v7939_v49  ;;  %v1092_v2 = vshrl.u32 %v656_v24, 16  ;;  %v1095_v38 = vshll.u32 %v656_v24, 16  ;;  %v1100_v4 = vshrl.u32 %v658_v42, 16  ;;  %v1103_v40 = vshll.u32 %v658_v42, 16 }
 0x1d8   : > { %v3086_v9 = vpop.f32.mrf.mxu2  ;;  %v3319_v43 = vpop.f32.mrf.mxu3  ;;  %v4329_v7 = vshrl.u32 %v6717_v61, 16  ;;  %v3886_v59 = vpack.c.b16 %v3870_v21, %v3870_v21  ;;  %v4332_v51 = vshll.u32 %v6717_v61, 16  ;;  %v3792_v32 = vrot.slane %v3790_v57, 4 }
 0x1d9   : > { %v3087_v12 = vadd.f32 %v3086_v9, %v2998_v44  ;;  %v3000_v27 = vpop.f32.mrf.mxu1  ;;  %v7956_v46 = vpop.f32.mrf.mxu0  ;;  %v3795_v34 = vrot.slane %v3793_v62, 5  ;;  %v4326_v25 = vor.u32 %v4325_v19, %v4322_v53  ;;  %v4337_v24 = vshrl.u32 %v3688_v31, 16 }
 0x1da   : > { %v4340_v11 = vshll.u32 %v3688_v31, 16  ;;  %v3001_v5 = vadd.f32 %v3000_v27, %v8384_v35  ;;  %v7970_v3 = vrot.slane %v1092_v2, 3  ;;  %v7972_v16 = vrot.slane %v1095_v38, 4  ;;  %v5885_v31 = vld [vmem:[%s6860_s28 + $0x130] sm:$0xf]  ;;  %v6771_v38 = vld [vmem:[%s6860_s28 + $0xf8] sm:$0xff]  }
 0x1db   : > { %v3320_v6 = vadd.f32 %v3319_v43, %v3087_v12  ;;  %v7978_v9 = vrot.slane %v4329_v7, 3  ;;  %v3921_v43 = vrot.slane %v3886_v59, 5  ;;  %v7981_v12 = vrot.slane %v4332_v51, 4 }
 0x1dc   : > { %3459 = vmatmul.bf16.gmra.mxu1 %v7905_v28  ;;  %5091 = vmatmul.bf16.gmra.mxu0 %v4284_v58  ;;  %v3920_v28 = vrot.slane %v6438_v13, 5  ;;  %v6439_v13 = vld [vmem:[%s6860_s28 + $0x128] sm:$0xff]   ;;  %v7983_v27 = vor.u32 %v3795_v34, %v3792_v32  ;;  %v4327_v57 = vsel %vm677_vm0, %v4318_v26, %v4326_v25  ;;  %v7986_v62 = vrot.slane %v4337_v24, 3 }
 0x1dd   : > { %4913 = vmatmul.bf16.gmra.mxu2 %v7912_v20  ;;  %5002 = vmatmul.bf16.gmra.mxu3 %v4266_v36  ;;  %v7966_v8 = vadd.f32 %v7928_v47, %v3320_v6  ;;  %v606_v20 = vunpack.c.l.b16 %v287_v1  ;;  %v7974_v36 = vrot.slane %v1100_v4, 3  ;;  %v7976_v47 = vrot.slane %v1103_v40, 4 }
 0x1de   : > { %v4355_v53 = vshrl.u32 %v3920_v28, 16  ;;  %v6296_v19 = vunpack.c.h.b16 %v6439_v13  ;;  %v1098_v2 = vor.u32 %v7972_v16, %v7970_v3  ;;  %v659_v4 = vrot.slane %v6771_v38, 5  ;;  %v8386_v16 = vld [vmem:[#allocation5_spill] sm:$0xff] }
 0x1df   : > { %8383 = vst [vmem:[#allocation3_spill] sm:$0xff] %v7966_v8  ;;  %v622_v42 = vpack.c.b16 %v606_v20, %v606_v20  ;;  %v1106_v7 = vor.u32 %v7976_v47, %v7974_v36  ;;  %v7994_v59 = vrot.slane %v4340_v11, 4  ;;  %v3922_v26 = vsel %vm628_vm1, %v3920_v28, %v3921_v43  ;;  %v6718_v11 = vld [vmem:[%s6860_s28 + $0x124] sm:$0xff]  }
 0x1e0   : > { %v3089_v10 = vpop.f32.mrf.mxu2  ;;  %v3322_v44 = vpop.f32.mrf.mxu3  ;;  %v4358_v51 = vshll.u32 %v3920_v28, 16  ;;  %v4346_v34 = vshrl.u32 %v7983_v27, 16  ;;  %v3871_v25 = vunpack.c.l.b16 %v5885_v31  ;;  %v4349_v1 = vshll.u32 %v7983_v27, 16 }
 0x1e1   : > { %v3090_v58 = vadd.f32 %v3089_v10, %v3001_v5  ;;  %v3002_v61 = vpop.f32.mrf.mxu1  ;;  %v3413_v21 = vpop.f32.mrf.mxu0  ;;  %v660_v40 = vrot.slane %v622_v42, 5  ;;  %v8004_v35 = vrot.slane %v4355_v53, 3  ;;  %v3690_v3 = vpack.c.b16 %v6296_v19, %v6296_v19 }
 0x1e2   : > { %v3003_v20 = vadd.f32 %v3002_v61, %v8386_v16  ;;  %v4363_v28 = vshrl.u32 %v3922_v26, 16  ;;  %v3798_v10 = vshrl.u32 %v6439_v13, 16  ;;  %v8009_v43 = vrot.slane %v4358_v51, 4 }
 0x1e3   : > { %v3323_v6 = vadd.f32 %v3322_v44, %v3090_v58  ;;  %v661_v5 = vsel %vm628_vm1, %v659_v4, %v660_v40  ;;  %v3801_v44 = vshll.u32 %v6439_v13, 16  ;;  %v4366_v58 = vshll.u32 %v3922_v26, 16 }
 0x1e4   : > { %v1138_v42 = vshll.u32 %v659_v4, 16  ;;  %v1146_v38 = vshll.u32 %v661_v5, 16  ;;  %v3887_v40 = vpack.c.b16 %v3871_v25, %v3871_v25  ;;  %v4372_v32 = vshrl.u32 %v6718_v11, 16 }
 0x1e5   : > { %v8001_v24 = vadd.f32 %v7956_v46, %v3323_v6  ;;  %v1135_v46 = vshrl.u32 %v659_v4, 16  ;;  %v1143_v6 = vshrl.u32 %v661_v5, 16  ;;  %v4375_v19 = vshll.u32 %v6718_v11, 16 }
 0x1e6   : > { %v4380_v63 = vshrl.u32 %v3690_v3, 16  ;;  %v4383_v61 = vshll.u32 %v3690_v3, 16  ;;  %v3800_v8 = vrot.slane %v3798_v10, 4  ;;  %v3803_v49 = vrot.slane %v3801_v44, 5 }
 0x1e7   : > { %8385 = vst [vmem:[#allocation4_spill] sm:$0xff] %v8001_v24  ;;  %v4365_v24 = vrot.slane %v4363_v28, 3  ;;  %v4368_v26 = vrot.slane %v4366_v58, 4  ;;  %v1137_v4 = vrot.slane %v1135_v46, 3  ;;  %v1140_v51 = vrot.slane %v1138_v42, 4 }
 0x1e8   : > { %v3091_v36 = vpop.f32.mrf.mxu2  ;;  %v3324_v47 = vpop.f32.mrf.mxu3  ;;  %v8387_v25 = vor.u32 %v7946_v22, %v7944_v48  ;;  %v1145_v5 = vrot.slane %v1143_v6, 3  ;;  %v1148_v11 = vrot.slane %v1146_v38, 4  ;;  %v3924_v3 = vrot.slane %v3887_v40, 5 }
 0x1e9   : > { %v3092_v31 = vadd.f32 %v3091_v36, %v3003_v20  ;;  %v3425_v27 = vpop.f32.mrf.mxu1  ;;  %v5057_v53 = vpop.f32.mrf.mxu0  ;;  %v3923_v20 = vrot.slane %v6439_v13, 5  ;;  %v4374_v10 = vrot.slane %v4372_v32, 3  ;;  %v4377_v44 = vrot.slane %v4375_v19, 4 }
 0x1ea   : > { %v4385_v36 = vrot.slane %v4383_v61, 4  ;;  %v3804_v13 = vor.u32 %v3803_v49, %v3800_v8  ;;  %v8024_v46 = vrot.slane %v4346_v34, 3  ;;  %v4369_v32 = vor.u32 %v4368_v26, %v4365_v24  ;;  %v5889_v8 = vld [vmem:[%s6860_s28 + $0x148] sm:$0xf] }
 0x1eb   : > { %v3325_v16 = vadd.f32 %v3324_v47, %v3092_v31  ;;  %v8020_v47 = vsel %vm677_vm0, %v1098_v2, %v1106_v7  ;;  %v1141_v31 = vor.u32 %v1140_v51, %v1137_v4  ;;  %v4378_v6 = vor.u32 %v4377_v44, %v4374_v10 }
 0x1ec   : > { %3464 = vmatmul.bf16.gmra.mxu1 %v7950_v39  ;;  %5096 = vmatmul.bf16.gmra.mxu0 %v4327_v57  ;;  %v4382_v39 = vrot.slane %v4380_v63, 3  ;;  %v291_v57 = vld [vmem:[%s6860_s28 + $0x118] sm:$0xf]  ;;  %v4361_v63 = vor.u32 %v8009_v43, %v8004_v35  ;;  %v4398_v38 = vshrl.u32 %v3923_v20, 16  ;;  %v4389_v40 = vshrl.u32 %v3804_v13, 16  ;;  %v6440_v35 = vld [vmem:[%s6860_s28 + $0x140] sm:$0xff]  }
 0x1ed   : > { %4918 = vmatmul.bf16.gmra.mxu2 %v7953_v60  ;;  %5007 = vmatmul.bf16.gmra.mxu3 %v8387_v25  ;;  %v8016_v28 = vadd.f32 %v3413_v21, %v3325_v16  ;;  %v4343_v60 = vor.u32 %v7994_v59, %v7986_v62  ;;  %v607_v48 = vunpack.c.l.b16 %v291_v57  ;;  %v8026_v21 = vrot.slane %v4349_v1, 4  ;;  %v6772_v43 = vld [vmem:[%s6860_s28 + $0x110] sm:$0xff]  }
 0x1ee   : > { %v3925_v62 = vsel %vm628_vm1, %v3923_v20, %v3924_v3  ;;  %v1149_v59 = vor.u32 %v1148_v11, %v1145_v5  ;;  %v4386_v34 = vor.u32 %v4385_v36, %v4382_v39  ;;  %v4392_v19 = vshll.u32 %v3804_v13, 16 }
 0x1ef   : > { %v623_v49 = vpack.c.b16 %v607_v48, %v607_v48  ;;  %v4401_v61 = vshll.u32 %v3923_v20, 16  ;;  %v4406_v24 = vshrl.u32 %v3925_v62, 16  ;;  %v662_v16 = vrot.slane %v6772_v43, 5  ;;  %v6719_v48 = vld [vmem:[%s6860_s28 + $0x13c] sm:$0xff]  }
 0x1f0   : > { %v4879_v22 = vpop.f32.mrf.mxu2  ;;  %v4968_v58 = vpop.f32.mrf.mxu3  ;;  %v3872_v25 = vunpack.c.l.b16 %v5889_v8  ;;  %v3426_v4 = vadd.f32 %v3425_v27, %v7291_v41  ;;  %v8388_v51 = vor.u32 %v7981_v12, %v7978_v9  ;;  %v4409_v11 = vshll.u32 %v3925_v62, 16 }
 0x1f1   : > { %v4969_v42 = vadd.f32 %v4968_v58, %v4879_v22  ;;  %v3427_v2 = vpop.f32.mrf.mxu1  ;;  %v5059_v7 = vpop.f32.mrf.mxu0  ;;  %v663_v26 = vrot.slane %v623_v49, 5  ;;  %v4370_v20 = vsel %vm677_vm0, %v4361_v63, %v4369_v32  ;;  %v8043_v3 = vsel %vm677_vm0, %v1141_v31, %v1149_v59  ;;  %v8389_v31 = vld [vmem:[#allocation6_spill] sm:$0xff] }
 0x1f2   : > { %v4344_v5 = vsel %vm677_vm0, %v8388_v51, %v4343_v60  ;;  %v8046_v10 = vsel %vm677_vm0, %v4378_v6, %v4386_v34  ;;  %v6300_v44 = vunpack.c.h.b16 %v6440_v35  ;;  %v8048_v27 = vrot.slane %v4389_v40, 3  ;;  %v295_v51 = vld [vmem:[%s6860_s28 + $0x130] sm:$0xf] }
 0x1f3   : > { %v5058_v1 = vadd.f32 %v5057_v53, %v4969_v42  ;;  %v4352_v53 = vor.u32 %v8026_v21, %v8024_v46  ;;  %v8050_v9 = vrot.slane %v4398_v38, 3  ;;  %v8052_v12 = vrot.slane %v4401_v61, 4 }
 0x1f4   : > { %v8054_v57 = vrot.slane %v4392_v19, 4  ;;  %v8056_v60 = vrot.slane %v4406_v24, 3  ;;  %v664_v13 = vsel %vm628_vm1, %v662_v16, %v663_v26  ;;  %v3888_v22 = vpack.c.b16 %v3872_v25, %v3872_v25 }
 0x1f5   : > { %v5137_v41 = vadd.f32 %v5058_v1, %v3426_v4  ;;  %v8060_v63 = vrot.slane %v4409_v11, 4  ;;  %v3806_v32 = vshrl.u32 %v6440_v35, 16  ;;  %v3809_v42 = vshll.u32 %v6440_v35, 16 }
 0x1f6   : > { %v3428_v62 = vadd.f32 %v3427_v2, %v8389_v31  ;;  %v1178_v49 = vshrl.u32 %v662_v16, 16  ;;  %v1181_v8 = vshll.u32 %v662_v16, 16  ;;  %v3692_v59 = vpack.c.b16 %v6300_v44, %v6300_v44 }
 0x1f7   : > { %v5169_v6 = vmax.f32 %v5137_v41, 0.0  ;;  %v1186_v38 = vshrl.u32 %v664_v13, 16  ;;  %v1189_v1 = vshll.u32 %v664_v13, 16  ;;  %v4404_v40 = vor.u32 %v8052_v12, %v8050_v9 }
 0x1f8   : > { %v4881_v39 = vpop.f32.mrf.mxu2  ;;  %v4970_v36 = vpop.f32.mrf.mxu3  ;;  %v4415_v19 = vshrl.u32 %v6719_v48, 16  ;;  %v8066_v61 = vrot.slane %v6440_v35, 5  ;;  %v3927_v24 = vrot.slane %v3888_v22, 5  ;;  %v3808_v43 = vrot.slane %v3806_v32, 4 }
 0x1f9   : > { %v4971_v58 = vadd.f32 %v4970_v36, %v4881_v39  ;;  %v3430_v46 = vpop.f32.mrf.mxu1  ;;  %v5062_v21 = vpop.f32.mrf.mxu0  ;;  %v3811_v16 = vrot.slane %v3809_v42, 5  ;;  %v8071_v26 = vrot.slane %v1178_v49, 3  ;;  %v4418_v25 = vshll.u32 %v6719_v48, 16 }
 0x1fa   : > { %v4423_v4 = vshrl.u32 %v3692_v59, 16  ;;  %v5312_v11 = vmul.f32 %v5169_v6, %v5169_v6  ;;  %v8078_v44 = vrot.slane %v1189_v1, 4  ;;  %v8085_v41 = vrot.slane %v4415_v19, 3 }
 0x1fb   : > { %v5060_v34 = vadd.f32 %v5059_v7, %v4971_v58  ;;  %v4412_v7 = vor.u32 %v8060_v63, %v8056_v60  ;;  %v4426_v9 = vshll.u32 %v3692_v59, 16  ;;  %v3928_v12 = vsel %vm628_vm1, %v8066_v61, %v3927_v24  ;;  %v8390_v63 = vld [vmem:[#allocation7_spill] sm:$0xff] }
 0x1fc   : > { %3469 = vmatmul.bf16.gmra.mxu1 %v8020_v47  ;;  %5101 = vmatmul.bf16.gmra.mxu0 %v4370_v20  ;;  %v8073_v47 = vrot.slane %v1181_v8, 4  ;;  %v8076_v20 = vrot.slane %v1186_v38, 3  ;;  %v608_v39 = vunpack.c.l.b16 %v295_v51  ;;  %v3431_v32 = vadd.f32 %v3430_v46, %v8390_v63 }
 0x1fd   : > { %v5138_v2 = vadd.f32 %v5060_v34, %v3428_v62  ;;  %4923 = vmatmul.bf16.gmra.mxu2 %v4344_v5  ;;  %5012 = vmatmul.bf16.gmra.mxu3 %v4352_v53  ;;  %v8090_v42 = vrot.slane %v4418_v25, 4  ;;  %v8092_v31 = vrot.slane %v4423_v4, 3  ;;  %v3812_v62 = vor.u32 %v3811_v16, %v3808_v43 }
 0x1fe   : > { %v4441_v59 = vshrl.u32 %v8066_v61, 16  ;;  %v624_v34 = vpack.c.b16 %v608_v39, %v608_v39  ;;  %v8096_v38 = vrot.slane %v4426_v9, 4  ;;  %v4449_v1 = vshrl.u32 %v3928_v12, 16 }
 0x1ff   : > { %v5170_v35 = vmax.f32 %v5138_v2, 0.0  ;;  %v4452_v19 = vshll.u32 %v3928_v12, 16  ;;  %v4395_v24 = vor.u32 %v8054_v57, %v8048_v27  ;;  %v6773_v2 = vld [vmem:[%s6860_s28 + $0x128] sm:$0xff]   ;;  %v4432_v4 = vshrl.u32 %v3812_v62, 16  ;;  %v8114_v27 = vld [vmem:[%s6860_s28 + $0x158] sm:$0xff]  }
 0x200   : > { %v4884_v5 = vpop.f32.mrf.mxu2  ;;  %v4973_v53 = vpop.f32.mrf.mxu3  ;;  %v665_v43 = vrot.slane %v6773_v2, 5  ;;  %v666_v16 = vrot.slane %v624_v34, 5  ;;  %v4435_v51 = vshll.u32 %v3812_v62, 16  ;;  %v6720_v57 = vld [vmem:[%s6860_s28 + $0x154] sm:$0xff]   ;;  %v8122_v39 = vrot.slane %v4449_v1, 3 }
 0x201   : > { %v6320_v36 = vpack.c.bf16 %v5170_v35, %v5169_v6  ;;  %v5272_v60 = vadd.f32 %v5170_v35, %v5169_v6  ;;  %v5313_v13 = vmul.f32 %v5170_v35, %v5170_v35  ;;  %v4974_v48 = vadd.f32 %v4973_v53, %v4884_v5  ;;  %v3432_v22 = vpop.f32.mrf.mxu1  ;;  %v5064_v58 = vpop.f32.mrf.mxu0  ;;  %v5893_v53 = vld [vmem:[%s6860_s28 + $0x160] sm:$0xf] }
 0x202   : > { %v4444_v6 = vshll.u32 %v8066_v61, 16  ;;  %v8111_v5 = vrot.slane %v4441_v59, 3  ;;  %v3433_v59 = vadd.f32 %v3432_v22, %v7322_v55  ;;  %v1221_v34 = vshrl.u32 %v665_v43, 16 }
 0x203   : > { %6321 = vst [vmem:[%s8083_s22] sm:$0xff] %v6320_v36   ;;  %v5344_v49 = vadd.f32 %v5313_v13, %v5312_v11  ;;  %v5063_v8 = vadd.f32 %v5062_v21, %v4974_v48  ;;  %v4413_v21 = vsel %vm677_vm0, %v4404_v40, %v4412_v7  ;;  %v1192_v11 = vor.u32 %v8078_v44, %v8076_v20 }
 0x204   : > { %v8120_v12 = vrot.slane %v4444_v6, 4  ;;  %v8124_v36 = vrot.slane %v4452_v19, 4  ;;  %v6304_v6 = vunpack.c.h.b16 %v8114_v27  ;;  %v1224_v19 = vshll.u32 %v665_v43, 16 }
 0x205   : > { %v5139_v46 = vadd.f32 %v5063_v8, %v3431_v32  ;;  %v667_v8 = vsel %vm628_vm1, %v665_v43, %v666_v16  ;;  %v4458_v35 = vshrl.u32 %v6720_v57, 16  ;;  %v3817_v16 = vshll.u32 %v8114_v27, 16 }
 0x206   : > { %v8138_v55 = vrot.slane %v4435_v51, 4  ;;  %v4447_v22 = vor.u32 %v8120_v12, %v8111_v5  ;;  %v3694_v43 = vpack.c.b16 %v6304_v6, %v6304_v6  ;;  %v299_v6 = vld [vmem:[%s6860_s28 + $0x148] sm:$0xf] }
 0x207   : > { %v8105_v61 = vmax.f32 %v5139_v46, 0.0  ;;  %v3873_v46 = vunpack.c.l.b16 %v5893_v53  ;;  %v1226_v53 = vrot.slane %v1224_v19, 4  ;;  %v3819_v12 = vrot.slane %v3817_v16, 5 }
 0x208   : > { %v4886_v40 = vpop.f32.mrf.mxu2  ;;  %v4975_v7 = vpop.f32.mrf.mxu3  ;;  %v4469_v25 = vshll.u32 %v3694_v43, 16 }
 0x209   : > { %v5273_v13 = vadd.f32 %v5272_v60, %v8105_v61  ;;  %v5314_v48 = vmul.f32 %v8105_v61, %v8105_v61  ;;  %v4976_v63 = vadd.f32 %v4975_v7, %v4886_v40  ;;  %v3435_v32 = vpop.f32.mrf.mxu1  ;;  %v5067_v62 = vpop.f32.mrf.mxu0  ;;  %v8133_v60 = vrot.slane %v4432_v4, 3 }
 0x20a   : > { %v1229_v40 = vshrl.u32 %v667_v8, 16  ;;  %v3814_v7 = vshrl.u32 %v8114_v27, 16 }
 0x20b   : > { %v5345_v1 = vadd.f32 %v5344_v49, %v5314_v48  ;;  %v5065_v2 = vadd.f32 %v5064_v58, %v4976_v63  ;;  %v1223_v58 = vrot.slane %v1221_v34, 3  ;;  %v1232_v49 = vshll.u32 %v667_v8, 16 }
 0x20c   : > { %3474 = vmatmul.bf16.gmra.mxu1 %v8043_v3  ;;  %5106 = vmatmul.bf16.gmra.mxu0 %v4413_v21  ;;  %v4455_v3 = vor.u32 %v8124_v36, %v8122_v39  ;;  %v4461_v21 = vshll.u32 %v6720_v57, 16  ;;  %v8144_v48 = vrot.slane %v4458_v35, 3  ;;  %v3889_v63 = vpack.c.b16 %v3873_v46, %v3873_v46 }
 0x20d   : > { %v5140_v9 = vadd.f32 %v5065_v2, %v3433_v59  ;;  %4928 = vmatmul.bf16.gmra.mxu2 %v8046_v10  ;;  %5017 = vmatmul.bf16.gmra.mxu3 %v4395_v24  ;;  %v8391_v10 = vld [vmem:[#allocation8_spill] sm:$0xff]  ;;  %v1231_v2 = vrot.slane %v1229_v40, 3  ;;  %v3816_v5 = vrot.slane %v3814_v7, 4  ;;  %v1234_v19 = vrot.slane %v1232_v49, 4 }
 0x20e   : > { %v3436_v24 = vadd.f32 %v3435_v32, %v8391_v10  ;;  %v8149_v35 = vrot.slane %v4461_v21, 4  ;;  %v4466_v46 = vshrl.u32 %v3694_v43, 16  ;;  %v3929_v40 = vrot.slane %v8114_v27, 5 }
 0x20f   : > { %v5172_v4 = vmax.f32 %v5140_v9, 0.0  ;;  %v3930_v7 = vrot.slane %v3889_v63, 5  ;;  %v3820_v16 = vor.u32 %v3819_v12, %v3816_v5  ;;  %v8392_v49 = vor.u32 %v8073_v47, %v8071_v26 }
 0x210   : > { %v4889_v51 = vpop.f32.mrf.mxu2  ;;  %v4978_v59 = vpop.f32.mrf.mxu3  ;;  %v8393_v43 = vor.u32 %v8096_v38, %v8092_v31  ;;  %v1227_v63 = vor.u32 %v1226_v53, %v1223_v58  ;;  %v1235_v20 = vor.u32 %v1234_v19, %v1231_v2  ;;  %v4464_v26 = vor.u32 %v8149_v35, %v8144_v48  ;;  %v6442_v2 = vld [vmem:[%s6860_s28 + $0x170] sm:$0xff]  }
 0x211   : > { %v6325_v39 = vpack.c.bf16 %v5172_v4, %v8105_v61  ;;  %v5274_v36 = vadd.f32 %v5273_v13, %v5172_v4  ;;  %v5315_v8 = vmul.f32 %v5172_v4, %v5172_v4  ;;  %v4979_v34 = vadd.f32 %v4978_v59, %v4889_v51  ;;  %v3437_v57 = vpop.f32.mrf.mxu1  ;;  %v5069_v9 = vpop.f32.mrf.mxu0 }
 0x212   : > { %v609_v61 = vunpack.c.l.b16 %v299_v6  ;;  %v1193_v21 = vsel %vm677_vm0, %v8392_v49, %v1192_v11  ;;  %v4456_v4 = vsel %vm677_vm0, %v4447_v22, %v4455_v3  ;;  %v8174_v44 = vrot.slane %v4466_v46, 3  ;;  %v8395_v6 = vld [vmem:[#allocation9_spill] sm:$0xff] }
 0x213   : > { %6445 = vst [vmem:[%s8083_s22 + $0x8] sm:$0xff] %v6325_v39   ;;  %v5346_v32 = vadd.f32 %v5345_v1, %v5315_v8  ;;  %v5068_v10 = vadd.f32 %v5067_v62, %v4979_v34  ;;  %v8394_v62 = vor.u32 %v8090_v42, %v8085_v41  ;;  %v4438_v1 = vor.u32 %v8138_v55, %v8133_v60  ;;  %v5897_v42 = vld [vmem:[%s6860_s28 + $0x178] sm:$0xf] }
 0x214   : > { %v8176_v31 = vrot.slane %v4469_v25, 4  ;;  %v3931_v41 = vsel %vm628_vm1, %v3929_v40, %v3930_v7  ;;  %v4475_v60 = vshrl.u32 %v3820_v16, 16  ;;  %v4484_v55 = vshrl.u32 %v3929_v40, 16 }
 0x215   : > { %v5141_v13 = vadd.f32 %v5068_v10, %v3436_v24  ;;  %v4430_v27 = vsel %vm677_vm0, %v8394_v62, %v8393_v43  ;;  %v4487_v22 = vshll.u32 %v3929_v40, 16  ;;  %v625_v3 = vpack.c.b16 %v609_v61, %v609_v61  ;;  %v6721_v40 = vld [vmem:[%s6860_s28 + $0x16c] sm:$0xff]  }
 0x216   : > { %v4478_v59 = vshll.u32 %v3820_v16, 16  ;;  %v8185_v5 = vsel %vm677_vm0, %v1227_v63, %v1235_v20  ;;  %v4492_v12 = vshrl.u32 %v3931_v41, 16  ;;  %v4495_v39 = vshll.u32 %v3931_v41, 16 }
 0x217   : > { %v8172_v47 = vmax.f32 %v5141_v13, 0.0  ;;  %v3874_v8 = vunpack.c.l.b16 %v5897_v42  ;;  %v3438_v19 = vadd.f32 %v3437_v57, %v8395_v6  ;;  %v4486_v7 = vrot.slane %v4484_v55, 3 }
 0x218   : > { %v4891_v38 = vpop.f32.mrf.mxu2  ;;  %v4980_v11 = vpop.f32.mrf.mxu3  ;;  %v4489_v61 = vrot.slane %v4487_v22, 4  ;;  %v669_v13 = vrot.slane %v625_v3, 5  ;;  %v6308_v16 = vunpack.c.h.b16 %v6442_v2  ;;  %v4472_v43 = vor.u32 %v8176_v31, %v8174_v44 }
 0x219   : > { %v5275_v58 = vadd.f32 %v5274_v36, %v8172_v47  ;;  %v5316_v53 = vmul.f32 %v8172_v47, %v8172_v47  ;;  %v4981_v24 = vadd.f32 %v4980_v11, %v4891_v38  ;;  %v3440_v51 = vpop.f32.mrf.mxu1  ;;  %v5072_v25 = vpop.f32.mrf.mxu0  ;;  %v6774_v36 = vld [vmem:[%s6860_s28 + $0x140] sm:$0xff]   ;;  %v8192_v62 = vrot.slane %v4475_v60, 3 }
 0x21a   : > { %v668_v10 = vrot.slane %v6774_v36, 5  ;;  %v4494_v57 = vrot.slane %v4492_v12, 3  ;;  %v3822_v63 = vshrl.u32 %v6442_v2, 16  ;;  %v3825_v20 = vshll.u32 %v6442_v2, 16 }
 0x21b   : > { %v5347_v34 = vadd.f32 %v5346_v32, %v5316_v53  ;;  %v5070_v46 = vadd.f32 %v5069_v9, %v4981_v24  ;;  %v8194_v32 = vrot.slane %v4478_v59, 4  ;;  %v4497_v9 = vrot.slane %v4495_v39, 4 }
 0x21c   : > { %3479 = vmatmul.bf16.gmra.mxu1 %v1193_v21  ;;  %5111 = vmatmul.bf16.gmra.mxu0 %v4456_v4  ;;  %v1264_v4 = vshrl.u32 %v668_v10, 16  ;;  %v1267_v41 = vshll.u32 %v668_v10, 16  ;;  %v4501_v42 = vshrl.u32 %v6721_v40, 16  ;;  %v3696_v55 = vpack.c.b16 %v6308_v16, %v6308_v16  ;;  %v303_v16 = vld [vmem:[%s6860_s28 + $0x160] sm:$0xf] }
 0x21d   : > { %v5142_v49 = vadd.f32 %v5070_v46, %v3438_v19  ;;  %4933 = vmatmul.bf16.gmra.mxu2 %v4430_v27  ;;  %5022 = vmatmul.bf16.gmra.mxu3 %v4438_v1  ;;  %v4490_v27 = vor.u32 %v4489_v61, %v4486_v7  ;;  %v670_v1 = vsel %vm628_vm1, %v668_v10, %v669_v13  ;;  %v3824_v39 = vrot.slane %v3822_v63, 4 }
 0x21e   : > { %v3890_v44 = vpack.c.b16 %v3874_v8, %v3874_v8  ;;  %v3441_v59 = vadd.f32 %v3440_v51, %v7381_v17  ;;  %v4498_v12 = vor.u32 %v4497_v9, %v4494_v57  ;;  %v3827_v6 = vrot.slane %v3825_v20, 5 }
 0x21f   : > { %v5174_v21 = vmax.f32 %v5142_v49, 0.0  ;;  %v1272_v36 = vshrl.u32 %v670_v1, 16  ;;  %v1275_v10 = vshll.u32 %v670_v1, 16  ;;  %v4509_v8 = vshrl.u32 %v3696_v55, 16 }
 0x220   : > { %v4894_v38 = vpop.f32.mrf.mxu2  ;;  %v4983_v11 = vpop.f32.mrf.mxu3  ;;  %v4512_v7 = vshll.u32 %v3696_v55, 16  ;;  %v4481_v17 = vor.u32 %v8194_v32, %v8192_v62  ;;  %v3932_v51 = vrot.slane %v6442_v2, 5  ;;  %v3933_v13 = vrot.slane %v3890_v44, 5  ;;  %v6775_v55 = vld [vmem:[%s6860_s28 + $0x158] sm:$0xff]  }
 0x221   : > { %v6330_v31 = vpack.c.bf16 %v5174_v21, %v8172_v47  ;;  %v5276_v60 = vadd.f32 %v5275_v58, %v5174_v21  ;;  %v5317_v22 = vmul.f32 %v5174_v21, %v5174_v21  ;;  %v4984_v3 = vadd.f32 %v4983_v11, %v4894_v38  ;;  %v3442_v53 = vpop.f32.mrf.mxu1  ;;  %v5074_v24 = vpop.f32.mrf.mxu0 }
 0x222   : > { %v4473_v47 = vsel %vm677_vm0, %v4464_v26, %v4472_v43  ;;  %v4504_v58 = vshll.u32 %v6721_v40, 16  ;;  %v8210_v49 = vrot.slane %v4501_v42, 3  ;;  %v3828_v57 = vor.u32 %v3827_v6, %v3824_v39 }
 0x223   : > { %6446 = vst [vmem:[%s8083_s22 + $0x10] sm:$0xff] %v6330_v31   ;;  %v5348_v19 = vadd.f32 %v5347_v34, %v5317_v22  ;;  %v5073_v46 = vadd.f32 %v5072_v25, %v4984_v3  ;;  %v4499_v34 = vsel %vm677_vm0, %v4490_v27, %v4498_v12  ;;  %v8208_v25 = vrot.slane %v1264_v4, 3 }
 0x224   : > { %v8212_v35 = vrot.slane %v1267_v41, 4  ;;  %v8214_v26 = vrot.slane %v1272_v36, 3  ;;  %v8216_v40 = vrot.slane %v1275_v10, 4  ;;  %v8218_v2 = vrot.slane %v4504_v58, 4 }
 0x225   : > { %v5143_v61 = vadd.f32 %v5073_v46, %v3441_v59  ;;  %v8220_v32 = vrot.slane %v4509_v8, 3  ;;  %v8222_v9 = vrot.slane %v4512_v7, 4  ;;  %v610_v63 = vunpack.c.l.b16 %v303_v16  ;;  %v6443_v7 = vld [vmem:[%s6860_s28 + $0x188] sm:$0xff]  }
 0x226   : > { %v3934_v38 = vsel %vm628_vm1, %v3932_v51, %v3933_v13  ;;  %v3443_v11 = vadd.f32 %v3442_v53, %v7402_v0  ;;  %v4518_v27 = vshrl.u32 %v3828_v57, 16  ;;  %v4527_v1 = vshrl.u32 %v3932_v51, 16 }
 0x227   : > { %v5175_v48 = vmax.f32 %v5143_v61, 0.0  ;;  %v671_v44 = vrot.slane %v6775_v55, 5  ;;  %v4521_v3 = vshll.u32 %v3828_v57, 16  ;;  %v4530_v59 = vshll.u32 %v3932_v51, 16 }
 0x228   : > { %v4896_v43 = vpop.f32.mrf.mxu2  ;;  %v4985_v62 = vpop.f32.mrf.mxu3  ;;  %v4535_v12 = vshrl.u32 %v3934_v38, 16  ;;  %v4538_v39 = vshll.u32 %v3934_v38, 16  ;;  %v626_v6 = vpack.c.b16 %v610_v63, %v610_v63  ;;  %v1278_v0 = vor.u32 %v8216_v40, %v8214_v26  ;;  %v6722_v38 = vld [vmem:[%s6860_s28 + $0x184] sm:$0xff]  }
 0x229   : > { %v5277_v20 = vadd.f32 %v5276_v60, %v5175_v48  ;;  %v5318_v21 = vmul.f32 %v5175_v48, %v5175_v48  ;;  %v4986_v4 = vadd.f32 %v4985_v62, %v4896_v43  ;;  %v3445_v42 = vpop.f32.mrf.mxu1  ;;  %v5077_v41 = vpop.f32.mrf.mxu0  ;;  %v1270_v60 = vor.u32 %v8212_v35, %v8208_v25  ;;  %v5901_v25 = vld [vmem:[%s6860_s28 + $0x190] sm:$0xf] }
 0x22a   : > { %v4507_v53 = vor.u32 %v8218_v2, %v8210_v49  ;;  %v1310_v36 = vshll.u32 %v671_v44, 16  ;;  %v8236_v58 = vrot.slane %v4518_v27, 3  ;;  %v8238_v8 = vrot.slane %v4521_v3, 4 }
 0x22b   : > { %v5349_v31 = vadd.f32 %v5348_v19, %v5318_v21  ;;  %v5075_v22 = vadd.f32 %v5074_v24, %v4986_v4  ;;  %v4529_v24 = vrot.slane %v4527_v1, 3  ;;  %v1307_v19 = vshrl.u32 %v671_v44, 16 }
 0x22c   : > { %3484 = vmatmul.bf16.gmra.mxu1 %v8185_v5  ;;  %5116 = vmatmul.bf16.gmra.mxu0 %v4499_v34  ;;  %v4515_v5 = vor.u32 %v8222_v9, %v8220_v32  ;;  %v3446_v61 = vadd.f32 %v3445_v42, %v7424_v50  ;;  %v4537_v13 = vrot.slane %v4535_v12, 3  ;;  %v4540_v16 = vrot.slane %v4538_v39, 4 }
 0x22d   : > { %v5144_v46 = vadd.f32 %v5075_v22, %v3443_v11  ;;  %4938 = vmatmul.bf16.gmra.mxu2 %v4473_v47  ;;  %5027 = vmatmul.bf16.gmra.mxu3 %v4481_v17  ;;  %v4532_v47 = vrot.slane %v4530_v59, 4  ;;  %v672_v34 = vrot.slane %v626_v6, 5  ;;  %v8243_v62 = vrot.slane %v1307_v19, 3  ;;  %v307_v6 = vld [vmem:[%s6860_s28 + $0x178] sm:$0xf] }
 0x22e   : > { %v8245_v2 = vrot.slane %v1310_v36, 4  ;;  %v6312_v32 = vunpack.c.h.b16 %v6443_v7  ;;  %v3830_v50 = vshrl.u32 %v6443_v7, 16  ;;  %v3833_v21 = vshll.u32 %v6443_v7, 16 }
 0x22f   : > { %v5176_v10 = vmax.f32 %v5144_v46, 0.0  ;;  %v3875_v4 = vunpack.c.l.b16 %v5901_v25  ;;  %v1279_v42 = vsel %vm677_vm0, %v1270_v60, %v1278_v0  ;;  %v4516_v27 = vsel %vm677_vm0, %v4507_v53, %v4515_v5 }
 0x230   : > { %v4899_v17 = vpop.f32.mrf.mxu2  ;;  %v4988_v51 = vpop.f32.mrf.mxu3  ;;  %v673_v1 = vsel %vm628_vm1, %v671_v44, %v672_v34  ;;  %v4524_v22 = vor.u32 %v8238_v8, %v8236_v58  ;;  %v3935_v3 = vrot.slane %v6443_v7, 5  ;;  %v3832_v60 = vrot.slane %v3830_v50, 4 }
 0x231   : > { %v6335_v49 = vpack.c.bf16 %v5176_v10, %v5175_v48  ;;  %v5278_v57 = vadd.f32 %v5277_v20, %v5176_v10  ;;  %v5319_v35 = vmul.f32 %v5176_v10, %v5176_v10  ;;  %v4989_v26 = vadd.f32 %v4988_v51, %v4899_v17  ;;  %v3447_v40 = vpop.f32.mrf.mxu1  ;;  %v5079_v43 = vpop.f32.mrf.mxu0 }
 0x232   : > { %v4533_v48 = vor.u32 %v4532_v47, %v4529_v24  ;;  %v4541_v20 = vor.u32 %v4540_v16, %v4537_v13  ;;  %v3891_v55 = vpack.c.b16 %v3875_v4, %v3875_v4  ;;  %v3835_v12 = vrot.slane %v3833_v21, 5  ;;  %v8396_v16 = vld [vmem:[#allocation10_spill] sm:$0xff] }
 0x233   : > { %6447 = vst [vmem:[%s8083_s22 + $0x18] sm:$0xff] %v6335_v49   ;;  %v5350_v9 = vadd.f32 %v5349_v31, %v5319_v35  ;;  %v5078_v63 = vadd.f32 %v5077_v41, %v4989_v26  ;;  %v1313_v41 = vor.u32 %v8245_v2, %v8243_v62  ;;  %v3698_v31 = vpack.c.b16 %v6312_v32, %v6312_v32 }
 0x234   : > { %v3936_v39 = vrot.slane %v3891_v55, 5  ;;  %v4542_v53 = vsel %vm677_vm0, %v4533_v48, %v4541_v20  ;;  %v1315_v44 = vshrl.u32 %v673_v1, 16  ;;  %v4544_v5 = vshrl.u32 %v6722_v38, 16 }
 0x235   : > { %v5145_v11 = vadd.f32 %v5078_v63, %v3446_v61  ;;  %v4547_v24 = vshll.u32 %v6722_v38, 16  ;;  %v1318_v47 = vshll.u32 %v673_v1, 16  ;;  %v4552_v7 = vshrl.u32 %v3698_v31, 16 }
 0x236   : > { %v4555_v61 = vshll.u32 %v3698_v31, 16  ;;  %v3937_v17 = vsel %vm628_vm1, %v3935_v3, %v3936_v39  ;;  %v611_v51 = vunpack.c.l.b16 %v307_v6  ;;  %v3448_v34 = vadd.f32 %v3447_v40, %v8396_v16 }
 0x237   : > { %v8256_v59 = vmax.f32 %v5145_v11, 0.0  ;;  %v3836_v49 = vor.u32 %v3835_v12, %v3832_v60  ;;  %v4573_v35 = vshll.u32 %v3935_v3, 16  ;;  %v4578_v26 = vshrl.u32 %v3937_v17, 16  ;;  %v6776_v11 = vld [vmem:[%s6860_s28 + $0x170] sm:$0xff]  }
 0x238   : > { %v4901_v46 = vpop.f32.mrf.mxu2  ;;  %v4990_v0 = vpop.f32.mrf.mxu3  ;;  %v4581_v32 = vshll.u32 %v3937_v17, 16  ;;  %v1317_v63 = vrot.slane %v1315_v44, 3  ;;  %v4546_v21 = vrot.slane %v4544_v5, 3  ;;  %v4549_v4 = vrot.slane %v4547_v24, 4  ;;  %v6444_v44 = vld [vmem:[%s6860_s28 + $0x1a0] sm:$0xff]  }
 0x239   : > { %v5279_v19 = vadd.f32 %v5278_v57, %v8256_v59  ;;  %v5320_v36 = vmul.f32 %v8256_v59, %v8256_v59  ;;  %v4991_v10 = vadd.f32 %v4990_v0, %v4901_v46  ;;  %v3450_v58 = vpop.f32.mrf.mxu1  ;;  %v5082_v8 = vpop.f32.mrf.mxu0  ;;  %v4570_v57 = vshrl.u32 %v3935_v3, 16 }
 0x23a   : > { %v1320_v48 = vrot.slane %v1318_v47, 4  ;;  %v4554_v20 = vrot.slane %v4552_v7, 3  ;;  %v627_v38 = vpack.c.b16 %v611_v51, %v611_v51  ;;  %v8266_v1 = vrot.slane %v6776_v11, 5  ;;  %v5905_v47 = vld [vmem:[%s6860_s28 + $0x1a8] sm:$0xf] }
 0x23b   : > { %v5351_v13 = vadd.f32 %v5350_v9, %v5320_v36  ;;  %v5080_v25 = vadd.f32 %v5079_v43, %v4991_v10  ;;  %v4557_v9 = vrot.slane %v4555_v61, 4  ;;  %v4561_v43 = vshrl.u32 %v3836_v49, 16  ;;  %v8397_v61 = vld [vmem:[#allocation11_spill] sm:$0xff] }
 0x23c   : > { %3489 = vmatmul.bf16.gmra.mxu1 %v1279_v42  ;;  %5121 = vmatmul.bf16.gmra.mxu0 %v4542_v53  ;;  %v4564_v42 = vshll.u32 %v3836_v49, 16  ;;  %v4572_v3 = vrot.slane %v4570_v57, 3  ;;  %v4583_v60 = vrot.slane %v4581_v32, 4  ;;  %v1321_v5 = vor.u32 %v1320_v48, %v1317_v63 }
 0x23d   : > { %v5146_v50 = vadd.f32 %v5080_v25, %v3448_v34  ;;  %4943 = vmatmul.bf16.gmra.mxu2 %v4516_v27  ;;  %5032 = vmatmul.bf16.gmra.mxu3 %v4524_v22  ;;  %v4575_v27 = vrot.slane %v4573_v35, 4  ;;  %v4580_v22 = vrot.slane %v4578_v26, 3  ;;  %v4550_v24 = vor.u32 %v4549_v4, %v4546_v21 }
 0x23e   : > { %v4558_v36 = vor.u32 %v4557_v9, %v4554_v20  ;;  %v675_v10 = vrot.slane %v627_v38, 5  ;;  %v3451_v17 = vadd.f32 %v3450_v58, %v8397_v61  ;;  %v1350_v16 = vshrl.u32 %v8266_v1, 16 }
 0x23f   : > { %v5178_v40 = vmax.f32 %v5146_v50, 0.0  ;;  %v4563_v34 = vrot.slane %v4561_v43, 3  ;;  %v3841_v25 = vshll.u32 %v6444_v44, 16  ;;  %v4576_v57 = vor.u32 %v4575_v27, %v4572_v3 }
 0x240   : > { %v4904_v55 = vpop.f32.mrf.mxu2  ;;  %v4993_v31 = vpop.f32.mrf.mxu3  ;;  %v4584_v35 = vor.u32 %v4583_v60, %v4580_v22  ;;  %v3876_v26 = vunpack.c.l.b16 %v5905_v47  ;;  %v1322_v32 = vsel %vm677_vm0, %v1313_v41, %v1321_v5  ;;  %v676_v58 = vsel %vm628_vm1, %v8266_v1, %v675_v10 }
 0x241   : > { %v6340_v12 = vpack.c.bf16 %v5178_v40, %v8256_v59  ;;  %v5280_v39 = vadd.f32 %v5279_v19, %v5178_v40  ;;  %v5321_v6 = vmul.f32 %v5178_v40, %v5178_v40  ;;  %v4994_v46 = vadd.f32 %v4993_v31, %v4904_v55  ;;  %v3452_v0 = vpop.f32.mrf.mxu1  ;;  %v5084_v53 = vpop.f32.mrf.mxu0  ;;  %v6723_v31 = vld [vmem:[%s6860_s28 + $0x19c] sm:$0xff]  }
 0x242   : > { %v4566_v59 = vrot.slane %v4564_v42, 4  ;;  %v3838_v19 = vshrl.u32 %v6444_v44, 16  ;;  %v3843_v21 = vrot.slane %v3841_v25, 5  ;;  %v3892_v4 = vpack.c.b16 %v3876_v26, %v3876_v26 }
 0x243   : > { %6448 = vst [vmem:[%s8083_s22 + $0x20] sm:$0xff] %v6340_v12   ;;  %v5352_v7 = vadd.f32 %v5351_v13, %v5321_v6  ;;  %v5083_v51 = vadd.f32 %v5082_v8, %v4994_v46  ;;  %v4559_v13 = vsel %vm677_vm0, %v4550_v24, %v4558_v36  ;;  %v6316_v8 = vunpack.c.h.b16 %v6444_v44 }
 0x244   : > { %v3840_v63 = vrot.slane %v3838_v19, 4  ;;  %v4567_v9 = vor.u32 %v4566_v59, %v4563_v34  ;;  %v8281_v38 = vrot.slane %v1350_v16, 3  ;;  %v1353_v62 = vshll.u32 %v8266_v1, 16 }
 0x245   : > { %v5147_v49 = vadd.f32 %v5083_v51, %v3451_v17  ;;  %v3938_v2 = vrot.slane %v6444_v44, 5  ;;  %v4585_v55 = vsel %vm677_vm0, %v4576_v57, %v4584_v35  ;;  %v1358_v3 = vshrl.u32 %v676_v58, 16 }
 0x246   : > { %v1361_v27 = vshll.u32 %v676_v58, 16  ;;  %v3700_v22 = vpack.c.b16 %v6316_v8, %v6316_v8  ;;  %v3939_v60 = vrot.slane %v3892_v4, 5  ;;  %v3453_v6 = vadd.f32 %v3452_v0, %v7492_v56 }
 0x247   : > { %v5179_v50 = vmax.f32 %v5147_v49, 0.0  ;;  %v3844_v5 = vor.u32 %v3843_v21, %v3840_v63  ;;  %v1355_v1 = vrot.slane %v1353_v62, 4  ;;  %v4613_v44 = vshrl.u32 %v3938_v2, 16  ;;  %v8398_v62 = vld [vmem:[#allocation12_spill] sm:$0xff] }
 0x248   : > { %v4906_v48 = vpop.f32.mrf.mxu2  ;;  %v4995_v20 = vpop.f32.mrf.mxu3  ;;  %v4616_v24 = vshll.u32 %v3938_v2, 16  ;;  %v4587_v10 = vshrl.u32 %v6723_v31, 16  ;;  %v1360_v17 = vrot.slane %v1358_v3, 3  ;;  %v4590_v51 = vshll.u32 %v6723_v31, 16 }
 0x249   : > { %v5281_v41 = vadd.f32 %v5280_v39, %v5179_v50  ;;  %v5322_v40 = vmul.f32 %v5179_v50, %v5179_v50  ;;  %v4996_v43 = vadd.f32 %v4995_v20, %v4906_v48  ;;  %v3455_v42 = vpop.f32.mrf.mxu1  ;;  %v5087_v11 = vpop.f32.mrf.mxu0  ;;  %v3940_v39 = vsel %vm628_vm1, %v3938_v2, %v3939_v60 }
 0x24a   : > { %v4621_v47 = vshrl.u32 %v3940_v39, 16  ;;  %v4624_v61 = vshll.u32 %v3940_v39, 16  ;;  %v4598_v16 = vshll.u32 %v3700_v22, 16  ;;  %v1363_v0 = vrot.slane %v1361_v27, 4 }
 0x24b   : > { %v5353_v12 = vadd.f32 %v5352_v7, %v5322_v40  ;;  %v5085_v46 = vadd.f32 %v5084_v53, %v4996_v43  ;;  %v4595_v7 = vshrl.u32 %v3700_v22, 16  ;;  %v4604_v53 = vshrl.u32 %v3844_v5, 16 }
 0x24c   : > { %3494 = vmatmul.bf16.gmra.mxu1 %v1322_v32  ;;  %5126 = vmatmul.bf16.gmra.mxu0 %v4585_v55  ;;  %v4607_v34 = vshll.u32 %v3844_v5, 16  ;;  %v4615_v25 = vrot.slane %v4613_v44, 3  ;;  %v4618_v49 = vrot.slane %v4616_v24, 4  ;;  %v4623_v57 = vrot.slane %v4621_v47, 3  ;;  %v8399_v47 = vld [vmem:[#allocation13_spill] sm:$0xff] }
 0x24d   : > { %v5148_v36 = vadd.f32 %v5085_v46, %v3453_v6  ;;  %4948 = vmatmul.bf16.gmra.mxu2 %v4559_v13  ;;  %5037 = vmatmul.bf16.gmra.mxu3 %v4567_v9  ;;  %v4626_v35 = vrot.slane %v4624_v61, 4  ;;  %v4589_v21 = vrot.slane %v4587_v10, 3  ;;  %v4592_v4 = vrot.slane %v4590_v51, 4 }
 0x24e   : > { %v4597_v48 = vrot.slane %v4595_v7, 3  ;;  %v4600_v20 = vrot.slane %v4598_v16, 4  ;;  %v3456_v2 = vadd.f32 %v3455_v42, %v8398_v62  ;;  %v1356_v43 = vor.u32 %v1355_v1, %v8281_v38  ;;  %v8401_v62 = vld [vmem:[#allocation15_spill] sm:$0xff] }
 0x24f   : > { %v5180_v56 = vmax.f32 %v5148_v36, 0.0  ;;  %v1364_v55 = vor.u32 %v1363_v0, %v1360_v17  ;;  %v4606_v31 = vrot.slane %v4604_v53, 3  ;;  %v4609_v3 = vrot.slane %v4607_v34, 4 }
 0x250   : > { %v4909_v59 = vpop.f32.mrf.mxu2  ;;  %v4998_v19 = vpop.f32.mrf.mxu3  ;;  %v4627_v27 = vor.u32 %v4626_v35, %v4623_v57  ;;  %v4593_v22 = vor.u32 %v4592_v4, %v4589_v21  ;;  %v4601_v60 = vor.u32 %v4600_v20, %v4597_v48  ;;  %v8400_v57 = vld [vmem:[#allocation14_spill] sm:$0xff] }
 0x251   : > { %v6345_v26 = vpack.c.bf16 %v5180_v56, %v5179_v50  ;;  %v5282_v32 = vadd.f32 %v5281_v41, %v5180_v56  ;;  %v5323_v13 = vmul.f32 %v5180_v56, %v5180_v56  ;;  %v4999_v58 = vadd.f32 %v4998_v19, %v4909_v59  ;;  %v3457_v8 = vpop.f32.mrf.mxu1  ;;  %v5089_v63 = vpop.f32.mrf.mxu0 }
 0x252   : > { %v4619_v41 = vor.u32 %v4618_v49, %v4615_v25  ;;  %v1365_v39 = vsel %vm677_vm0, %v1356_v43, %v1364_v55  ;;  %v4610_v44 = vor.u32 %v4609_v3, %v4606_v31  ;;  %v4602_v1 = vsel %vm677_vm0, %v4593_v22, %v4601_v60 }
 0x253   : > { %6449 = vst [vmem:[%s8083_s22 + $0x28] sm:$0xff] %v6345_v26   ;;  %v5354_v9 = vadd.f32 %v5353_v12, %v5323_v13  ;;  %v5088_v40 = vadd.f32 %v5087_v11, %v4999_v58  ;;  %v3458_v61 = vadd.f32 %v3457_v8, %v8399_v47 }
 0x254   : > { %v4628_v38 = vsel %vm677_vm0, %v4619_v41, %v4627_v27 }
 0x255   : > { %v5149_v50 = vadd.f32 %v5088_v40, %v3456_v2 }
 0x257   : > { %v5181_v6 = vmax.f32 %v5149_v50, 0.0 }
 0x258   : > { %v4911_v46 = vpop.f32.mrf.mxu2  ;;  %v5000_v5 = vpop.f32.mrf.mxu3 }
 0x259   : > { %v5283_v12 = vadd.f32 %v5282_v32, %v5181_v6  ;;  %v5324_v24 = vmul.f32 %v5181_v6, %v5181_v6  ;;  %v5001_v42 = vadd.f32 %v5000_v5, %v4911_v46  ;;  %v3460_v11 = vpop.f32.mrf.mxu1  ;;  %v5092_v36 = vpop.f32.mrf.mxu0  ;;  %v8402_v5 = vld [vmem:[#allocation16_spill] sm:$0xff] }
 0x25a   : > { %v3461_v35 = vadd.f32 %v3460_v11, %v8400_v57 }
 0x25b   : > { %v5355_v10 = vadd.f32 %v5354_v9, %v5324_v24  ;;  %v5090_v17 = vadd.f32 %v5089_v63, %v5001_v42 }
 0x25c   : > { %3499 = vmatmul.bf16.gmra.mxu1 %v1365_v39  ;;  %5131 = vmatmul.bf16.gmra.mxu0 %v4628_v38 }
 0x25d   : > { %v5150_v51 = vadd.f32 %v5090_v17, %v3458_v61  ;;  %4953 = vmatmul.bf16.gmra.mxu2 %v4602_v1  ;;  %5042 = vmatmul.bf16.gmra.mxu3 %v4610_v44 }
 0x25f   : > { %v5182_v7 = vmax.f32 %v5150_v51, 0.0 }
 0x260   : > { %v4914_v16 = vpop.f32.mrf.mxu2  ;;  %v5003_v56 = vpop.f32.mrf.mxu3 }
 0x261   : > { %v6350_v0 = vpack.c.bf16 %v5182_v7, %v5181_v6  ;;  %v5284_v53 = vadd.f32 %v5283_v12, %v5182_v7  ;;  %v5325_v34 = vmul.f32 %v5182_v7, %v5182_v7  ;;  %v5004_v59 = vadd.f32 %v5003_v56, %v4914_v16  ;;  %v3462_v19 = vpop.f32.mrf.mxu1  ;;  %v5094_v25 = vpop.f32.mrf.mxu0 }
 0x262   : > { %v3463_v2 = vadd.f32 %v3462_v19, %v8401_v62 }
 0x263   : > { %6450 = vst [vmem:[%s8083_s22 + $0x30] sm:$0xff] %v6350_v0   ;;  %v5356_v49 = vadd.f32 %v5355_v10, %v5325_v34  ;;  %v5093_v26 = vadd.f32 %v5092_v36, %v5004_v59 }
 0x265   : > { %v5151_v32 = vadd.f32 %v5093_v26, %v3461_v35 }
 0x267   : > { %v5183_v13 = vmax.f32 %v5151_v32, 0.0 }
 0x268   : > { %v4916_v58 = vpop.f32.mrf.mxu2  ;;  %v5005_v8 = vpop.f32.mrf.mxu3 }
 0x269   : > { %v5285_v63 = vadd.f32 %v5284_v53, %v5183_v13  ;;  %v5326_v21 = vmul.f32 %v5183_v13, %v5183_v13  ;;  %v5006_v4 = vadd.f32 %v5005_v8, %v4916_v58  ;;  %v3465_v48 = vpop.f32.mrf.mxu1  ;;  %v5097_v20 = vpop.f32.mrf.mxu0 }
 0x26a   : > { %v3466_v39 = vadd.f32 %v3465_v48, %v8402_v5 }
 0x26b   : > { %v5357_v9 = vadd.f32 %v5356_v49, %v5326_v21  ;;  %v5095_v40 = vadd.f32 %v5094_v25, %v5006_v4 }
 0x26d   : > { %v5152_v43 = vadd.f32 %v5095_v40, %v3463_v2 }
 0x26f   : > { %v5184_v55 = vmax.f32 %v5152_v43, 0.0 }
 0x270   : > { %v4919_v31 = vpop.f32.mrf.mxu2  ;;  %v5008_v3 = vpop.f32.mrf.mxu3 }
 0x271   : > { %v6355_v50 = vpack.c.bf16 %v5184_v55, %v5183_v13  ;;  %v5286_v41 = vadd.f32 %v5285_v63, %v5184_v55  ;;  %v5327_v27 = vmul.f32 %v5184_v55, %v5184_v55  ;;  %v5009_v22 = vadd.f32 %v5008_v3, %v4919_v31  ;;  %v3467_v60 = vpop.f32.mrf.mxu1  ;;  %v5099_v6 = vpop.f32.mrf.mxu0 }
 0x272   : > { %v3468_v17 = vadd.f32 %v3467_v60, %v7650_v54 }
 0x273   : > { %6451 = vst [vmem:[%s8083_s22 + $0x38] sm:$0xff] %v6355_v50   ;;  %v5358_v46 = vadd.f32 %v5357_v9, %v5327_v27  ;;  %v5098_v44 = vadd.f32 %v5097_v20, %v5009_v22 }
 0x275   : > { %v5153_v12 = vadd.f32 %v5098_v44, %v3466_v39 }
 0x277   : > { %v5185_v24 = vmax.f32 %v5153_v12, 0.0 }
 0x278   : > { %v4921_v42 = vpop.f32.mrf.mxu2  ;;  %v5010_v11 = vpop.f32.mrf.mxu3 }
 0x279   : > { %v5287_v36 = vadd.f32 %v5286_v41, %v5185_v24  ;;  %v5328_v38 = vmul.f32 %v5185_v24, %v5185_v24  ;;  %v5011_v1 = vadd.f32 %v5010_v11, %v4921_v42  ;;  %v3470_v10 = vpop.f32.mrf.mxu1  ;;  %v5102_v47 = vpop.f32.mrf.mxu0 }
 0x27a   : > { %v3471_v35 = vadd.f32 %v3470_v10, %v7677_v23 }
 0x27b   : > { %v5359_v61 = vadd.f32 %v5358_v46, %v5328_v38  ;;  %v5100_v51 = vadd.f32 %v5099_v6, %v5011_v1 }
 0x27d   : > { %v5154_v7 = vadd.f32 %v5100_v51, %v3468_v17 }
 0x27f   : > { %v5186_v16 = vmax.f32 %v5154_v7, 0.0 }
 0x280   : > { %v4924_v56 = vpop.f32.mrf.mxu2  ;;  %v5013_v0 = vpop.f32.mrf.mxu3 }
 0x281   : > { %v6360_v53 = vpack.c.bf16 %v5186_v16, %v5185_v24  ;;  %v5288_v34 = vadd.f32 %v5287_v36, %v5186_v16  ;;  %v5329_v59 = vmul.f32 %v5186_v16, %v5186_v16  ;;  %v5014_v19 = vadd.f32 %v5013_v0, %v4924_v56  ;;  %v3472_v25 = vpop.f32.mrf.mxu1  ;;  %v5104_v49 = vpop.f32.mrf.mxu0 }
 0x282   : > { %v3473_v9 = vadd.f32 %v3472_v25, %v7700_v52 }
 0x283   : > { %6452 = vst [vmem:[%s8083_s22 + $0x40] sm:$0xff] %v6360_v53   ;;  %v5360_v57 = vadd.f32 %v5359_v61, %v5329_v59  ;;  %v5103_v26 = vadd.f32 %v5102_v47, %v5014_v19 }
 0x285   : > { %v5155_v32 = vadd.f32 %v5103_v26, %v3471_v35 }
 0x287   : > { %v5187_v13 = vmax.f32 %v5155_v32, 0.0 }
 0x288   : > { %v4926_v58 = vpop.f32.mrf.mxu2  ;;  %v5015_v54 = vpop.f32.mrf.mxu3 }
 0x289   : > { %v5289_v8 = vadd.f32 %v5288_v34, %v5187_v13  ;;  %v5330_v63 = vmul.f32 %v5187_v13, %v5187_v13  ;;  %v5016_v21 = vadd.f32 %v5015_v54, %v4926_v58  ;;  %v3475_v4 = vpop.f32.mrf.mxu1  ;;  %v5107_v48 = vpop.f32.mrf.mxu0 }
 0x28a   : > { %v3476_v60 = vadd.f32 %v3475_v4, %v7723_v18 }
 0x28b   : > { %v5361_v20 = vadd.f32 %v5360_v57, %v5330_v63  ;;  %v5105_v62 = vadd.f32 %v5104_v49, %v5016_v21 }
 0x28d   : > { %v5156_v2 = vadd.f32 %v5105_v62, %v3473_v9 }
 0x28f   : > { %v5188_v40 = vmax.f32 %v5156_v2, 0.0 }
 0x290   : > { %v4929_v43 = vpop.f32.mrf.mxu2  ;;  %v5018_v55 = vpop.f32.mrf.mxu3 }
 0x291   : > { %v6365_v23 = vpack.c.bf16 %v5188_v40, %v5187_v13  ;;  %v5290_v31 = vadd.f32 %v5289_v8, %v5188_v40  ;;  %v5331_v3 = vmul.f32 %v5188_v40, %v5188_v40  ;;  %v5019_v50 = vadd.f32 %v5018_v55, %v4929_v43  ;;  %v3477_v41 = vpop.f32.mrf.mxu1  ;;  %v5109_v27 = vpop.f32.mrf.mxu0 }
 0x292   : > { %v3478_v38 = vadd.f32 %v3477_v41, %v7751_v15 }
 0x293   : > { %6453 = vst [vmem:[%s8083_s22 + $0x48] sm:$0xff] %v6365_v23   ;;  %v5362_v22 = vadd.f32 %v5361_v20, %v5331_v3  ;;  %v5108_v6 = vadd.f32 %v5107_v48, %v5019_v50 }
 0x295   : > { %v5157_v46 = vadd.f32 %v5108_v6, %v3476_v60 }
 0x297   : > { %v5189_v5 = vmax.f32 %v5157_v46, 0.0 }
 0x298   : > { %v4931_v39 = vpop.f32.mrf.mxu2  ;;  %v5020_v52 = vpop.f32.mrf.mxu3 }
 0x299   : > { %v5291_v44 = vadd.f32 %v5290_v31, %v5189_v5  ;;  %v5332_v12 = vmul.f32 %v5189_v5, %v5189_v5  ;;  %v5021_v24 = vadd.f32 %v5020_v52, %v4931_v39  ;;  %v3480_v42 = vpop.f32.mrf.mxu1  ;;  %v5112_v11 = vpop.f32.mrf.mxu0 }
 0x29a   : > { %v3481_v34 = vadd.f32 %v3480_v42, %v7789_v14 }
 0x29b   : > { %v5363_v36 = vadd.f32 %v5362_v22, %v5332_v12  ;;  %v5110_v1 = vadd.f32 %v5109_v27, %v5021_v24 }
 0x29d   : > { %v5158_v10 = vadd.f32 %v5110_v1, %v3478_v38 }
 0x29f   : > { %v5190_v47 = vmax.f32 %v5158_v10, 0.0 }
 0x2a0   : > { %v4934_v61 = vpop.f32.mrf.mxu2  ;;  %v5023_v17 = vpop.f32.mrf.mxu3 }
 0x2a1   : > { %v6370_v18 = vpack.c.bf16 %v5190_v47, %v5189_v5  ;;  %v5292_v51 = vadd.f32 %v5291_v44, %v5190_v47  ;;  %v5333_v7 = vmul.f32 %v5190_v47, %v5190_v47  ;;  %v5024_v16 = vadd.f32 %v5023_v17, %v4934_v61  ;;  %v3482_v56 = vpop.f32.mrf.mxu1  ;;  %v5114_v0 = vpop.f32.mrf.mxu0 }
 0x2a2   : > { %v3483_v54 = vadd.f32 %v3482_v56, %v7810_v45 }
 0x2a3   : > { %6454 = vst [vmem:[%s8083_s22 + $0x50] sm:$0xff] %v6370_v18   ;;  %v5364_v53 = vadd.f32 %v5363_v36, %v5333_v7  ;;  %v5113_v59 = vadd.f32 %v5112_v11, %v5024_v16 }
 0x2a5   : > { %v5159_v19 = vadd.f32 %v5113_v59, %v3481_v34 }
 0x2a7   : > { %v5191_v25 = vmax.f32 %v5159_v19, 0.0 }
 0x2a8   : > { %v4936_v49 = vpop.f32.mrf.mxu2  ;;  %v5025_v15 = vpop.f32.mrf.mxu3 }
 0x2a9   : > { %v5293_v57 = vadd.f32 %v5292_v51, %v5191_v25  ;;  %v5334_v35 = vmul.f32 %v5191_v25, %v5191_v25  ;;  %v5026_v26 = vadd.f32 %v5025_v15, %v4936_v49  ;;  %v3485_v32 = vpop.f32.mrf.mxu1  ;;  %v5117_v13 = vpop.f32.mrf.mxu0 }
 0x2aa   : > { %v3486_v55 = vadd.f32 %v3485_v32, %v7851_v33 }
 0x2ab   : > { %v5365_v58 = vadd.f32 %v5364_v53, %v5334_v35  ;;  %v5115_v8 = vadd.f32 %v5114_v0, %v5026_v26 }
 0x2ad   : > { %v5160_v63 = vadd.f32 %v5115_v8, %v3483_v54 }
 0x2af   : > { %v5192_v21 = vmax.f32 %v5160_v63, 0.0  ;;  %v6801_v63 = vmov 0.0  }
 0x2b0   : > { %v4939_v4 = vpop.f32.mrf.mxu2  ;;  %v5028_v48 = vpop.f32.mrf.mxu3  ;;  %5269 = vst [vmem:[%s8320_s24] sm:$0x1] %v6801_v63 }
 0x2b1   : > { %v6375_v14 = vpack.c.bf16 %v5192_v21, %v5191_v25  ;;  %v5294_v20 = vadd.f32 %v5293_v57, %v5192_v21  ;;  %v5335_v9 = vmul.f32 %v5192_v21, %v5192_v21  ;;  %v5029_v62 = vadd.f32 %v5028_v48, %v4939_v4  ;;  %v3487_v2 = vpop.f32.mrf.mxu1  ;;  %v5119_v40 = vpop.f32.mrf.mxu0  ;;  %5270 = vst [vmem:[%s8326_s27] sm:$0x1] %v6801_v63 }
 0x2b2   : > { %v3488_v5 = vadd.f32 %v3487_v2, %v7875_v29 }
 0x2b3   : > { %6455 = vst [vmem:[%s8083_s22 + $0x58] sm:$0xff] %v6375_v14   ;;  %v5366_v43 = vadd.f32 %v5365_v58, %v5335_v9  ;;  %v5118_v23 = vadd.f32 %v5117_v13, %v5029_v62  ;;  %v8403_v13 = vld [vmem:[#allocation2_spill] sm:$0xff] }
 0x2b5   : > { %v5161_v31 = vadd.f32 %v5118_v23, %v3486_v55 }
 0x2b7   : > { %v5193_v3 = vmax.f32 %v5161_v31, 0.0 }
 0x2b8   : > { %v4941_v50 = vpop.f32.mrf.mxu2  ;;  %v5030_v45 = vpop.f32.mrf.mxu3 }
 0x2b9   : > { %v5295_v41 = vadd.f32 %v5294_v20, %v5193_v3  ;;  %v5336_v27 = vmul.f32 %v5193_v3, %v5193_v3  ;;  %v5031_v22 = vadd.f32 %v5030_v45, %v4941_v50  ;;  %v3490_v60 = vpop.f32.mrf.mxu1  ;;  %v5122_v6 = vpop.f32.mrf.mxu0 }
 0x2ba   : > { %v3491_v47 = vadd.f32 %v3490_v60, %v7902_v30 }
 0x2bb   : > { %v5367_v46 = vadd.f32 %v5366_v43, %v5336_v27  ;;  %v5120_v39 = vadd.f32 %v5119_v40, %v5031_v22  ;;  %v8404_v43 = vld [vmem:[#allocation3_spill] sm:$0xff] }
 0x2bd   : > { %v5162_v52 = vadd.f32 %v5120_v39, %v3488_v5  ;;  %v8405_v39 = vld [vmem:[#allocation4_spill] sm:$0xff] }
 0x2bf   : > { %v5194_v44 = vmax.f32 %v5162_v52, 0.0 }
 0x2c0   : > { %v4944_v12 = vpop.f32.mrf.mxu2  ;;  %v5033_v24 = vpop.f32.mrf.mxu3 }
 0x2c1   : > { %v6380_v33 = vpack.c.bf16 %v5194_v44, %v5193_v3  ;;  %v5296_v42 = vadd.f32 %v5295_v41, %v5194_v44  ;;  %v5337_v11 = vmul.f32 %v5194_v44, %v5194_v44  ;;  %v5034_v36 = vadd.f32 %v5033_v24, %v4944_v12  ;;  %v3492_v38 = vpop.f32.mrf.mxu1  ;;  %v5124_v1 = vpop.f32.mrf.mxu0 }
 0x2c2   : > { %v3493_v34 = vadd.f32 %v3492_v38, %v7924_v37 }
 0x2c3   : > { %6456 = vst [vmem:[%s8083_s22 + $0x60] sm:$0xff] %v6380_v33   ;;  %v5368_v10 = vadd.f32 %v5367_v46, %v5337_v11  ;;  %v5123_v61 = vadd.f32 %v5122_v6, %v5034_v36 }
 0x2c5   : > { %v5163_v17 = vadd.f32 %v5123_v61, %v3491_v47 }
 0x2c7   : > { %v5195_v18 = vmax.f32 %v5163_v17, 0.0 }
 0x2c8   : > { %v4946_v51 = vpop.f32.mrf.mxu2  ;;  %v5035_v29 = vpop.f32.mrf.mxu3 }
 0x2c9   : > { %v5297_v7 = vadd.f32 %v5296_v42, %v5195_v18  ;;  %v5338_v16 = vmul.f32 %v5195_v18, %v5195_v18  ;;  %v5036_v56 = vadd.f32 %v5035_v29, %v4946_v51  ;;  %v3495_v0 = vpop.f32.mrf.mxu1  ;;  %v5127_v19 = vpop.f32.mrf.mxu0 }
 0x2ca   : > { %v3496_v58 = vadd.f32 %v3495_v0, %v8403_v13 }
 0x2cb   : > { %v5369_v53 = vadd.f32 %v5368_v10, %v5338_v16  ;;  %v5125_v59 = vadd.f32 %v5124_v1, %v5036_v56 }
 0x2cd   : > { %v5164_v25 = vadd.f32 %v5125_v59, %v3493_v34 }
 0x2cf   : > { %v5196_v49 = vmax.f32 %v5164_v25, 0.0 }
 0x2d0   : > { %v4949_v30 = vpop.f32.mrf.mxu2  ;;  %v5038_v15 = vpop.f32.mrf.mxu3 }
 0x2d1   : > { %v6385_v57 = vpack.c.bf16 %v5196_v49, %v5195_v18  ;;  %v5298_v35 = vadd.f32 %v5297_v7, %v5196_v49  ;;  %v5339_v26 = vmul.f32 %v5196_v49, %v5196_v49  ;;  %v5039_v32 = vadd.f32 %v5038_v15, %v4949_v30  ;;  %v3497_v8 = vpop.f32.mrf.mxu1  ;;  %v5129_v4 = vpop.f32.mrf.mxu0  ;;  %v5271_v15 = vld [vmem:[%s8320_s24] sm:$0x1] }
 0x2d2   : > { %v3498_v55 = vadd.f32 %v3497_v8, %v8404_v43 }
 0x2d3   : > { %6457 = vst [vmem:[%s8083_s22 + $0x68] sm:$0xff] %v6385_v57   ;;  %v5370_v37 = vadd.f32 %v5369_v53, %v5339_v26  ;;  %v5128_v54 = vadd.f32 %v5127_v19, %v5039_v32  ;;  %v5311_v26 = vld [vmem:[%s8326_s27] sm:$0x1] }
 0x2d5   : > { %v5165_v21 = vadd.f32 %v5128_v54, %v3496_v58 }
 0x2d7   : > { %v5197_v48 = vmax.f32 %v5165_v21, 0.0 }
 0x2d8   : > { %v4951_v14 = vpop.f32.mrf.mxu2  ;;  %v5040_v20 = vpop.f32.mrf.mxu3 }
 0x2d9   : > { %v5299_v9 = vadd.f32 %v5298_v35, %v5197_v48  ;;  %v5340_v62 = vmul.f32 %v5197_v48, %v5197_v48  ;;  %v5041_v2 = vadd.f32 %v5040_v20, %v4951_v14  ;;  %v3500_v3 = vpop.f32.mrf.mxu1  ;;  %v5132_v45 = vpop.f32.mrf.mxu0 }
 0x2da   : > { %v3501_v52 = vadd.f32 %v3500_v3, %v8405_v39 }
 0x2db   : > { %v5371_v40 = vadd.f32 %v5370_v37, %v5340_v62  ;;  %v5130_v23 = vadd.f32 %v5129_v4, %v5041_v2 }
 0x2dd   : > { %v5166_v31 = vadd.f32 %v5130_v23, %v3498_v55 }
 0x2df   : > { %v5198_v50 = vmax.f32 %v5166_v31, 0.0 }
 0x2e0   : > { %v4954_v41 = vpop.f32.mrf.mxu2  ;;  %v5043_v27 = vpop.f32.mrf.mxu3 }
 0x2e1   : > { %v6390_v22 = vpack.c.bf16 %v5198_v50, %v5197_v48  ;;  %v5300_v60 = vadd.f32 %v5299_v9, %v5198_v50  ;;  %v5341_v6 = vmul.f32 %v5198_v50, %v5198_v50  ;;  %v5044_v46 = vadd.f32 %v5043_v27, %v4954_v41  ;;  %v3502_v33 = vpop.f32.mrf.mxu1  ;;  %v5134_v10 = vpop.f32.mrf.mxu0 }
 0x2e2   : > { %v3503_v61 = vadd.f32 %v3502_v33, %v8016_v28 }
 0x2e3   : > { %6458 = vst [vmem:[%s8083_s22 + $0x70] sm:$0xff] %v6390_v22   ;;  %v5372_v5 = vadd.f32 %v5371_v40, %v5341_v6  ;;  %v5133_v44 = vadd.f32 %v5132_v45, %v5044_v46 }
 0x2e5   : > { %v5167_v12 = vadd.f32 %v5133_v44, %v3501_v52 }
 0x2e7   : > { %v5199_v24 = vmax.f32 %v5167_v12, 0.0 }
 0x2e8   : > { %v4956_v42 = vpop.f32.mrf.mxu2  ;;  %v5045_v11 = vpop.f32.mrf.mxu3 }
 0x2e9   : > { %v5301_v36 = vadd.f32 %v5300_v60, %v5199_v24  ;;  %v5342_v38 = vmul.f32 %v5199_v24, %v5199_v24  ;;  %v5046_v1 = vadd.f32 %v5045_v11, %v4956_v42 }
 0x2eb   : > { %v5373_v47 = vadd.f32 %v5372_v5, %v5342_v38  ;;  %v5135_v17 = vadd.f32 %v5134_v10, %v5046_v1 }
 0x2ed   : > { %v5168_v18 = vadd.f32 %v5135_v17, %v3503_v61 }
 0x2ef   : > { %v5200_v51 = vmax.f32 %v5168_v18, 0.0 }
 0x2f1   : > { %v6395_v29 = vpack.c.bf16 %v5200_v51, %v5199_v24  ;;  %v5302_v7 = vadd.f32 %v5301_v36, %v5200_v51  ;;  %v5343_v16 = vmul.f32 %v5200_v51, %v5200_v51 }
 0x2f3   : > { %6459 = vst [vmem:[%s8083_s22 + $0x78] sm:$0xff] %v6395_v29   ;;  %v5303_v56 = vrot.slane %v5302_v7, 4  ;;  %v5374_v0 = vadd.f32 %v5373_v47, %v5343_v16 }
 0x2f5   : > { %v5304_v53 = vadd.f32 %v5303_v56, %v5302_v7  ;;  %v5375_v34 = vrot.slane %v5374_v0, 4 }
 0x2f7   : > { %v5305_v59 = vrot.slane %v5304_v53, 2  ;;  %v5376_v19 = vadd.f32 %v5375_v34, %v5374_v0 }
 0x2f9   : > { %v5306_v25 = vadd.f32 %v5305_v59, %v5304_v53  ;;  %v5377_v49 = vrot.slane %v5376_v19, 2 }
 0x2fb   : > { %v5307_v28 = vrot.slane %v5306_v25, 1  ;;  %v5378_v30 = vadd.f32 %v5377_v49, %v5376_v19 }
 0x2fd   : > { %v5308_v57 = vadd.f32 %v5307_v28, %v5306_v25  ;;  %v5379_v35 = vrot.slane %v5378_v30, 1 }
 0x2ff   : > { %v5309_v32 = vadd.f32 %v5308_v57, %v5271_v15  ;;  %v5380_v37 = vadd.f32 %v5379_v35, %v5378_v30 }
 0x301   : > { %5310 = vst [vmem:[%s8320_s24] sm:$0x1] %v5309_v32  ;;  %v5381_v13 = vadd.f32 %v5380_v37, %v5311_v26 }
 0x303   : > { %5382 = vst [vmem:[%s8326_s27] sm:$0x1] %v5381_v13 }
 0x304 PF: > { %s15_s17 = sadd.s32 1, %s6799_s17   ;;  %s8406_s15 = smov %s6795_s16 }
 0x305   : > { %p12_p5 = scmp.ge.s32.totalorder %s15_s17, 4   ;;  %s8407_s16 = smov %s8409_s18 }
 0x307   :  { %14 = sbr.rel (!%p12_p5) target bundleno = 2 (0x2), region = 91 }

</bundles_post_ra>
